<compile_context>
chip_gen: v7x
topology: tpu7x:2x2x1
jax: 0.10.0
libtpu: 0.0.40
codegen_flags: <defaults>
</compile_context>

<pallas_src>
import numpy as np

import jax
import jax.numpy as jnp
from jax import lax
from jax.experimental import pallas as pl
from jax.experimental.pallas import tpu as pltpu


def _round_up(x, m):
    return -(-x // m) * m


def _bilinear_axis_matrix(out_size, in_size):
    """1-D weights matching F.interpolate(mode='bilinear', align_corners=False)."""
    scale = in_size / out_size
    A = np.zeros((out_size, in_size), np.float32)
    for o in range(out_size):
        src = max((o + 0.5) * scale - 0.5, 0.0)
        i0 = min(int(np.floor(src)), in_size - 1)
        frac = src - i0
        i1 = min(i0 + 1, in_size - 1)
        A[o, i0] += 1.0 - frac
        A[o, i1] += frac
    return A


def _bilinear_pad_matrix(h, w, Hp, Wp, S):
    """(h*w, S): pm_flat (C, h*w) @ M = x2-upsampled map on the flattened
    zero-padded (Hp, Wp) grid (padding ring and lane tail are zero columns)."""
    H, W = Hp - 2, Wp - 2
    Ay = np.zeros((Hp, h), np.float32)
    Ay[1:H + 1] = _bilinear_axis_matrix(H, h)
    Ax = np.zeros((Wp, w), np.float32)
    Ax[1:W + 1] = _bilinear_axis_matrix(W, w)
    M = np.einsum("yj,xi->jiyx", Ay, Ax).reshape(h * w, Hp * Wp)
    return np.pad(M, ((0, 0), (0, S - Hp * Wp)))


def refine_forward(f, pm, params):
    """Pallas TPU implementation of Refine.forward.

    f:  (B, inplanes, H, W) f32, pm: (B, planes, H//2, W//2) f32.
    params: PyTorch-layout (OIHW) conv weights / biases.
    Returns m: (B, planes, H, W) f32.
    """
    wfs, bfs = params["convFS.w"], params["convFS.b"]
    w1f, b1f = params["ResFS.conv1.w"], params["ResFS.conv1.b"]
    w2f, b2f = params["ResFS.conv2.w"], params["ResFS.conv2.b"]
    w1m, b1m = params["ResMM.conv1.w"], params["ResMM.conv1.b"]
    w2m, b2m = params["ResMM.conv2.w"], params["ResMM.conv2.b"]

    B, Cin, H, W = f.shape
    planes = wfs.shape[0]
    _, _, h, w = pm.shape
    if (2 * h, 2 * w) != (H, W):
        raise ValueError("pm must be exactly 2x smaller than f (scale_factor=2)")

    Hp, Wp = H + 2, W + 2                 # zero-padded spatial grid
    HpWp = Hp * Wp
    S = _round_up(HpWp, 128)              # lane-aligned flattened spatial length
    E = _round_up(Wp + 1, 128)            # halo so every tap is an in-bounds slice
    L = S + 2 * E
    shifts = [(dy - 1) * Wp + (dx - 1) for dy in range(3) for dx in range(3)]

    # Sublane-align convFS's input channels (zero channels contribute nothing).
    CinP = _round_up(Cin, 8)
    if CinP != Cin:
        f = jnp.pad(f, ((0, 0), (0, CinP - Cin), (0, 0), (0, 0)))
        wfs = jnp.pad(wfs, ((0, 0), (0, CinP - Cin), (0, 0), (0, 0)))

    # f -> channel-major, zero-padded, flattened, halo-extended.  One cheap pad,
    # zero layout transposes in HBM.
    f_flat = jnp.pad(f, ((0, 0), (0, 0), (1, 1), (1, 1))).reshape(B, CinP, HpWp)
    f_ext = jnp.pad(f_flat, ((0, 0), (0, 0), (E, E + S - HpWp)))
    pm_flat = pm.reshape(B, planes, h * w)

    def taps(wgt):   # OIHW -> (Cout, 9*Cin), tap-major to match the stacked slices
        co, ci = wgt.shape[0], wgt.shape[1]
        return jnp.transpose(wgt, (0, 2, 3, 1)).reshape(co, 9 * ci).astype(jnp.float32)

    def col(bias):   # (Cout,) -> (Cout, 1): sublane-broadcast bias
        return bias.reshape(-1, 1).astype(jnp.float32)

    interior = np.zeros((Hp, Wp), np.float32)
    interior[1:H + 1, 1:W + 1] = 1.0
    mask_np = np.zeros((1, S), np.float32)
    mask_np[0, :HpWp] = interior.reshape(-1)
    mask = jnp.asarray(mask_np)

    up_mat = jnp.asarray(_bilinear_pad_matrix(h, w, Hp, Wp, S))

    def kernel(f_ref, pm_ref, up_ref, mask_ref,
               wfs_ref, bfs_ref, w1f_ref, b1f_ref, w2f_ref, b2f_ref,
               w1m_ref, b1m_ref, w2m_ref, b2m_ref, out_ref):
        msk = mask_ref[...]                                   # (1, S)

        def conv3x3(x_ext, w_ref, b_ref):
            # x_ext: (Cin, L) halo-extended flat map with a zero padding ring.
            cols = [x_ext[:, E + s:E + s + S] for s in shifts]
            stacked = jnp.concatenate(cols, axis=0)           # (9*Cin, S) im2col
            y = jnp.dot(w_ref[...], stacked,                  # one MXU dot / conv
                        preferred_element_type=jnp.float32)
            return (y + b_ref[...]) * msk                     # re-zero the ring

        def extend(a):                                        # (C, S) -> (C, L)
            z = jnp.zeros((a.shape[0], E), jnp.float32)
            return jnp.concatenate([z, a, z], axis=1)         # 128-aligned concat

        def resblock(x, w1_ref, b1_ref, w2_ref, b2_ref):
            r = conv3x3(extend(jnp.maximum(x, 0.0)), w1_ref, b1_ref)
            r = conv3x3(extend(jnp.maximum(r, 0.0)), w2_ref, b2_ref)
            return x + r

        s = conv3x3(f_ref[0], wfs_ref, bfs_ref)               # convFS
        s = resblock(s, w1f_ref, b1f_ref, w2f_ref, b2f_ref)   # ResFS
        up = jnp.dot(pm_ref[0], up_ref[...],                  # bilinear x2 as 1 dot
                     preferred_element_type=jnp.float32)
        m = s + up
        m = resblock(m, w1m_ref, b1m_ref, w2m_ref, b2m_ref)   # ResMM
        out_ref[0] = m.astype(out_ref.dtype)                  # lane-dense store

    def fixed(shape):
        return pl.BlockSpec(shape, lambda b: (0,) * len(shape))

    grid_spec = pltpu.PrefetchScalarGridSpec(
        num_scalar_prefetch=0,
        grid=(B,),
        in_specs=[
            pl.BlockSpec((1, CinP, L), lambda b: (b, 0, 0)),
            pl.BlockSpec((1, planes, h * w), lambda b: (b, 0, 0)),
            fixed((h * w, S)),
            fixed((1, S)),
            fixed((planes, 9 * CinP)), fixed((planes, 1)),
            fixed((planes, 9 * planes)), fixed((planes, 1)),
            fixed((planes, 9 * planes)), fixed((planes, 1)),
            fixed((planes, 9 * planes)), fixed((planes, 1)),
            fixed((planes, 9 * planes)), fixed((planes, 1)),
        ],
        out_specs=pl.BlockSpec((1, planes, S), lambda b: (b, 0, 0)),
    )

    out_flat = pl.pallas_call(
        kernel,
        out_shape=jax.ShapeDtypeStruct((B, planes, S), jnp.float32),
        grid_spec=grid_spec,
        compiler_params=pltpu.CompilerParams(
            dimension_semantics=("parallel",)),
    )(f_ext, pm_flat, up_mat, mask,
      taps(wfs), col(bfs), taps(w1f), col(b1f), taps(w2f), col(b2f),
      taps(w1m), col(b1m), taps(w2m), col(b2m))

    # (B, planes, S) is already channel-major: drop the lane tail + padding ring.
    return out_flat[:, :, :HpWp].reshape(B, planes, Hp, Wp)[:, :, 1:-1, 1:-1]


# ----------------------------- pure-JAX reference -----------------------------

def _conv3x3_ref(x, wgt, b):
    dn = lax.conv_dimension_numbers(x.shape, wgt.shape, ("NCHW", "OIHW", "NCHW"))
    y = lax.conv_general_dilated(x, wgt, (1, 1), ((1, 1), (1, 1)),
                                 dimension_numbers=dn)
    return y + b[None, :, None, None]


def _resblock_ref(x, w1, b1, w2, b2):
    r = _conv3x3_ref(jax.nn.relu(x), w1, b1)
    r = _conv3x3_ref(jax.nn.relu(r), w2, b2)
    return x + r


def _upsample2x_ref(x):
    # F.interpolate(scale_factor=2, mode='bilinear', align_corners=False)
    n, m = x.shape[2], x.shape[3]

    def src(out_size, in_size):
        s = jnp.maximum((jnp.arange(out_size, dtype=jnp.float32) + 0.5) / 2.0 - 0.5, 0.0)
        i0 = jnp.minimum(jnp.floor(s).astype(jnp.int32), in_size - 1)
        frac = s - i0.astype(jnp.float32)
        i1 = jnp.minimum(i0 + 1, in_size - 1)
        return i0, i1, frac

    y0, y1, fy = src(2 * n, n)
    x0, x1, fx = src(2 * m, m)
    rows = (x[:, :, y0, :] * (1.0 - fy)[None, None, :, None]
            + x[:, :, y1, :] * fy[None, None, :, None])
    out = (rows[:, :, :, x0] * (1.0 - fx)[None, None, None, :]
           + rows[:, :, :, x1] * fx[None, None, None, :])
    return out


def _refine_reference(f, pm, p):
    s = _conv3x3_ref(f, p["convFS.w"], p["convFS.b"])
    s = _resblock_ref(s, p["ResFS.conv1.w"], p["ResFS.conv1.b"],
                      p["ResFS.conv2.w"], p["ResFS.conv2.b"])
    m = s + _upsample2x_ref(pm)
    m = _resblock_ref(m, p["ResMM.conv1.w"], p["ResMM.conv1.b"],
                      p["ResMM.conv2.w"], p["ResMM.conv2.b"])
    return m


if __name__ == "__main__":
    # Small shapes consistent with the module: inplanes=4, planes=16, 16x16 image,
    # pm at half resolution (scale_factor=2 bilinear upsample inside Refine).
    B, inplanes, planes = 2, 4, 16
    H = W = 16
    h, w = H // 2, W // 2

    root = jax.random.PRNGKey(0)
    keys = jax.random.split(root, 8)
    f = jax.random.normal(keys[0], (B, inplanes, H, W), dtype=jnp.float32)
    pm = jax.random.normal(keys[1], (B, planes, h, w), dtype=jnp.float32)

    def conv_params(k, cout, cin):
        k1, k2 = jax.random.split(k)
        wgt = jax.random.normal(k1, (cout, cin, 3, 3), dtype=jnp.float32) * 0.1
        b = jax.random.normal(k2, (cout,), dtype=jnp.float32) * 0.1
        return wgt, b

    params = {}
    params["convFS.w"], params["convFS.b"] = conv_params(keys[2], planes, inplanes)
    params["ResFS.conv1.w"], params["ResFS.conv1.b"] = conv_params(keys[3], planes, planes)
    params["ResFS.conv2.w"], params["ResFS.conv2.b"] = conv_params(keys[4], planes, planes)
    params["ResMM.conv1.w"], params["ResMM.conv1.b"] = conv_params(keys[5], planes, planes)
    params["ResMM.conv2.w"], params["ResMM.conv2.b"] = conv_params(keys[6], planes, planes)

    out = jax.jit(refine_forward)(f, pm, params)
    jax.block_until_ready(out)

    ref = _refine_reference(f, pm, params)
    assert out.shape == (B, planes, H, W), out.shape
    max_err = float(jnp.max(jnp.abs(out - ref)))
    assert jnp.allclose(out, ref, atol=5e-3, rtol=5e-3), f"max abs err = {max_err}"

    print("KERNEL_OK")
</pallas_src>

<mosaic_0001>
module attributes {stable_mosaic.version = 11 : i64} {
  func.func @kernel(%arg0: i32, %arg1: memref<1x8x640xf32, #tpu.memory_space<vmem>>, %arg2: memref<1x16x64xf32, #tpu.memory_space<vmem>>, %arg3: memref<64x384xf32, #tpu.memory_space<vmem>>, %arg4: memref<1x384xf32, #tpu.memory_space<vmem>>, %arg5: memref<16x72xf32, #tpu.memory_space<vmem>>, %arg6: memref<16x1xf32, #tpu.memory_space<vmem>>, %arg7: memref<16x144xf32, #tpu.memory_space<vmem>>, %arg8: memref<16x1xf32, #tpu.memory_space<vmem>>, %arg9: memref<16x144xf32, #tpu.memory_space<vmem>>, %arg10: memref<16x1xf32, #tpu.memory_space<vmem>>, %arg11: memref<16x144xf32, #tpu.memory_space<vmem>>, %arg12: memref<16x1xf32, #tpu.memory_space<vmem>>, %arg13: memref<16x144xf32, #tpu.memory_space<vmem>>, %arg14: memref<16x1xf32, #tpu.memory_space<vmem>>, %arg15: memref<1x16x384xf32, #tpu.memory_space<vmem>>) attributes {dimension_semantics = [#tpu.dimension_semantics<parallel>], iteration_bounds = array<i64: 2>, scalar_prefetch = 0 : i64, scratch_operands = 0 : i64, tpu.core_type = #tpu.core_type<tc>, window_params = [{transform_indices = @transform_0, window_bounds = array<i64: 1, 8, 640>}, {transform_indices = @transform_1, window_bounds = array<i64: 1, 16, 64>}, {pipeline_mode = #tpu.pipeline_mode<synchronous>, transform_indices = @transform_2, window_bounds = array<i64: 64, 384>}, {pipeline_mode = #tpu.pipeline_mode<synchronous>, transform_indices = @transform_3, window_bounds = array<i64: 1, 384>}, {pipeline_mode = #tpu.pipeline_mode<synchronous>, transform_indices = @transform_4, window_bounds = array<i64: 16, 72>}, {pipeline_mode = #tpu.pipeline_mode<synchronous>, transform_indices = @transform_5, window_bounds = array<i64: 16, 1>}, {pipeline_mode = #tpu.pipeline_mode<synchronous>, transform_indices = @transform_6, window_bounds = array<i64: 16, 144>}, {pipeline_mode = #tpu.pipeline_mode<synchronous>, transform_indices = @transform_7, window_bounds = array<i64: 16, 1>}, {pipeline_mode = #tpu.pipeline_mode<synchronous>, transform_indices = @transform_8, window_bounds = array<i64: 16, 144>}, {pipeline_mode = #tpu.pipeline_mode<synchronous>, transform_indices = @transform_9, window_bounds = array<i64: 16, 1>}, {pipeline_mode = #tpu.pipeline_mode<synchronous>, transform_indices = @transform_10, window_bounds = array<i64: 16, 144>}, {pipeline_mode = #tpu.pipeline_mode<synchronous>, transform_indices = @transform_11, window_bounds = array<i64: 16, 1>}, {pipeline_mode = #tpu.pipeline_mode<synchronous>, transform_indices = @transform_12, window_bounds = array<i64: 16, 144>}, {pipeline_mode = #tpu.pipeline_mode<synchronous>, transform_indices = @transform_13, window_bounds = array<i64: 16, 1>}, {transform_indices = @transform_14, window_bounds = array<i64: 1, 16, 384>}]} {
    %c0 = arith.constant 0 : index
    %c0_0 = arith.constant 0 : index
    %0 = vector.load %arg4[%c0, %c0_0] : memref<1x384xf32, #tpu.memory_space<vmem>>, vector<1x384xf32>
    %c0_1 = arith.constant 0 : index
    %c0_2 = arith.constant 0 : index
    %c0_3 = arith.constant 0 : index
    %1 = vector.load %arg1[%c0_1, %c0_2, %c0_3] : memref<1x8x640xf32, #tpu.memory_space<vmem>>, vector<1x8x640xf32>
    %2 = vector.shape_cast %1 : vector<1x8x640xf32> to vector<8x640xf32>
    %3 = vector.extract_strided_slice %2 {offsets = [0, 109], sizes = [8, 384], strides = [1, 1]} : vector<8x640xf32> to vector<8x384xf32>
    %4 = vector.extract_strided_slice %2 {offsets = [0, 110], sizes = [8, 384], strides = [1, 1]} : vector<8x640xf32> to vector<8x384xf32>
    %5 = vector.extract_strided_slice %2 {offsets = [0, 111], sizes = [8, 384], strides = [1, 1]} : vector<8x640xf32> to vector<8x384xf32>
    %6 = vector.extract_strided_slice %2 {offsets = [0, 127], sizes = [8, 384], strides = [1, 1]} : vector<8x640xf32> to vector<8x384xf32>
    %7 = vector.extract_strided_slice %2 {offsets = [0, 128], sizes = [8, 384], strides = [1, 1]} : vector<8x640xf32> to vector<8x384xf32>
    %8 = vector.extract_strided_slice %2 {offsets = [0, 129], sizes = [8, 384], strides = [1, 1]} : vector<8x640xf32> to vector<8x384xf32>
    %9 = vector.extract_strided_slice %2 {offsets = [0, 145], sizes = [8, 384], strides = [1, 1]} : vector<8x640xf32> to vector<8x384xf32>
    %10 = vector.extract_strided_slice %2 {offsets = [0, 146], sizes = [8, 384], strides = [1, 1]} : vector<8x640xf32> to vector<8x384xf32>
    %11 = vector.extract_strided_slice %2 {offsets = [0, 147], sizes = [8, 384], strides = [1, 1]} : vector<8x640xf32> to vector<8x384xf32>
    %12 = tpu.concatenate %3, %4, %5, %6, %7, %8, %9, %10, %11 in 0 : vector<8x384xf32>, vector<8x384xf32>, vector<8x384xf32>, vector<8x384xf32>, vector<8x384xf32>, vector<8x384xf32>, vector<8x384xf32>, vector<8x384xf32>, vector<8x384xf32> -> vector<72x384xf32>
    %c0_4 = arith.constant 0 : index
    %c0_5 = arith.constant 0 : index
    %13 = vector.load %arg5[%c0_4, %c0_5] : memref<16x72xf32, #tpu.memory_space<vmem>>, vector<16x72xf32>
    %cst = arith.constant dense<0.000000e+00> : vector<16x384xf32>
    %14 = tpu.matmul %13, %12, %cst {dimension_numbers = #tpu.dot_dimension_numbers<[1], [0], [0], [1], [0, 0, 1, 1], [], []>} : vector<16x72xf32>, vector<72x384xf32>, vector<16x384xf32> -> vector<16x384xf32>
    %c0_6 = arith.constant 0 : index
    %c0_7 = arith.constant 0 : index
    %15 = vector.load %arg6[%c0_6, %c0_7] : memref<16x1xf32, #tpu.memory_space<vmem>>, vector<16x1xf32>
    %16 = vector.broadcast %15 : vector<16x1xf32> to vector<16x384xf32>
    %17 = arith.addf %14, %16 : vector<16x384xf32>
    %18 = vector.broadcast %0 : vector<1x384xf32> to vector<16x384xf32>
    %19 = arith.mulf %17, %18 : vector<16x384xf32>
    %cst_8 = arith.constant 0.000000e+00 : f32
    %20 = vector.broadcast %cst_8 : f32 to vector<16x384xf32>
    %21 = arith.maximumf %19, %20 : vector<16x384xf32>
    %cst_9 = arith.constant 0.000000e+00 : f32
    %22 = vector.broadcast %cst_9 : f32 to vector<16x128xf32>
    %23 = tpu.concatenate %22, %21, %22 in 1 : vector<16x128xf32>, vector<16x384xf32>, vector<16x128xf32> -> vector<16x640xf32>
    %24 = vector.extract_strided_slice %23 {offsets = [0, 109], sizes = [16, 384], strides = [1, 1]} : vector<16x640xf32> to vector<16x384xf32>
    %25 = vector.extract_strided_slice %23 {offsets = [0, 110], sizes = [16, 384], strides = [1, 1]} : vector<16x640xf32> to vector<16x384xf32>
    %26 = vector.extract_strided_slice %23 {offsets = [0, 111], sizes = [16, 384], strides = [1, 1]} : vector<16x640xf32> to vector<16x384xf32>
    %27 = vector.extract_strided_slice %23 {offsets = [0, 127], sizes = [16, 384], strides = [1, 1]} : vector<16x640xf32> to vector<16x384xf32>
    %28 = vector.extract_strided_slice %23 {offsets = [0, 128], sizes = [16, 384], strides = [1, 1]} : vector<16x640xf32> to vector<16x384xf32>
    %29 = vector.extract_strided_slice %23 {offsets = [0, 129], sizes = [16, 384], strides = [1, 1]} : vector<16x640xf32> to vector<16x384xf32>
    %30 = vector.extract_strided_slice %23 {offsets = [0, 145], sizes = [16, 384], strides = [1, 1]} : vector<16x640xf32> to vector<16x384xf32>
    %31 = vector.extract_strided_slice %23 {offsets = [0, 146], sizes = [16, 384], strides = [1, 1]} : vector<16x640xf32> to vector<16x384xf32>
    %32 = vector.extract_strided_slice %23 {offsets = [0, 147], sizes = [16, 384], strides = [1, 1]} : vector<16x640xf32> to vector<16x384xf32>
    %33 = tpu.concatenate %24, %25, %26, %27, %28, %29, %30, %31, %32 in 0 : vector<16x384xf32>, vector<16x384xf32>, vector<16x384xf32>, vector<16x384xf32>, vector<16x384xf32>, vector<16x384xf32>, vector<16x384xf32>, vector<16x384xf32>, vector<16x384xf32> -> vector<144x384xf32>
    %c0_10 = arith.constant 0 : index
    %c0_11 = arith.constant 0 : index
    %34 = vector.load %arg7[%c0_10, %c0_11] : memref<16x144xf32, #tpu.memory_space<vmem>>, vector<16x144xf32>
    %cst_12 = arith.constant dense<0.000000e+00> : vector<16x384xf32>
    %35 = tpu.matmul %34, %33, %cst_12 {dimension_numbers = #tpu.dot_dimension_numbers<[1], [0], [0], [1], [0, 0, 1, 1], [], []>} : vector<16x144xf32>, vector<144x384xf32>, vector<16x384xf32> -> vector<16x384xf32>
    %c0_13 = arith.constant 0 : index
    %c0_14 = arith.constant 0 : index
    %36 = vector.load %arg8[%c0_13, %c0_14] : memref<16x1xf32, #tpu.memory_space<vmem>>, vector<16x1xf32>
    %37 = vector.broadcast %36 : vector<16x1xf32> to vector<16x384xf32>
    %38 = arith.addf %35, %37 : vector<16x384xf32>
    %39 = vector.broadcast %0 : vector<1x384xf32> to vector<16x384xf32>
    %40 = arith.mulf %38, %39 : vector<16x384xf32>
    %cst_15 = arith.constant 0.000000e+00 : f32
    %41 = vector.broadcast %cst_15 : f32 to vector<16x384xf32>
    %42 = arith.maximumf %40, %41 : vector<16x384xf32>
    %cst_16 = arith.constant 0.000000e+00 : f32
    %43 = vector.broadcast %cst_16 : f32 to vector<16x128xf32>
    %44 = tpu.concatenate %43, %42, %43 in 1 : vector<16x128xf32>, vector<16x384xf32>, vector<16x128xf32> -> vector<16x640xf32>
    %45 = vector.extract_strided_slice %44 {offsets = [0, 109], sizes = [16, 384], strides = [1, 1]} : vector<16x640xf32> to vector<16x384xf32>
    %46 = vector.extract_strided_slice %44 {offsets = [0, 110], sizes = [16, 384], strides = [1, 1]} : vector<16x640xf32> to vector<16x384xf32>
    %47 = vector.extract_strided_slice %44 {offsets = [0, 111], sizes = [16, 384], strides = [1, 1]} : vector<16x640xf32> to vector<16x384xf32>
    %48 = vector.extract_strided_slice %44 {offsets = [0, 127], sizes = [16, 384], strides = [1, 1]} : vector<16x640xf32> to vector<16x384xf32>
    %49 = vector.extract_strided_slice %44 {offsets = [0, 128], sizes = [16, 384], strides = [1, 1]} : vector<16x640xf32> to vector<16x384xf32>
    %50 = vector.extract_strided_slice %44 {offsets = [0, 129], sizes = [16, 384], strides = [1, 1]} : vector<16x640xf32> to vector<16x384xf32>
    %51 = vector.extract_strided_slice %44 {offsets = [0, 145], sizes = [16, 384], strides = [1, 1]} : vector<16x640xf32> to vector<16x384xf32>
    %52 = vector.extract_strided_slice %44 {offsets = [0, 146], sizes = [16, 384], strides = [1, 1]} : vector<16x640xf32> to vector<16x384xf32>
    %53 = vector.extract_strided_slice %44 {offsets = [0, 147], sizes = [16, 384], strides = [1, 1]} : vector<16x640xf32> to vector<16x384xf32>
    %54 = tpu.concatenate %45, %46, %47, %48, %49, %50, %51, %52, %53 in 0 : vector<16x384xf32>, vector<16x384xf32>, vector<16x384xf32>, vector<16x384xf32>, vector<16x384xf32>, vector<16x384xf32>, vector<16x384xf32>, vector<16x384xf32>, vector<16x384xf32> -> vector<144x384xf32>
    %c0_17 = arith.constant 0 : index
    %c0_18 = arith.constant 0 : index
    %55 = vector.load %arg9[%c0_17, %c0_18] : memref<16x144xf32, #tpu.memory_space<vmem>>, vector<16x144xf32>
    %cst_19 = arith.constant dense<0.000000e+00> : vector<16x384xf32>
    %56 = tpu.matmul %55, %54, %cst_19 {dimension_numbers = #tpu.dot_dimension_numbers<[1], [0], [0], [1], [0, 0, 1, 1], [], []>} : vector<16x144xf32>, vector<144x384xf32>, vector<16x384xf32> -> vector<16x384xf32>
    %c0_20 = arith.constant 0 : index
    %c0_21 = arith.constant 0 : index
    %57 = vector.load %arg10[%c0_20, %c0_21] : memref<16x1xf32, #tpu.memory_space<vmem>>, vector<16x1xf32>
    %58 = vector.broadcast %57 : vector<16x1xf32> to vector<16x384xf32>
    %59 = arith.addf %56, %58 : vector<16x384xf32>
    %60 = vector.broadcast %0 : vector<1x384xf32> to vector<16x384xf32>
    %61 = arith.mulf %59, %60 : vector<16x384xf32>
    %62 = arith.addf %19, %61 : vector<16x384xf32>
    %c0_22 = arith.constant 0 : index
    %c0_23 = arith.constant 0 : index
    %c0_24 = arith.constant 0 : index
    %63 = vector.load %arg2[%c0_22, %c0_23, %c0_24] : memref<1x16x64xf32, #tpu.memory_space<vmem>>, vector<1x16x64xf32>
    %64 = vector.shape_cast %63 : vector<1x16x64xf32> to vector<16x64xf32>
    %c0_25 = arith.constant 0 : index
    %c0_26 = arith.constant 0 : index
    %65 = vector.load %arg3[%c0_25, %c0_26] : memref<64x384xf32, #tpu.memory_space<vmem>>, vector<64x384xf32>
    %cst_27 = arith.constant dense<0.000000e+00> : vector<16x384xf32>
    %66 = tpu.matmul %64, %65, %cst_27 {dimension_numbers = #tpu.dot_dimension_numbers<[1], [0], [0], [1], [0, 0, 1, 1], [], []>} : vector<16x64xf32>, vector<64x384xf32>, vector<16x384xf32> -> vector<16x384xf32>
    %67 = arith.addf %62, %66 : vector<16x384xf32>
    %cst_28 = arith.constant 0.000000e+00 : f32
    %68 = vector.broadcast %cst_28 : f32 to vector<16x384xf32>
    %69 = arith.maximumf %67, %68 : vector<16x384xf32>
    %cst_29 = arith.constant 0.000000e+00 : f32
    %70 = vector.broadcast %cst_29 : f32 to vector<16x128xf32>
    %71 = tpu.concatenate %70, %69, %70 in 1 : vector<16x128xf32>, vector<16x384xf32>, vector<16x128xf32> -> vector<16x640xf32>
    %72 = vector.extract_strided_slice %71 {offsets = [0, 109], sizes = [16, 384], strides = [1, 1]} : vector<16x640xf32> to vector<16x384xf32>
    %73 = vector.extract_strided_slice %71 {offsets = [0, 110], sizes = [16, 384], strides = [1, 1]} : vector<16x640xf32> to vector<16x384xf32>
    %74 = vector.extract_strided_slice %71 {offsets = [0, 111], sizes = [16, 384], strides = [1, 1]} : vector<16x640xf32> to vector<16x384xf32>
    %75 = vector.extract_strided_slice %71 {offsets = [0, 127], sizes = [16, 384], strides = [1, 1]} : vector<16x640xf32> to vector<16x384xf32>
    %76 = vector.extract_strided_slice %71 {offsets = [0, 128], sizes = [16, 384], strides = [1, 1]} : vector<16x640xf32> to vector<16x384xf32>
    %77 = vector.extract_strided_slice %71 {offsets = [0, 129], sizes = [16, 384], strides = [1, 1]} : vector<16x640xf32> to vector<16x384xf32>
    %78 = vector.extract_strided_slice %71 {offsets = [0, 145], sizes = [16, 384], strides = [1, 1]} : vector<16x640xf32> to vector<16x384xf32>
    %79 = vector.extract_strided_slice %71 {offsets = [0, 146], sizes = [16, 384], strides = [1, 1]} : vector<16x640xf32> to vector<16x384xf32>
    %80 = vector.extract_strided_slice %71 {offsets = [0, 147], sizes = [16, 384], strides = [1, 1]} : vector<16x640xf32> to vector<16x384xf32>
    %81 = tpu.concatenate %72, %73, %74, %75, %76, %77, %78, %79, %80 in 0 : vector<16x384xf32>, vector<16x384xf32>, vector<16x384xf32>, vector<16x384xf32>, vector<16x384xf32>, vector<16x384xf32>, vector<16x384xf32>, vector<16x384xf32>, vector<16x384xf32> -> vector<144x384xf32>
    %c0_30 = arith.constant 0 : index
    %c0_31 = arith.constant 0 : index
    %82 = vector.load %arg11[%c0_30, %c0_31] : memref<16x144xf32, #tpu.memory_space<vmem>>, vector<16x144xf32>
    %cst_32 = arith.constant dense<0.000000e+00> : vector<16x384xf32>
    %83 = tpu.matmul %82, %81, %cst_32 {dimension_numbers = #tpu.dot_dimension_numbers<[1], [0], [0], [1], [0, 0, 1, 1], [], []>} : vector<16x144xf32>, vector<144x384xf32>, vector<16x384xf32> -> vector<16x384xf32>
    %c0_33 = arith.constant 0 : index
    %c0_34 = arith.constant 0 : index
    %84 = vector.load %arg12[%c0_33, %c0_34] : memref<16x1xf32, #tpu.memory_space<vmem>>, vector<16x1xf32>
    %85 = vector.broadcast %84 : vector<16x1xf32> to vector<16x384xf32>
    %86 = arith.addf %83, %85 : vector<16x384xf32>
    %87 = vector.broadcast %0 : vector<1x384xf32> to vector<16x384xf32>
    %88 = arith.mulf %86, %87 : vector<16x384xf32>
    %cst_35 = arith.constant 0.000000e+00 : f32
    %89 = vector.broadcast %cst_35 : f32 to vector<16x384xf32>
    %90 = arith.maximumf %88, %89 : vector<16x384xf32>
    %cst_36 = arith.constant 0.000000e+00 : f32
    %91 = vector.broadcast %cst_36 : f32 to vector<16x128xf32>
    %92 = tpu.concatenate %91, %90, %91 in 1 : vector<16x128xf32>, vector<16x384xf32>, vector<16x128xf32> -> vector<16x640xf32>
    %93 = vector.extract_strided_slice %92 {offsets = [0, 109], sizes = [16, 384], strides = [1, 1]} : vector<16x640xf32> to vector<16x384xf32>
    %94 = vector.extract_strided_slice %92 {offsets = [0, 110], sizes = [16, 384], strides = [1, 1]} : vector<16x640xf32> to vector<16x384xf32>
    %95 = vector.extract_strided_slice %92 {offsets = [0, 111], sizes = [16, 384], strides = [1, 1]} : vector<16x640xf32> to vector<16x384xf32>
    %96 = vector.extract_strided_slice %92 {offsets = [0, 127], sizes = [16, 384], strides = [1, 1]} : vector<16x640xf32> to vector<16x384xf32>
    %97 = vector.extract_strided_slice %92 {offsets = [0, 128], sizes = [16, 384], strides = [1, 1]} : vector<16x640xf32> to vector<16x384xf32>
    %98 = vector.extract_strided_slice %92 {offsets = [0, 129], sizes = [16, 384], strides = [1, 1]} : vector<16x640xf32> to vector<16x384xf32>
    %99 = vector.extract_strided_slice %92 {offsets = [0, 145], sizes = [16, 384], strides = [1, 1]} : vector<16x640xf32> to vector<16x384xf32>
    %100 = vector.extract_strided_slice %92 {offsets = [0, 146], sizes = [16, 384], strides = [1, 1]} : vector<16x640xf32> to vector<16x384xf32>
    %101 = vector.extract_strided_slice %92 {offsets = [0, 147], sizes = [16, 384], strides = [1, 1]} : vector<16x640xf32> to vector<16x384xf32>
    %102 = tpu.concatenate %93, %94, %95, %96, %97, %98, %99, %100, %101 in 0 : vector<16x384xf32>, vector<16x384xf32>, vector<16x384xf32>, vector<16x384xf32>, vector<16x384xf32>, vector<16x384xf32>, vector<16x384xf32>, vector<16x384xf32>, vector<16x384xf32> -> vector<144x384xf32>
    %c0_37 = arith.constant 0 : index
    %c0_38 = arith.constant 0 : index
    %103 = vector.load %arg13[%c0_37, %c0_38] : memref<16x144xf32, #tpu.memory_space<vmem>>, vector<16x144xf32>
    %cst_39 = arith.constant dense<0.000000e+00> : vector<16x384xf32>
    %104 = tpu.matmul %103, %102, %cst_39 {dimension_numbers = #tpu.dot_dimension_numbers<[1], [0], [0], [1], [0, 0, 1, 1], [], []>} : vector<16x144xf32>, vector<144x384xf32>, vector<16x384xf32> -> vector<16x384xf32>
    %c0_40 = arith.constant 0 : index
    %c0_41 = arith.constant 0 : index
    %105 = vector.load %arg14[%c0_40, %c0_41] : memref<16x1xf32, #tpu.memory_space<vmem>>, vector<16x1xf32>
    %106 = vector.broadcast %105 : vector<16x1xf32> to vector<16x384xf32>
    %107 = arith.addf %104, %106 : vector<16x384xf32>
    %108 = vector.broadcast %0 : vector<1x384xf32> to vector<16x384xf32>
    %109 = arith.mulf %107, %108 : vector<16x384xf32>
    %110 = arith.addf %67, %109 : vector<16x384xf32>
    %c0_42 = arith.constant 0 : index
    %c0_43 = arith.constant 0 : index
    %c0_44 = arith.constant 0 : index
    %111 = vector.load %arg15[%c0_42, %c0_43, %c0_44] : memref<1x16x384xf32, #tpu.memory_space<vmem>>, vector<1x16x384xf32>
    %112 = vector.shape_cast %111 : vector<1x16x384xf32> to vector<16x384xf32>
    %113 = vector.shape_cast %110 : vector<16x384xf32> to vector<1x16x384xf32>
    tpu.vector_store %arg15[%c0_42, %c0_43, %c0_44], %113 {strides = array<i32>} : memref<1x16x384xf32, #tpu.memory_space<vmem>>, vector<1x16x384xf32>,
    return
  }
  func.func @transform_0(%arg0: i32) -> (i32, i32, i32) {
    %c0_i32 = arith.constant 0 : i32
    %c0_i32_0 = arith.constant 0 : i32
    %c0_i32_1 = arith.constant 0 : i32
    return %arg0, %c0_i32, %c0_i32_0 : i32, i32, i32
  }
  func.func @transform_1(%arg0: i32) -> (i32, i32, i32) {
    %c0_i32 = arith.constant 0 : i32
    %c0_i32_0 = arith.constant 0 : i32
    %c0_i32_1 = arith.constant 0 : i32
    return %arg0, %c0_i32, %c0_i32_0 : i32, i32, i32
  }
  func.func @transform_2(%arg0: i32) -> (i32, i32) {
    %c0_i32 = arith.constant 0 : i32
    %c0_i32_0 = arith.constant 0 : i32
    %c0_i32_1 = arith.constant 0 : i32
    return %c0_i32, %c0_i32_0 : i32, i32
  }
  func.func @transform_3(%arg0: i32) -> (i32, i32) {
    %c0_i32 = arith.constant 0 : i32
    %c0_i32_0 = arith.constant 0 : i32
    %c0_i32_1 = arith.constant 0 : i32
    return %c0_i32, %c0_i32_0 : i32, i32
  }
  func.func @transform_4(%arg0: i32) -> (i32, i32) {
    %c0_i32 = arith.constant 0 : i32
    %c0_i32_0 = arith.constant 0 : i32
    %c0_i32_1 = arith.constant 0 : i32
    return %c0_i32, %c0_i32_0 : i32, i32
  }
  func.func @transform_5(%arg0: i32) -> (i32, i32) {
    %c0_i32 = arith.constant 0 : i32
    %c0_i32_0 = arith.constant 0 : i32
    %c0_i32_1 = arith.constant 0 : i32
    return %c0_i32, %c0_i32_0 : i32, i32
  }
  func.func @transform_6(%arg0: i32) -> (i32, i32) {
    %c0_i32 = arith.constant 0 : i32
    %c0_i32_0 = arith.constant 0 : i32
    %c0_i32_1 = arith.constant 0 : i32
    return %c0_i32, %c0_i32_0 : i32, i32
  }
  func.func @transform_7(%arg0: i32) -> (i32, i32) {
    %c0_i32 = arith.constant 0 : i32
    %c0_i32_0 = arith.constant 0 : i32
    %c0_i32_1 = arith.constant 0 : i32
    return %c0_i32, %c0_i32_0 : i32, i32
  }
  func.func @transform_8(%arg0: i32) -> (i32, i32) {
    %c0_i32 = arith.constant 0 : i32
    %c0_i32_0 = arith.constant 0 : i32
    %c0_i32_1 = arith.constant 0 : i32
    return %c0_i32, %c0_i32_0 : i32, i32
  }
  func.func @transform_9(%arg0: i32) -> (i32, i32) {
    %c0_i32 = arith.constant 0 : i32
    %c0_i32_0 = arith.constant 0 : i32
    %c0_i32_1 = arith.constant 0 : i32
    return %c0_i32, %c0_i32_0 : i32, i32
  }
  func.func @transform_10(%arg0: i32) -> (i32, i32) {
    %c0_i32 = arith.constant 0 : i32
    %c0_i32_0 = arith.constant 0 : i32
    %c0_i32_1 = arith.constant 0 : i32
    return %c0_i32, %c0_i32_0 : i32, i32
  }
  func.func @transform_11(%arg0: i32) -> (i32, i32) {
    %c0_i32 = arith.constant 0 : i32
    %c0_i32_0 = arith.constant 0 : i32
    %c0_i32_1 = arith.constant 0 : i32
    return %c0_i32, %c0_i32_0 : i32, i32
  }
  func.func @transform_12(%arg0: i32) -> (i32, i32) {
    %c0_i32 = arith.constant 0 : i32
    %c0_i32_0 = arith.constant 0 : i32
    %c0_i32_1 = arith.constant 0 : i32
    return %c0_i32, %c0_i32_0 : i32, i32
  }
  func.func @transform_13(%arg0: i32) -> (i32, i32) {
    %c0_i32 = arith.constant 0 : i32
    %c0_i32_0 = arith.constant 0 : i32
    %c0_i32_1 = arith.constant 0 : i32
    return %c0_i32, %c0_i32_0 : i32, i32
  }
  func.func @transform_14(%arg0: i32) -> (i32, i32, i32) {
    %c0_i32 = arith.constant 0 : i32
    %c0_i32_0 = arith.constant 0 : i32
    %c0_i32_1 = arith.constant 0 : i32
    return %arg0, %c0_i32, %c0_i32_0 : i32, i32, i32
  }
}

</mosaic_0001>

<bundles_post_ra>
// kernel: refine_forward.1
= control target key start
LH: loop header
LB: loop body
LE: loop exit
PB: predicated region body
PF: predicated region fallthrough
CT: control target
= control target key end

     0   :  { %s5393_s29 = smov 0   ;;  %s7569_s0 = inlined_call_operand.vmem [shape: f32[2,8,640], index: 0, kind: input, shape index: {}]   ;;  %s7570_s1 = inlined_call_operand.vmem [shape: f32[2,16,64], index: 1, kind: input, shape index: {}]   ;;  %s7571_s2 = inlined_call_operand.vmem [shape: f32[64,384], index: 2, kind: input, shape index: {}]   ;;  %s7572_s3 = inlined_call_operand.vmem [shape: f32[1,384], index: 3, kind: input, shape index: {}]   ;;  %s7573_s4 = inlined_call_operand.vmem [shape: f32[16,72], index: 4, kind: input, shape index: {}]   ;;  %s7574_s5 = inlined_call_operand.vmem [shape: f32[16,1], index: 5, kind: input, shape index: {}]   ;;  %s7575_s6 = inlined_call_operand.vmem [shape: f32[16,144], index: 6, kind: input, shape index: {}]   ;;  %s7576_s7 = inlined_call_operand.vmem [shape: f32[16,1], index: 7, kind: input, shape index: {}]   ;;  %s7577_s8 = inlined_call_operand.vmem [shape: f32[16,144], index: 8, kind: input, shape index: {}]   ;;  %s7578_s9 = inlined_call_operand.vmem [shape: f32[16,1], index: 9, kind: input, shape index: {}]   ;;  %s7579_s10 = inlined_call_operand.vmem [shape: f32[16,144], index: 10, kind: input, shape index: {}]   ;;  %s7580_s11 = inlined_call_operand.vmem [shape: f32[16,1], index: 11, kind: input, shape index: {}]   ;;  %s7581_s12 = inlined_call_operand.vmem [shape: f32[16,144], index: 12, kind: input, shape index: {}]   ;;  %s7582_s13 = inlined_call_operand.vmem [shape: f32[16,1], index: 13, kind: input, shape index: {}]   ;;  %s7583_s14 = inlined_call_operand.vmem [shape: f32[2,16,384], index: 14, kind: output, shape index: {}]  }
   0x1 LB: > { %s3536_s30 = sadd.s32 4294967295, %s5304_s29   ;;  %p3540_p0 = scmp.ge.s32.totalorder %s5304_s29, 1  ;;  %s5304_s29 = sphi %s5393_s29, %s24_s29  }
   0x2   : > { %p422_p1 = scmp.lt.s32.totalorder %s5304_s29, 3 }
   0x4   : > { %p423_p2 = pnand %p3540_p0, %p422_p1 }
   0x5   : > { %p473_p3 = scmp.lt.s32.totalorder (!%p423_p2), %s3536_s30, 1  ;;  %s5306_s19 = smov (!%p423_p2), 126   ;;  %vm506_vm0 = vcmask (!%p423_p2), 1039360   ;;  %vm530_vm1 = vcmask (!%p423_p2), 900096   ;;  %vm552_vm2 = vcmask (!%p423_p2), 883712   ;;  %vm576_vm3 = vcmask (!%p423_p2), 744448  }
   0x6   : > { %426 = sbr.rel (%p423_p2) target bundleno = 2730 (0xaaa), region = 76  ;;  %s7643_s20 = smov (!%p423_p2), 127   ;;  %vm564_vm4 = vcmask (!%p423_p2), 752640   ;;  %vm518_vm5 = vcmask (!%p423_p2), 1031168   ;;  %vm588_vm6 = vcmask (!%p423_p2), 736256   ;;  %vm540_vm7 = vcmask (!%p423_p2), 891904  }
   0x7   : > { %s7632_s21 = smov (!%p423_p2), 110   ;;  %s7634_s22 = smov (!%p423_p2), 109   ;;  %vm733_vm8 = vcmask (!%p423_p2), 588800   ;;  %vm678_vm9 = vcmask (!%p423_p2), 154624   ;;  %vm1349_vm10 = vcmask (!%p423_p2), 130048   ;;  %vm2128_vm11 = vcmask (!%p423_p2), 523264  }
   0x8   : > { %s7628_s23 = smov (!%p423_p2), 108   ;;  %s7630_s24 = smov (!%p423_p2), 92  }
   0x9   : > { %s7626_s25 = smov (!%p423_p2), 91   ;;  %s7624_s26 = smov (!%p423_p2), 90  }
   0xa   : > { %s7620_s27 = smov (!%p423_p2), 19   ;;  %s7683_s28 = smov (!%p423_p2), 110  }
   0xd   : > { %s7697_s30 = smov (!%p473_p3, %s3536_s30), 1 }
   0xe   : > { %s3949_s15 = smul.u32 40, %s7697_s30 }
   0xf   : > { %s3950_s16 = smul.u32 48, %s7697_s30 }
  0x10   : > { %s477_s18 = scalar_lea.vmem %s7569_s0, %s3949_s15  ;;  %s3571_s15 = sshll.u32 %s7697_s30, 4 }
  0x11   : > { %v490_v0 = vld [vmem:[%s477_s18 + $0x8] sm:$0xff]  ;;  %v491_v1 = vld [vmem:[%s477_s18 + $0x10] sm:$0xff]  ;;  %v5407_v2 = vld [vmem:[%s477_s18] sm:$0xff] }
  0x12   : > { %v3981_v3 = vpack.i.bf16 %v491_v1, %v490_v0  ;;  %v492_v4 = vld [vmem:[%s477_s18 + $0x18] sm:$0xff]  ;;  %v493_v6 = vld [vmem:[%s477_s18 + $0x20] sm:$0xff] }
  0x13   : > { %v3986_v5 = vpack.i.bf16 %v5407_v2, %v492_v4  ;;  %v4011_v7 = vpack.i.bf16 %v493_v6, %v492_v4 }
  0x14   : > { %3982 = vrot.lane.b32.xlu1 %v3981_v3, %s5306_s19  ;;  %3972 = vrot.lane.b32.xlu0 %v3981_v3, %s7643_s20 }
  0x18   : > { %3987 = vrot.lane.b32.xlu1 %v3986_v5, %s5306_s19  ;;  %3977 = vrot.lane.b32.xlu0 %v3986_v5, %s7643_s20 }
  0x1c   : > { %3997 = vrot.lane.b32.xlu1 %v3986_v5, %s7632_s21  ;;  %3992 = vrot.lane.b32.xlu0 %v3981_v3, %s7632_s21 }
  0x20   : > { %538 = vrot.lane.b32.xlu1 %v492_v4, %s7634_s22  ;;  %4002 = vrot.lane.b32.xlu0 %v3981_v3, %s7634_s22 }
  0x24   : > { %4012 = vrot.lane.b32.xlu1 %v4011_v7, %s7628_s23  ;;  %4007 = vrot.lane.b32.xlu0 %v3981_v3, %s7628_s23 }
  0x28   : > { %4022 = vrot.lane.b32.xlu1 %v4011_v7, %s7630_s24  ;;  %4017 = vrot.lane.b32.xlu0 %v3981_v3, %s7630_s24 }
  0x2c   : > { %4032 = vrot.lane.b32.xlu1 %v4011_v7, %s7626_s25  ;;  %4027 = vrot.lane.b32.xlu0 %v3981_v3, %s7626_s25 }
  0x30   : > { %580 = vrot.lane.b32.xlu0 %v490_v0, %s7624_s26  ;;  %582 = vrot.lane.b32.xlu1 %v491_v1, %s7624_s26 }
  0x34   : > { %584 = vrot.lane.b32.xlu0 %v492_v4, %s7624_s26  ;;  %586 = vrot.lane.b32.xlu1 %v493_v6, %s7624_s26 }
  0x38   : > { %4037 = vrot.lane.b32.xlu0 %v3981_v3, %s7620_s27 }
  0x86   : > { %v5429_v8 = vpop.permute.xlu1 %3982  ;;  %v3973_v9 = vpop.permute.xlu0 %3972 }
  0x87   : > { %v3975_v18 = vunpack.i.h.bf16 %v3973_v9  ;;  %v3974_v19 = vunpack.i.l.bf16 %v3973_v9  ;;  %v3985_v55 = vunpack.i.h.bf16 %v5429_v8  ;;  %v3984_v62 = vunpack.i.l.bf16 %v5429_v8 }
  0x89   : > { %v508_v26 = vsel %vm506_vm0, %v3974_v19, %v3975_v18  ;;  %v520_v6 = vsel %vm518_vm5, %v3984_v62, %v3985_v55 }
  0x8a   : > { %v5431_v10 = vpop.permute.xlu1 %3987  ;;  %v3978_v11 = vpop.permute.xlu0 %3977 }
  0x8b   : > { %v3979_v12 = vunpack.i.l.bf16 %v3978_v11  ;;  %v3989_v13 = vunpack.i.l.bf16 %v5431_v10  ;;  %v3980_v45 = vunpack.i.h.bf16 %v3978_v11 }
  0x8d   : > { %v4041_v14 = vpack.i.bf16 %v3979_v12, %v492_v4  ;;  %v509_v25 = vsel %vm506_vm0, %v3975_v18, %v3979_v12  ;;  %v507_v58 = vsel %vm506_vm0, %v3980_v45, %v3974_v19  ;;  %v3990_v4 = vunpack.i.h.bf16 %v5431_v10 }
  0x8e   : > { %v5434_v15 = vpop.permute.xlu1 %3997  ;;  %v5436_v16 = vpop.permute.xlu0 %3992  ;;  %v4061_v27 = vpack.i.bf16 %v509_v25, %v508_v26  ;;  %v4066_v1 = vpack.i.bf16 %v507_v58, %v5407_v2  ;;  %v521_v7 = vsel %vm518_vm5, %v3985_v55, %v3989_v13 }
  0x8f   : > { %v3999_v17 = vunpack.i.l.bf16 %v5434_v15  ;;  %4042 = vrot.lane.b32.xlu1 %v4041_v14, %s7620_s27  ;;  %v3995_v21 = vunpack.i.h.bf16 %v5436_v16  ;;  %v3994_v22 = vunpack.i.l.bf16 %v5436_v16  ;;  %v4000_v5 = vunpack.i.h.bf16 %v5434_v15 }
  0x90   : > { %v4071_v11 = vpack.i.bf16 %v521_v7, %v520_v6  ;;  %v519_v14 = vsel %vm518_vm5, %v3990_v4, %v3984_v62 }
  0x91   : > { %v4046_v20 = vpack.i.bf16 %v3999_v17, %v3989_v13  ;;  %v532_v31 = vsel %vm530_vm1, %v3994_v22, %v3995_v21  ;;  %v533_v32 = vsel %vm530_vm1, %v3995_v21, %v3999_v17  ;;  %v531_v15 = vsel %vm530_vm1, %v4000_v5, %v3994_v22 }
  0x92   : > { %v5444_v23 = vpop.permute.xlu1 %538  ;;  %v5446_v24 = vpop.permute.xlu0 %4002  ;;  %v4076_v38 = vpack.i.bf16 %v533_v32, %v532_v31  ;;  %v4081_v13 = vpack.i.bf16 %v531_v15, %v519_v14 }
  0x93   : > { %4047 = vrot.lane.b32.xlu1 %v4046_v20, %s7620_s27  ;;  %v4004_v28 = vunpack.i.l.bf16 %v5446_v24  ;;  %v4005_v12 = vunpack.i.h.bf16 %v5446_v24  ;;  %v5515_v24 = vld [vmem:[%s7573_s4] sm:$0xff] }
  0x94   : > { %3611 = vmatprep.mubr.msk.f32.mxu1 %vm733_vm8, %v5515_v24 }
  0x95   : > { %v541_v19 = vsel %vm540_vm7, %v4004_v28, %v4005_v12  ;;  %v542_v16 = vsel %vm540_vm7, %v4005_v12, %v5444_v23 }
  0x96   : > { %v4013_v29 = vpop.permute.xlu1 %4012  ;;  %v4008_v30 = vpop.permute.xlu0 %4007  ;;  %v4086_v21 = vpack.i.bf16 %v542_v16, %v541_v19 }
  0x97   : > { %v4015_v33 = vunpack.i.h.bf16 %v4013_v29  ;;  %v4014_v34 = vunpack.i.l.bf16 %v4013_v29  ;;  %v4010_v35 = vunpack.i.h.bf16 %v4008_v30  ;;  %v4009_v36 = vunpack.i.l.bf16 %v4008_v30  ;;  %4062 = vrot.lane.b32.xlu1 %v4061_v27, %s7620_s27  ;;  %v594_v30 = vld [vmem:[%s7574_s5] sm:$0xff] }
  0x98   : > { %v5316_v29 = vmov 0  }
  0x99   : > { %v4051_v37 = vpack.i.bf16 %v4009_v36, %v4004_v28  ;;  %v553_v41 = vsel %vm552_vm2, %v4009_v36, %v4010_v35  ;;  %v554_v42 = vsel %vm552_vm2, %v4010_v35, %v4014_v34  ;;  %v555_v43 = vsel %vm552_vm2, %v4014_v34, %v4015_v33  ;;  %v595_v28 = vld [vmem:[%s7574_s5 + $0x8] sm:$0xff]  ;;  %4116 = vset.pattern.permute.xlu0 %v5316_v29 }
  0x9a   : > { %v5459_v39 = vpop.permute.xlu1 %4022  ;;  %v5461_v40 = vpop.permute.xlu0 %4017  ;;  %v4091_v44 = vpack.i.bf16 %v554_v42, %v553_v41  ;;  %v4096_v48 = vpack.i.bf16 %v555_v43, %v5444_v23  ;;  %v7584_v23 = vmov 0.0   ;;  %4117 = vset.pattern.permute.xlu1 %v5316_v29 }
  0x9b   : > { %4052 = vrot.lane.b32.xlu0 %v4051_v37, %s7620_s27  ;;  %4077 = vrot.lane.b32.xlu1 %v4076_v38, %s7620_s27  ;;  %v4019_v49 = vunpack.i.l.bf16 %v5461_v40  ;;  %v4025_v53 = vunpack.i.h.bf16 %v5459_v39  ;;  %v4024_v57 = vunpack.i.l.bf16 %v5459_v39  ;;  %v4020_v18 = vunpack.i.h.bf16 %v5461_v40 }
  0x9c   : > { %804 = vmatprep.mubr.f32.mxu0 %v7584_v23 }
  0x9d   : > { %v567_v63 = vsel %vm564_vm4, %v4024_v57, %v4025_v53  ;;  %v565_v22 = vsel %vm564_vm4, %v4019_v49, %v4020_v18  ;;  %v566_v25 = vsel %vm564_vm4, %v4020_v18, %v4024_v57 }
  0x9e   : > { %v4033_v46 = vpop.permute.xlu1 %4032  ;;  %v4028_v47 = vpop.permute.xlu0 %4027  ;;  %v4101_v26 = vpack.i.bf16 %v566_v25, %v565_v22 }
  0x9f   : > { %v4034_v50 = vunpack.i.l.bf16 %v4033_v46  ;;  %v4030_v51 = vunpack.i.h.bf16 %v4028_v47  ;;  %v4029_v52 = vunpack.i.l.bf16 %v4028_v47  ;;  %4092 = vrot.lane.b32.xlu1 %v4091_v44, %s7620_s27  ;;  %v4035_v54 = vunpack.i.h.bf16 %v4033_v46 }
  0xa1   : > { %v4056_v56 = vpack.i.bf16 %v4029_v52, %v4019_v49  ;;  %v577_v59 = vsel %vm576_vm3, %v4029_v52, %v4030_v51  ;;  %v578_v60 = vsel %vm576_vm3, %v4030_v51, %v4034_v50  ;;  %v579_v0 = vsel %vm576_vm3, %v4034_v50, %v4035_v54 }
  0xa2   : > { %v581_v61 = vpop.permute.xlu0 %580  ;;  %v4106_v3 = vpack.i.bf16 %v578_v60, %v577_v59  ;;  %v4111_v8 = vpack.i.bf16 %v579_v0, %v567_v63  ;;  %v583_v9 = vpop.permute.xlu1 %582 }
  0xa3   : > { %4057 = vrot.lane.b32.xlu0 %v4056_v56, %s7620_s27  ;;  %4097 = vrot.lane.b32.xlu1 %v4096_v48, %s7620_s27  ;;  %v589_v27 = vsel %vm588_vm6, %v581_v61, %v583_v9 }
  0xa6   : > { %v585_v2 = vpop.permute.xlu0 %584  ;;  %v587_v17 = vpop.permute.xlu1 %586 }
  0xa7   : > { %4067 = vrot.lane.b32.xlu0 %v4066_v1, %s7620_s27  ;;  %4107 = vrot.lane.b32.xlu1 %v4106_v3, %s7620_s27  ;;  %v590_v10 = vsel %vm588_vm6, %v583_v9, %v585_v2  ;;  %v591_v20 = vsel %vm588_vm6, %v585_v2, %v587_v17 }
  0xaa   : > { %v4038_v32 = vpop.permute.xlu0 %4037 }
  0xab   : > { %4072 = vrot.lane.b32.xlu0 %v4071_v11, %s7620_s27  ;;  %4112 = vrot.lane.b32.xlu1 %v4111_v8, %s7620_s27  ;;  %v4039_v34 = vunpack.i.l.bf16 %v4038_v32  ;;  %v4040_v35 = vunpack.i.h.bf16 %v4038_v32 }
  0xad   : > { %v680_v41 = vsel %vm678_vm9, %v4039_v34, %v4040_v35 }
  0xaf   : > { %4082 = vrot.lane.b32.xlu0 %v4081_v13, %s7620_s27  ;;  %674 = vrot.lane.b32.xlu1 %v590_v10, %s7620_s27 }
  0xb3   : > { %4087 = vrot.lane.b32.xlu0 %v4086_v21, %s7620_s27  ;;  %676 = vrot.lane.b32.xlu1 %v591_v20, %s7620_s27 }
  0xb7   : > { %4102 = vrot.lane.b32.xlu0 %v4101_v26, %s7620_s27  ;;  %603 = vperm.xlu1 %4117, %v595_v28  }
  0xbb   : > { %672 = vrot.lane.b32.xlu0 %v589_v27, %s7620_s27  ;;  %1009 = vrot.lane.b32.xlu1 %v7584_v23, %s7628_s23 }
  0xbf   : > { %670 = vrot.lane.b32.xlu0 %v581_v61, %s7620_s27  ;;  %1029 = vrot.lane.b32.xlu1 %v7584_v23, %s7630_s24 }
  0xc3   : > { %598 = vperm.xlu0 %4116, %v594_v30   ;;  %1049 = vrot.lane.b32.xlu1 %v7584_v23, %s7626_s25 }
  0xc7   : > { %927 = vrot.lane.b32.xlu0 %v7584_v23, %s7643_s20 }
  0xcb   : > { %947 = vrot.lane.b32.xlu0 %v7584_v23, %s5306_s19 }
  0xcf   : > { %967 = vrot.lane.b32.xlu0 %v7584_v23, %s7632_s21 }
 0x101   : > { %v4043_v31 = vpop.permute.xlu1 %4042 }
 0x102   : > { %v4044_v36 = vunpack.i.l.bf16 %v4043_v31  ;;  %v4045_v38 = vunpack.i.h.bf16 %v4043_v31 }
 0x104   : > { %v681_v43 = vsel %vm678_vm9, %v4040_v35, %v4044_v36 }
 0x105   : > { %v4048_v33 = vpop.permute.xlu1 %4047 }
 0x106   : > { %v4050_v55 = vunpack.i.h.bf16 %v4048_v33  ;;  %v4049_v63 = vunpack.i.l.bf16 %v4048_v33 }
 0x109   : > { %v4063_v37 = vpop.permute.xlu1 %4062 }
 0x10a   : > { %v4065_v39 = vunpack.i.h.bf16 %v4063_v37  ;;  %v4064_v40 = vunpack.i.l.bf16 %v4063_v37 }
 0x10c   : > { %v683_v42 = vsel %vm678_vm9, %v4064_v40, %v4065_v39  ;;  %v684_v44 = vsel %vm678_vm9, %v4065_v39, %v4045_v38 }
 0x10d   : > { %v4078_v45 = vpop.permute.xlu1 %4077  ;;  %v3633_v46 = vpack.c.bf16 %v683_v42, %v680_v41  ;;  %v3649_v47 = vpack.c.bf16 %v684_v44, %v681_v43  ;;  %v4053_v48 = vpop.permute.xlu0 %4052 }
 0x10e   : > { %v4080_v57 = vunpack.i.h.bf16 %v4078_v45  ;;  %v4079_v58 = vunpack.i.l.bf16 %v4078_v45  ;;  %v4055_v18 = vunpack.i.h.bf16 %v4053_v48  ;;  %v4054_v19 = vunpack.i.l.bf16 %v4053_v48 }
 0x10f   : > { %3634 = vmatprep.subr.bf16.mxu0 %v3633_v46  ;;  %3650 = vmatprep.subr.bf16.mxu1 %v3649_v47 }
 0x110   : > { %3652 = vmatpush3.bf16.msra.mxu1 %v3649_v47  ;;  %v689_v4 = vsel %vm678_vm9, %v4079_v58, %v4080_v57  ;;  %v690_v6 = vsel %vm678_vm9, %v4080_v57, %v4050_v55 }
 0x111   : > { %v4093_v49 = vpop.permute.xlu1 %4092 }
 0x112   : > { %v4095_v2 = vunpack.i.h.bf16 %v4093_v49  ;;  %v4094_v12 = vunpack.i.l.bf16 %v4093_v49 }
 0x114   : > { %v695_v27 = vsel %vm678_vm9, %v4094_v12, %v4095_v2  ;;  %v694_v31 = vsel %vm678_vm9, %v4055_v18, %v4094_v12 }
 0x115   : > { %v5546_v50 = vpop.permute.xlu0 %4057  ;;  %v4098_v51 = vpop.permute.xlu1 %4097 }
 0x116   : > { %v4100_v10 = vunpack.i.h.bf16 %v4098_v51  ;;  %v4099_v22 = vunpack.i.l.bf16 %v4098_v51  ;;  %v4060_v36 = vunpack.i.h.bf16 %v5546_v50  ;;  %v4059_v41 = vunpack.i.l.bf16 %v5546_v50 }
 0x119   : > { %v4068_v52 = vpop.permute.xlu0 %4067  ;;  %v5548_v56 = vpop.permute.xlu1 %4107 }
 0x11a   : > { %v4070_v53 = vunpack.i.h.bf16 %v4068_v52  ;;  %v4069_v54 = vunpack.i.l.bf16 %v4068_v52  ;;  %v4110_v28 = vunpack.i.h.bf16 %v5548_v56  ;;  %v4109_v29 = vunpack.i.l.bf16 %v5548_v56 }
 0x11c   : > { %v679_v59 = vsel %vm678_vm9, %v4069_v54, %v4039_v34  ;;  %v682_v60 = vsel %vm678_vm9, %v4070_v53, %v4064_v40  ;;  %v696_v34 = vsel %vm678_vm9, %v4095_v2, %v4100_v10  ;;  %v701_v46 = vsel %vm678_vm9, %v4109_v29, %v4110_v28 }
 0x11d   : > { %v4073_v61 = vpop.permute.xlu0 %4072  ;;  %v3635_v62 = vpack.c.bf16 %v682_v60, %v679_v59  ;;  %v4113_v7 = vpop.permute.xlu1 %4112  ;;  %v700_v48 = vsel %vm678_vm9, %v4060_v36, %v4109_v29  ;;  %v593_v60 = vld [vmem:[%s7573_s4 + $0x8] sm:$0xff] }
 0x11e   : > { %v4075_v0 = vunpack.i.h.bf16 %v4073_v61  ;;  %v4074_v1 = vunpack.i.l.bf16 %v4073_v61  ;;  %v4115_v30 = vunpack.i.h.bf16 %v4113_v7  ;;  %v4114_v42 = vunpack.i.l.bf16 %v4113_v7 }
 0x11f   : > { %3636 = vmatpush1.bf16.msra.mxu0 %v3635_v62  ;;  %v893_v61 = vlaneseq }
 0x120   : > { %v686_v3 = vsel %vm678_vm9, %v4074_v1, %v4075_v0  ;;  %v687_v5 = vsel %vm678_vm9, %v4075_v0, %v4049_v63  ;;  %v702_v47 = vsel %vm678_vm9, %v4110_v28, %v4115_v30  ;;  %v488_v0 = vld [vmem:[%s7572_s3] sm:$0x7] }
 0x121   : > { %v4083_v8 = vpop.permute.xlu0 %4082  ;;  %v3637_v9 = vpack.c.bf16 %v689_v4, %v686_v3  ;;  %v3653_v11 = vpack.c.bf16 %v690_v6, %v687_v5  ;;  %v675_v21 = vpop.permute.xlu1 %674  ;;  %v894_v62 = vshrl.u32 %v893_v61, 7 }
 0x122   : > { %v4085_v14 = vunpack.i.h.bf16 %v4083_v8  ;;  %v4084_v15 = vunpack.i.l.bf16 %v4083_v8 }
 0x123   : > { %3638 = vmatprep.subr.bf16.mxu0 %v3637_v9  ;;  %3654 = vmatprep.subr.bf16.mxu1 %v3653_v11  ;;  %v895_v63 = vsub.s32 0, %v894_v62 }
 0x124   : > { %3656 = vmatpush3.bf16.msra.mxu1 %v3653_v11  ;;  %v685_v13 = vsel %vm678_vm9, %v4084_v15, %v4074_v1  ;;  %v688_v17 = vsel %vm678_vm9, %v4085_v14, %v4079_v58  ;;  %v899_v1 = vsub.s32 1, %v894_v62 }
 0x125   : > { %v4088_v16 = vpop.permute.xlu0 %4087  ;;  %v3639_v20 = vpack.c.bf16 %v688_v17, %v685_v13  ;;  %v677_v45 = vpop.permute.xlu1 %676  ;;  %v5588_v4 = vrot.slane %v488_v0, %v895_v63 }
 0x126   : > { %v4090_v25 = vunpack.i.h.bf16 %v4088_v16  ;;  %v4089_v26 = vunpack.i.l.bf16 %v4088_v16  ;;  %v705_v56 = vsel %vm678_vm9, %v675_v21, %v677_v45 }
 0x127   : > { %3640 = vmatpush1.bf16.msra.mxu0 %v3639_v20 }
 0x128   : > { %v692_v32 = vsel %vm678_vm9, %v4089_v26, %v4090_v25  ;;  %v693_v33 = vsel %vm678_vm9, %v4090_v25, %v4099_v22  ;;  %v691_v35 = vsel %vm678_vm9, %v4054_v19, %v4089_v26  ;;  %v903_v19 = vsub.s32 2, %v894_v62 }
 0x129   : > { %v4103_v37 = vpop.permute.xlu0 %4102  ;;  %v3641_v38 = vpack.c.bf16 %v695_v27, %v692_v32  ;;  %v3657_v39 = vpack.c.bf16 %v696_v34, %v693_v33  ;;  %v3643_v40 = vpack.c.bf16 %v694_v31, %v691_v35 }
 0x12a   : > { %v4105_v43 = vunpack.i.h.bf16 %v4103_v37  ;;  %v4104_v44 = vunpack.i.l.bf16 %v4103_v37 }
 0x12b   : > { %3642 = vmatprep.subr.bf16.mxu0 %v3641_v38  ;;  %3658 = vmatprep.subr.bf16.mxu1 %v3657_v39 }
 0x12c   : > { %3644 = vmatpush1.bf16.msra.mxu0 %v3643_v40  ;;  %3660 = vmatpush3.bf16.msra.mxu1 %v3657_v39  ;;  %v698_v49 = vsel %vm678_vm9, %v4104_v44, %v4105_v43  ;;  %v699_v51 = vsel %vm678_vm9, %v4105_v43, %v4114_v42  ;;  %v697_v50 = vsel %vm678_vm9, %v4059_v41, %v4104_v44  ;;  %v7586_v44 = vmov 0.0|0.0  }
 0x12d   : > { %v673_v52 = vpop.permute.xlu0 %672  ;;  %v3645_v53 = vpack.c.bf16 %v701_v46, %v698_v49  ;;  %v3661_v54 = vpack.c.bf16 %v702_v47, %v699_v51  ;;  %v3647_v55 = vpack.c.bf16 %v700_v48, %v697_v50 }
 0x12e   : > { %v704_v57 = vsel %vm678_vm9, %v673_v52, %v675_v21  ;;  %v5602_v21 = vrot.slane %v488_v0, %v903_v19 }
 0x12f   : > { %3646 = vmatprep.subr.bf16.mxu0 %v3645_v53  ;;  %3662 = vmatprep.subr.bf16.mxu1 %v3661_v54 }
 0x130   : > { %3648 = vmatpush1.bf16.msra.mxu0 %v3647_v55  ;;  %3664 = vmatpush3.bf16.msra.mxu1 %v3661_v54 }
 0x131   : > { %v671_v58 = vpop.permute.xlu0 %670  ;;  %756 = vmatprep.subr.mxu0 %v704_v57  ;;  %3609 = vmatprep.subr.mxu1 %v705_v56 }
 0x132   : > { %v703_v59 = vsel %vm678_vm9, %v671_v58, %v673_v52 }
 0x134   : > { %757 = vmatpush1.msra.mxu0 %v703_v59  ;;  %3610 = vmatpush3.msra.mxu1 %v705_v56 }
 0x135   : > { %3545 = vmatmul.mubr.msk.f32.vlgmr.msra.gmra.mrb[0].mxu0 %vm733_vm8, %v5515_v24  ;;  %3612 = vmatmul.mubr.msk.f32.vlgmr.msra.gmra.mrb[0].mxu1 %vm733_vm8, %v593_v60  ;;  %v5590_v24 = vrot.slane %v488_v0, %v899_v1 }
 0x136   : > { %810 = vmatprep.mubr.f32.mxu0 %v7584_v23  ;;  %v604_v18 = vpop.permute.xlu1 %603  ;;  %3701 = vmatprep.subr.bf16.mxu1 %v7586_v44 }
 0x139   : > { %3546 = vmatmul.mubr.msk.f32.gmra.mrb[2].mxu0 %vm733_vm8, %v593_v60 }
 0x13a   : > { %v5650_v39 = vpop.permute.xlu1 %1009 }
 0x13e   : > { %v5654_v41 = vpop.permute.xlu1 %1029 }
 0x142   : > { %v599_v3 = vpop.permute.xlu0 %598  ;;  %v5658_v43 = vpop.permute.xlu1 %1049 }
 0x146   : > { %v5648_v38 = vpop.permute.xlu0 %927 }
 0x14a   : > { %v5652_v40 = vpop.permute.xlu0 %947 }
 0x14e   : > { %v5656_v42 = vpop.permute.xlu0 %967 }
 0x208   : > { %v806_v5 = vpop.f32.mrb[0].mxu0  ;;  %v3613_v6 = vpop.f32.mrb[0].mxu1 }
 0x209   : > { %v807_v7 = vadd.f32 %v806_v5, %v599_v3  ;;  %v808_v8 = vpop.f32.mrb[1].mxu0  ;;  %v883_v9 = vpop.f32.mrb[1].mxu1  ;;  %v889_v28 = vadd.f32 %v3613_v6, %v604_v18 }
 0x20a   : > { %v809_v11 = vadd.f32 %v808_v8, %v599_v3  ;;  %v884_v20 = vadd.f32 %v883_v9, %v599_v3 }
 0x20b   : > { %v5593_v2 = vmul.f32 %v5588_v4, %v807_v7  ;;  %v5621_v31 = vmul.f32 %v5602_v21, %v889_v28 }
 0x20c   : > { %v5596_v12 = vmul.f32 %v5590_v24, %v809_v11  ;;  %v812_v14 = vpop.f32.mrb[2].mxu0  ;;  %v5610_v25 = vmul.f32 %v5602_v21, %v884_v20 }
 0x20d   : > { %v914_v15 = vmax.f32 %v5593_v2, 0.0  ;;  %v814_v10 = vpop.f32.mrb[3].mxu0  ;;  %v813_v16 = vadd.f32 %v812_v14, %v604_v18  ;;  %v919_v33 = vmax.f32 %v5621_v31, 0.0 }
 0x20e   : > { %v915_v13 = vmax.f32 %v5596_v12, 0.0  ;;  %v916_v27 = vmax.f32 %v5610_v25, 0.0  ;;  %v815_v29 = vadd.f32 %v814_v10, %v604_v18 }
 0x20f   : > { %v5607_v22 = vmul.f32 %v5588_v4, %v813_v16 }
 0x210   : > { %v4138_v17 = vpack.i.bf16 %v915_v13, %v914_v15  ;;  %v5624_v32 = vmul.f32 %v5590_v24, %v815_v29  ;;  %v4223_v36 = vpack.i.bf16 %v916_v27, %v7584_v23 }
 0x211   : > { %v917_v26 = vmax.f32 %v5607_v22, 0.0 }
 0x212   : > { %4139 = vrot.lane.b32.xlu0 %v4138_v17, %s7628_s23  ;;  %4119 = vrot.lane.b32.xlu1 %v4138_v17, %s7643_s20  ;;  %v918_v34 = vmax.f32 %v5624_v32, 0.0 }
 0x213   : > { %v4178_v30 = vpack.i.bf16 %v917_v26, %v916_v27 }
 0x214   : > { %v4193_v35 = vpack.i.bf16 %v919_v33, %v918_v34  ;;  %v4248_v37 = vpack.i.bf16 %v918_v34, %v917_v26 }
 0x216   : > { %4144 = vrot.lane.b32.xlu0 %v4138_v17, %s7630_s24  ;;  %4124 = vrot.lane.b32.xlu1 %v4138_v17, %s5306_s19 }
 0x21a   : > { %4149 = vrot.lane.b32.xlu0 %v4138_v17, %s7626_s25  ;;  %4129 = vrot.lane.b32.xlu1 %v4138_v17, %s7632_s21 }
 0x21e   : > { %4154 = vrot.lane.b32.xlu0 %v4138_v17, %s7624_s26  ;;  %4134 = vrot.lane.b32.xlu1 %v4138_v17, %s7634_s22 }
 0x222   : > { %4179 = vrot.lane.b32.xlu1 %v4178_v30, %s7628_s23  ;;  %4159 = vrot.lane.b32.xlu0 %v4178_v30, %s7643_s20 }
 0x226   : > { %4184 = vrot.lane.b32.xlu1 %v4178_v30, %s7630_s24  ;;  %4164 = vrot.lane.b32.xlu0 %v4178_v30, %s5306_s19 }
 0x22a   : > { %4189 = vrot.lane.b32.xlu1 %v4178_v30, %s7626_s25  ;;  %4169 = vrot.lane.b32.xlu0 %v4178_v30, %s7632_s21 }
 0x22e   : > { %4194 = vrot.lane.b32.xlu1 %v4193_v35, %s7643_s20  ;;  %4174 = vrot.lane.b32.xlu0 %v4178_v30, %s7634_s22 }
 0x232   : > { %4199 = vrot.lane.b32.xlu1 %v4193_v35, %s5306_s19  ;;  %4219 = vrot.lane.b32.xlu0 %v4138_v17, %s7620_s27 }
 0x236   : > { %4204 = vrot.lane.b32.xlu1 %v4193_v35, %s7632_s21  ;;  %4224 = vrot.lane.b32.xlu0 %v4223_v36, %s7620_s27 }
 0x23a   : > { %4209 = vrot.lane.b32.xlu1 %v4193_v35, %s7634_s22  ;;  %4229 = vrot.lane.b32.xlu0 %v4193_v35, %s7628_s23 }
 0x23e   : > { %4214 = vrot.lane.b32.xlu1 %v4178_v30, %s7624_s26  ;;  %4234 = vrot.lane.b32.xlu0 %v4193_v35, %s7630_s24 }
 0x242   : > { %1069 = vrot.lane.b32.xlu1 %v7584_v23, %s7624_s26  ;;  %4239 = vrot.lane.b32.xlu0 %v4193_v35, %s7626_s25 }
 0x246   : > { %4249 = vrot.lane.b32.xlu1 %v4248_v37, %s7620_s27  ;;  %4244 = vrot.lane.b32.xlu0 %v4193_v35, %s7624_s26 }
 0x284   : > { %v5661_v45 = vpop.permute.xlu0 %4139  ;;  %v5663_v46 = vpop.permute.xlu1 %4119 }
 0x285   : > { %v7611_v47 = vunpack.i.h.bf16 %v5663_v46  ;;  %v7615_v48 = vunpack.i.l.bf16 %v5663_v46 }
 0x287   : > { %v942_v49 = vsel %vm506_vm0, %v7615_v48, %v7611_v47 }
 0x288   : > { %v5672_v51 = vpop.permute.xlu0 %4144  ;;  %v5674_v50 = vpop.permute.xlu1 %4124  ;;  %v4253_v52 = vpack.i.bf16 %v942_v49, %v919_v33 }
 0x289   : > { %v7608_v63 = vunpack.i.h.bf16 %v5674_v50  ;;  %v7609_v0 = vunpack.i.l.bf16 %v5674_v50 }
 0x28a   : > { %4254 = vrot.lane.b32.xlu1 %v4253_v52, %s7620_s27  ;;  %v7598_v52 = vunpack.i.h.bf16 %v5661_v45 }
 0x28b   : > { %v962_v14 = vsel %vm518_vm5, %v7609_v0, %v7608_v63 }
 0x28c   : > { %v5677_v53 = vpop.permute.xlu0 %4149  ;;  %v5679_v54 = vpop.permute.xlu1 %4129 }
 0x28d   : > { %v7602_v9 = vunpack.i.h.bf16 %v5679_v54  ;;  %v7603_v11 = vunpack.i.l.bf16 %v5679_v54 }
 0x28f   : > { %v982_v28 = vsel %vm530_vm1, %v7603_v11, %v7602_v9 }
 0x290   : > { %v5681_v55 = vpop.permute.xlu0 %4154  ;;  %v5683_v56 = vpop.permute.xlu1 %4134 }
 0x291   : > { %v7594_v26 = vunpack.i.h.bf16 %v5683_v56  ;;  %v7593_v27 = vunpack.i.l.bf16 %v5683_v56 }
 0x294   : > { %v5685_v57 = vpop.permute.xlu1 %4179  ;;  %v5687_v58 = vpop.permute.xlu0 %4159 }
 0x295   : > { %v7589_v1 = vunpack.i.l.bf16 %v5685_v57  ;;  %v7592_v15 = vunpack.i.h.bf16 %v5685_v57 }
 0x297   : > { %v1019_v16 = vsel %vm552_vm2, %v7589_v1, %v5650_v39 }
 0x298   : > { %v5689_v59 = vpop.permute.xlu1 %4184  ;;  %v5691_v60 = vpop.permute.xlu0 %4164  ;;  %v4298_v33 = vpack.i.bf16 %v1019_v16, %v7592_v15 }
 0x299   : > { %v7588_v17 = vunpack.i.l.bf16 %v5689_v59  ;;  %v7590_v29 = vunpack.i.h.bf16 %v5689_v59 }
 0x29b   : > { %v1039_v37 = vsel %vm564_vm4, %v7588_v17, %v5654_v41 }
 0x29c   : > { %v5693_v61 = vpop.permute.xlu1 %4189  ;;  %v5695_v62 = vpop.permute.xlu0 %4169 }
 0x29d   : > { %v7591_v34 = vunpack.i.l.bf16 %v5693_v61 }
 0x29f   : > { %v1059_v44 = vsel %vm576_vm3, %v7591_v34, %v5658_v43  ;;  %v4161_v34 = vunpack.i.l.bf16 %v5687_v58 }
 0x2a0   : > { %v5700_v3 = vpop.permute.xlu1 %4194  ;;  %v5702_v5 = vpop.permute.xlu0 %4174 }
 0x2a1   : > { %v4197_v6 = vunpack.i.h.bf16 %v5700_v3  ;;  %v7600_v7 = vunpack.i.h.bf16 %v5702_v5  ;;  %v7595_v8 = vunpack.i.l.bf16 %v5702_v5 }
 0x2a3   : > { %v4258_v10 = vpack.i.bf16 %v962_v14, %v4197_v6  ;;  %v4293_v13 = vpack.i.bf16 %v7595_v8, %v7600_v7  ;;  %v7596_v14 = vunpack.i.l.bf16 %v5661_v45  ;;  %v4172_v7 = vunpack.i.h.bf16 %v5695_v62 }
 0x2a4   : > { %v5722_v18 = vpop.permute.xlu1 %4199  ;;  %v5724_v19 = vpop.permute.xlu0 %4219 }
 0x2a5   : > { %v7610_v20 = vunpack.i.h.bf16 %v5722_v18  ;;  %4259 = vrot.lane.b32.xlu1 %v4258_v10, %s7620_s27  ;;  %4294 = vrot.lane.b32.xlu0 %v4293_v13, %s7620_s27  ;;  %v999_v10 = vsel %vm540_vm7, %v7593_v27, %v7594_v26  ;;  %v7597_v13 = vunpack.i.h.bf16 %v5693_v61  ;;  %v4221_v63 = vunpack.i.l.bf16 %v5724_v19 }
 0x2a7   : > { %v4263_v30 = vpack.i.bf16 %v982_v28, %v7610_v20  ;;  %v4303_v28 = vpack.i.bf16 %v1039_v37, %v7590_v29  ;;  %v7606_v37 = vunpack.i.h.bf16 %v5672_v51  ;;  %v1017_v29 = vsel %vm552_vm2, %v7596_v14, %v7598_v52 }
 0x2a8   : > { %v5746_v35 = vpop.permute.xlu1 %4204  ;;  %v5748_v36 = vpop.permute.xlu0 %4224 }
 0x2a9   : > { %v7604_v49 = vunpack.i.h.bf16 %v5746_v35  ;;  %4264 = vrot.lane.b32.xlu1 %v4263_v30, %s7620_s27  ;;  %4299 = vrot.lane.b32.xlu0 %v4298_v33, %s7620_s27  ;;  %v7618_v30 = vunpack.i.h.bf16 %v5687_v58  ;;  %v5844_v0 = vunpack.i.l.bf16 %v5748_v36 }
 0x2ab   : > { %v4268_v16 = vpack.i.bf16 %v999_v10, %v7604_v49  ;;  %v7605_v10 = vunpack.i.l.bf16 %v5672_v51  ;;  %v944_v14 = vsel %vm506_vm0, %v5648_v38, %v7618_v30 }
 0x2ac   : > { %v5770_v33 = vpop.permute.xlu1 %4209  ;;  %v5772_v23 = vpop.permute.xlu0 %4229  ;;  %v4313_v9 = vpack.i.bf16 %v4161_v34, %v944_v14  ;;  %v4196_v14 = vunpack.i.l.bf16 %v5700_v3 }
 0x2ad   : > { %v7601_v17 = vunpack.i.h.bf16 %v5770_v33  ;;  %v7599_v1 = vunpack.i.h.bf16 %v5772_v23  ;;  %4269 = vrot.lane.b32.xlu1 %v4268_v16, %s7620_s27  ;;  %4304 = vrot.lane.b32.xlu0 %v4303_v28, %s7620_s27  ;;  %v4308_v16 = vpack.i.bf16 %v1059_v44, %v7597_v13  ;;  %v4167_v28 = vunpack.i.h.bf16 %v5691_v60 }
 0x2ae   : > { %v7612_v44 = vunpack.i.l.bf16 %v5677_v53  ;;  %v1037_v52 = vsel %vm564_vm4, %v7605_v10, %v7606_v37  ;;  %v7617_v10 = vunpack.i.h.bf16 %v5681_v55 }
 0x2af   : > { %v4273_v15 = vpack.i.bf16 %v1017_v29, %v7601_v17  ;;  %v1022_v8 = vsel %vm552_vm2, %v7599_v1, %v5650_v39  ;;  %v7613_v29 = vunpack.i.h.bf16 %v5677_v53  ;;  %v4166_v1 = vunpack.i.l.bf16 %v5691_v60 }
 0x2b0   : > { %v5795_v27 = vpop.permute.xlu1 %4214  ;;  %v5797_v26 = vpop.permute.xlu0 %4234  ;;  %v4278_v17 = vpack.i.bf16 %v1037_v52, %v1022_v8  ;;  %v7616_v60 = vunpack.i.l.bf16 %v5681_v55  ;;  %v4171_v52 = vunpack.i.l.bf16 %v5695_v62 }
 0x2b1   : > { %v7607_v13 = vunpack.i.h.bf16 %v5797_v26  ;;  %4274 = vrot.lane.b32.xlu1 %v4273_v15, %s7620_s27  ;;  %4309 = vrot.lane.b32.xlu0 %v4308_v16, %s7620_s27  ;;  %v964_v16 = vsel %vm518_vm5, %v5652_v40, %v4167_v28  ;;  %v1057_v8 = vsel %vm576_vm3, %v7612_v44, %v7613_v29 }
 0x2b2   : > { %v4318_v20 = vpack.i.bf16 %v4166_v1, %v964_v16 }
 0x2b3   : > { %v1042_v15 = vsel %vm564_vm4, %v7607_v13, %v5654_v41  ;;  %v7619_v13 = vunpack.i.h.bf16 %v5724_v19 }
 0x2b4   : > { %v5819_v11 = vpop.permute.xlu1 %1069  ;;  %v5821_v49 = vpop.permute.xlu0 %4239 }
 0x2b5   : > { %v7614_v37 = vunpack.i.h.bf16 %v5821_v49  ;;  %4279 = vrot.lane.b32.xlu1 %v4278_v17, %s7620_s27  ;;  %4314 = vrot.lane.b32.xlu0 %v4313_v9, %s7620_s27  ;;  %v4283_v17 = vpack.i.bf16 %v1057_v8, %v1042_v15  ;;  %v984_v9 = vsel %vm530_vm1, %v5656_v42, %v4172_v7  ;;  %v1077_v15 = vsel %vm588_vm6, %v7616_v60, %v7617_v10 }
 0x2b6   : > { %v4323_v16 = vpack.i.bf16 %v4171_v52, %v984_v9  ;;  %v1242_v8 = vsel %vm678_vm9, %v4221_v63, %v7619_v13  ;;  %v1241_v60 = vsel %vm678_vm9, %v5844_v0, %v4221_v63  ;;  %v4201_v9 = vunpack.i.l.bf16 %v5722_v18 }
 0x2b7   : > { %v1062_v62 = vsel %vm576_vm3, %v7614_v37, %v5658_v43  ;;  %v946_v37 = vsel %vm506_vm0, %v4196_v14, %v4197_v6  ;;  %v7645_v13 = vunpack.i.h.bf16 %v5687_v58  ;;  %v7646_v6 = vunpack.i.l.bf16 %v5663_v46 }
 0x2b8   : > { %v5848_v47 = vpop.permute.xlu1 %4249  ;;  %v4288_v48 = vpack.i.bf16 %v1077_v15, %v1062_v62  ;;  %v7647_v63 = vunpack.i.h.bf16 %v5663_v46  ;;  %v4206_v58 = vunpack.i.l.bf16 %v5746_v35 }
 0x2b9   : > { %v4252_v44 = vunpack.i.h.bf16 %v5848_v47  ;;  %v4251_v29 = vunpack.i.l.bf16 %v5848_v47  ;;  %4284 = vrot.lane.b32.xlu1 %v4283_v17, %s7620_s27  ;;  %4319 = vrot.lane.b32.xlu0 %v4318_v20, %s7620_s27  ;;  %v945_v3 = vsel %vm506_vm0, %v7645_v13, %v4196_v14  ;;  %v7648_v13 = vunpack.i.h.bf16 %v5722_v18 }
 0x2ba   : > { %v943_v62 = vsel %vm506_vm0, %v7647_v63, %v4161_v34  ;;  %v7649_v14 = vunpack.i.l.bf16 %v5674_v50  ;;  %v7650_v34 = vunpack.i.h.bf16 %v5674_v50  ;;  %v4211_v18 = vunpack.i.l.bf16 %v5770_v33 }
 0x2bb   : > { %v1244_v17 = vsel %vm678_vm9, %v5844_v0, %v4251_v29  ;;  %v1245_v20 = vsel %vm678_vm9, %v4251_v29, %v4252_v44  ;;  %v941_v29 = vsel %vm506_vm0, %v5648_v38, %v7646_v6  ;;  %v4328_v15 = vpack.i.bf16 %v945_v3, %v943_v62 }
 0x2bc   : > { %v3665_v10 = vpack.c.bf16 %v1245_v20, %v1242_v8  ;;  %v3667_v30 = vpack.c.bf16 %v1244_v17, %v1241_v60  ;;  %v4333_v60 = vpack.i.bf16 %v941_v29, %v946_v37  ;;  %v961_v46 = vsel %vm518_vm5, %v5652_v40, %v7649_v14 }
 0x2bd   : > { %4289 = vrot.lane.b32.xlu1 %v4288_v48, %s7620_s27  ;;  %4324 = vrot.lane.b32.xlu0 %v4323_v16, %s7620_s27  ;;  %v966_v48 = vsel %vm518_vm5, %v4201_v9, %v7648_v13  ;;  %v7651_v8 = vunpack.i.h.bf16 %v5746_v35  ;;  %v985_v17 = vsel %vm530_vm1, %v4172_v7, %v4206_v58  ;;  %v7652_v20 = vunpack.i.l.bf16 %v5679_v54 }
 0x2be   : > { %3666 = vmatprep.subr.bf16.mxu0 %v3665_v10  ;;  %v965_v10 = vsel %vm518_vm5, %v4167_v28, %v4201_v9  ;;  %v4343_v37 = vpack.i.bf16 %v961_v46, %v966_v48  ;;  %v4231_v35 = vunpack.i.l.bf16 %v5772_v23  ;;  %v7654_v29 = vunpack.i.h.bf16 %v5770_v33 }
 0x2bf   : > { %3668 = vmatpush1.bf16.msra.mxu0 %v3667_v30  ;;  %v963_v30 = vsel %vm518_vm5, %v7650_v34, %v4166_v1  ;;  %v986_v28 = vsel %vm530_vm1, %v4206_v58, %v7651_v8  ;;  %v981_v50 = vsel %vm530_vm1, %v5656_v42, %v7652_v20  ;;  %v7653_v1 = vunpack.i.h.bf16 %v5679_v54  ;;  %v4245_v20 = vpop.permute.xlu0 %4244 }
 0x2c0   : > { %v4338_v16 = vpack.i.bf16 %v965_v10, %v963_v30  ;;  %v4353_v3 = vpack.i.bf16 %v981_v50, %v986_v28  ;;  %v1002_v7 = vsel %vm540_vm7, %v4211_v18, %v7654_v29  ;;  %v7655_v63 = vunpack.i.h.bf16 %v5702_v5 }
 0x2c1   : > { %4334 = vrot.lane.b32.xlu1 %v4333_v60, %s7620_s27  ;;  %4329 = vrot.lane.b32.xlu0 %v4328_v15, %s7620_s27  ;;  %v983_v9 = vsel %vm530_vm1, %v7653_v1, %v4171_v52  ;;  %v7656_v54 = vunpack.i.l.bf16 %v5702_v5  ;;  %v7657_v52 = vunpack.i.h.bf16 %v5683_v56  ;;  %v7658_v15 = vunpack.i.l.bf16 %v5683_v56 }
 0x2c2   : > { %v4348_v6 = vpack.i.bf16 %v985_v17, %v983_v9  ;;  %v1001_v62 = vsel %vm540_vm7, %v7655_v63, %v4211_v18  ;;  %v7659_v13 = vunpack.i.h.bf16 %v5772_v23  ;;  %v4236_v10 = vunpack.i.l.bf16 %v5797_v26 }
 0x2c3   : > { %v1000_v60 = vsel %vm540_vm7, %v7657_v52, %v7656_v54  ;;  %v4363_v58 = vpack.i.bf16 %v7658_v15, %v1002_v7  ;;  %v7660_v14 = vunpack.i.h.bf16 %v5685_v57  ;;  %v7661_v5 = vunpack.i.l.bf16 %v5685_v57 }
 0x2c4   : > { %v4358_v33 = vpack.i.bf16 %v1001_v62, %v1000_v60  ;;  %v1021_v48 = vsel %vm552_vm2, %v4231_v35, %v7659_v13  ;;  %v7662_v56 = vunpack.i.h.bf16 %v5661_v45  ;;  %v7663_v23 = vunpack.i.l.bf16 %v5661_v45 }
 0x2c5   : > { %4344 = vrot.lane.b32.xlu1 %v4343_v37, %s7620_s27  ;;  %4339 = vrot.lane.b32.xlu0 %v4338_v16, %s7620_s27  ;;  %v1020_v46 = vsel %vm552_vm2, %v7660_v14, %v4231_v35  ;;  %v7664_v16 = vunpack.i.h.bf16 %v5689_v59  ;;  %v7665_v8 = vunpack.i.h.bf16 %v5797_v26  ;;  %v4241_v17 = vunpack.i.l.bf16 %v5821_v49 }
 0x2c6   : > { %v1018_v34 = vsel %vm552_vm2, %v7662_v56, %v7661_v5  ;;  %v4373_v30 = vpack.i.bf16 %v7663_v23, %v1021_v48  ;;  %v7666_v57 = vunpack.i.l.bf16 %v5689_v59  ;;  %v7667_v45 = vunpack.i.h.bf16 %v5672_v51  ;;  %v1087_v56 = vld [vmem:[%s7576_s7] sm:$0xff] }
 0x2c7   : > { %v4368_v37 = vpack.i.bf16 %v1020_v46, %v1018_v34  ;;  %v1040_v18 = vsel %vm564_vm4, %v7664_v16, %v4236_v10  ;;  %v1041_v28 = vsel %vm564_vm4, %v4236_v10, %v7665_v8  ;;  %v7668_v1 = vunpack.i.l.bf16 %v5672_v51 }
 0x2c8   : > { %v1038_v50 = vsel %vm564_vm4, %v7667_v45, %v7666_v57  ;;  %v7669_v26 = vunpack.i.h.bf16 %v5693_v61  ;;  %v7670_v35 = vunpack.i.h.bf16 %v5821_v49  ;;  %v4247_v7 = vunpack.i.h.bf16 %v4245_v20 }
 0x2c9   : > { %4354 = vrot.lane.b32.xlu1 %v4353_v3, %s7620_s27  ;;  %4349 = vrot.lane.b32.xlu0 %v4348_v6, %s7620_s27  ;;  %v4383_v9 = vpack.i.bf16 %v7668_v1, %v1041_v28  ;;  %v4378_v3 = vpack.i.bf16 %v1040_v18, %v1038_v50  ;;  %v4246_v63 = vunpack.i.l.bf16 %v4245_v20  ;;  %v7671_v59 = vunpack.i.l.bf16 %v5693_v61  ;;  %v1084_v61 = vld [vmem:[%s7575_s6 + $0x8] sm:$0xff] }
 0x2ca   : > { %v1060_v6 = vsel %vm576_vm3, %v7669_v26, %v4241_v17  ;;  %v1061_v29 = vsel %vm576_vm3, %v4241_v17, %v7670_v35  ;;  %v7672_v51 = vunpack.i.h.bf16 %v5677_v53  ;;  %v4217_v54 = vunpack.i.h.bf16 %v5795_v27  ;;  %3549 = vmatprep.mubr.msk.f32.mxu0 %vm1349_vm10, %v1084_v61  ;;  %3551 = vmatprep.mubr.msk.f32.mxu1 %vm1349_vm10, %v1084_v61 }
 0x2cb   : > { %v4216_v52 = vunpack.i.l.bf16 %v5795_v27  ;;  %v7673_v49 = vunpack.i.l.bf16 %v5677_v53  ;;  %v7674_v13 = vunpack.i.h.bf16 %v5681_v55  ;;  %v7675_v53 = vunpack.i.l.bf16 %v5681_v55  ;;  %v1088_v55 = vld [vmem:[%s7576_s7 + $0x8] sm:$0xff] }
 0x2cc   : > { %v1058_v62 = vsel %vm576_vm3, %v7672_v51, %v7671_v59  ;;  %v1082_v5 = vsel %vm588_vm6, %v4247_v7, %v5819_v11  ;;  %v4227_v34 = vunpack.i.h.bf16 %v5748_v36  ;;  %v7677_v28 = vmov 0.0|0.0  }
 0x2cd   : > { %4364 = vrot.lane.b32.xlu1 %v4363_v58, %s7620_s27  ;;  %4359 = vrot.lane.b32.xlu0 %v4358_v33, %s7620_s27  ;;  %v4393_v60 = vpack.i.bf16 %v7673_v49, %v1061_v29  ;;  %v4388_v15 = vpack.i.bf16 %v1060_v6, %v1058_v62  ;;  %v1080_v58 = vsel %vm588_vm6, %v4217_v54, %v4246_v63 }
 0x2ce   : > { %v1081_v33 = vsel %vm588_vm6, %v4246_v63, %v4247_v7  ;;  %v1078_v27 = vsel %vm588_vm6, %v7674_v13, %v4216_v52  ;;  %v1079_v14 = vsel %vm588_vm6, %v4216_v52, %v5819_v11 }
 0x2cf   : > { %v4408_v48 = vpack.i.bf16 %v7675_v53, %v1081_v33  ;;  %v4398_v10 = vpack.i.bf16 %v1080_v58, %v1078_v27  ;;  %v4403_v46 = vpack.i.bf16 %v1079_v14, %v4217_v54 }
 0x2d1   : > { %4374 = vrot.lane.b32.xlu1 %v4373_v30, %s7620_s27  ;;  %4369 = vrot.lane.b32.xlu0 %v4368_v37, %s7620_s27  ;;  %v7676_v37 = vunpack.i.h.bf16 %v5724_v19 }
 0x2d3   : > { %v1243_v16 = vsel %vm678_vm9, %v7676_v37, %v4227_v34 }
 0x2d5   : > { %4384 = vrot.lane.b32.xlu1 %v4383_v9, %s7620_s27  ;;  %4379 = vrot.lane.b32.xlu0 %v4378_v3, %s7620_s27 }
 0x2d9   : > { %4394 = vrot.lane.b32.xlu1 %v4393_v60, %s7620_s27  ;;  %4389 = vrot.lane.b32.xlu0 %v4388_v15, %s7620_s27 }
 0x2dd   : > { %4409 = vrot.lane.b32.xlu1 %v4408_v48, %s7620_s27  ;;  %4399 = vrot.lane.b32.xlu0 %v4398_v10, %s7620_s27 }
 0x2e1   : > { %1239 = vrot.lane.b32.xlu1 %v1082_v5, %s7620_s27  ;;  %4404 = vrot.lane.b32.xlu0 %v4403_v46, %s7620_s27  ;;  %s7678_s27 = smov 19  }
 0x2e5   : > { %1096 = vperm.xlu1 %4117, %v1088_v55   ;;  %1091 = vperm.xlu0 %4116, %v1087_v56  }
 0x2fc   : > { %v4255_v23 = vpop.permute.xlu1 %4254 }
 0x2fd   : > { %v4256_v30 = vunpack.i.l.bf16 %v4255_v23  ;;  %v4257_v35 = vunpack.i.h.bf16 %v4255_v23 }
 0x2ff   : > { %v1246_v18 = vsel %vm678_vm9, %v4252_v44, %v4256_v30 }
 0x300   : > { %v3702_v8 = vpack.c.bf16 %v1246_v18, %v1243_v16 }
 0x302   : > { %3703 = vmatpush1.bf16.msra.mxu1 %v3702_v8 }
 0x303   : > { %3704 = vmatprep.subr.bf16.mxu1 %v7677_v28 }
 0x317   : > { %v4260_v17 = vpop.permute.xlu1 %4259  ;;  %v6018_v20 = vpop.permute.xlu0 %4294 }
 0x318   : > { %v4262_v29 = vunpack.i.h.bf16 %v4260_v17  ;;  %v4261_v7 = vunpack.i.l.bf16 %v4260_v17  ;;  %v4297_v63 = vunpack.i.h.bf16 %v6018_v20  ;;  %v4296_v59 = vunpack.i.l.bf16 %v6018_v20 }
 0x31b   : > { %v6020_v57 = vpop.permute.xlu1 %4264  ;;  %v6022_v36 = vpop.permute.xlu0 %4299 }
 0x31c   : > { %v4267_v51 = vunpack.i.h.bf16 %v6020_v57  ;;  %v4266_v62 = vunpack.i.l.bf16 %v6020_v57  ;;  %v4302_v13 = vunpack.i.h.bf16 %v6022_v36  ;;  %v4301_v27 = vunpack.i.l.bf16 %v6022_v36 }
 0x31f   : > { %v6024_v45 = vpop.permute.xlu1 %4269  ;;  %v6026_v19 = vpop.permute.xlu0 %4304 }
 0x323   : > { %v6028_v50 = vpop.permute.xlu1 %4274  ;;  %v6030_v47 = vpop.permute.xlu0 %4309 }
 0x324   : > { %v4312_v20 = vunpack.i.h.bf16 %v6030_v47  ;;  %v4311_v36 = vunpack.i.l.bf16 %v6030_v47 }
 0x327   : > { %v6032_v44 = vpop.permute.xlu1 %4279  ;;  %v4315_v1 = vpop.permute.xlu0 %4314 }
 0x328   : > { %v4317_v54 = vunpack.i.h.bf16 %v4315_v1  ;;  %v4316_v52 = vunpack.i.l.bf16 %v4315_v1  ;;  %v4271_v1 = vunpack.i.l.bf16 %v6024_v45 }
 0x32b   : > { %v6034_v9 = vpop.permute.xlu1 %4284  ;;  %v4320_v3 = vpop.permute.xlu0 %4319 }
 0x32c   : > { %v4322_v53 = vunpack.i.h.bf16 %v4320_v3  ;;  %v4321_v48 = vunpack.i.l.bf16 %v4320_v3 }
 0x32f   : > { %v6036_v26 = vpop.permute.xlu1 %4289  ;;  %v6038_v6 = vpop.permute.xlu0 %4324 }
 0x330   : > { %v4327_v3 = vunpack.i.h.bf16 %v6038_v6 }
 0x333   : > { %v4335_v49 = vpop.permute.xlu1 %4334  ;;  %v4330_v60 = vpop.permute.xlu0 %4329 }
 0x334   : > { %v4337_v15 = vunpack.i.h.bf16 %v4335_v49  ;;  %v4336_v58 = vunpack.i.l.bf16 %v4335_v49  ;;  %v4332_v33 = vunpack.i.h.bf16 %v4330_v60  ;;  %v4331_v61 = vunpack.i.l.bf16 %v4330_v60 }
 0x336   : > { %v1247_v10 = vsel %vm678_vm9, %v4337_v15, %v4257_v35  ;;  %v1252_v14 = vsel %vm678_vm9, %v4336_v58, %v4261_v7  ;;  %v1249_v46 = vsel %vm678_vm9, %v4331_v61, %v4317_v54  ;;  %v1250_v5 = vsel %vm678_vm9, %v4316_v52, %v4332_v33 }
 0x337   : > { %v4345_v55 = vpop.permute.xlu1 %4344  ;;  %v4340_v56 = vpop.permute.xlu0 %4339  ;;  %v1248_v34 = vsel %vm678_vm9, %v4257_v35, %v4331_v61  ;;  %v1251_v23 = vsel %vm678_vm9, %v4332_v33, %v4336_v58  ;;  %v3705_v30 = vpack.c.bf16 %v1252_v14, %v1249_v46  ;;  %v3671_v37 = vpack.c.bf16 %v1250_v5, %v1247_v10 }
 0x338   : > { %v4347_v16 = vunpack.i.h.bf16 %v4345_v55  ;;  %v4346_v18 = vunpack.i.l.bf16 %v4345_v55  ;;  %v4342_v8 = vunpack.i.h.bf16 %v4340_v56  ;;  %v4341_v17 = vunpack.i.l.bf16 %v4340_v56 }
 0x339   : > { %v4326_v7 = vunpack.i.l.bf16 %v6038_v6  ;;  %v3669_v54 = vpack.c.bf16 %v1251_v23, %v1248_v34  ;;  %3706 = vmatpush1.bf16.msra.mxu1 %v3705_v30  ;;  %v4276_v55 = vunpack.i.l.bf16 %v6028_v50 }
 0x33a   : > { %v1253_v52 = vsel %vm678_vm9, %v4347_v16, %v4262_v29  ;;  %v1258_v35 = vsel %vm678_vm9, %v4346_v18, %v4266_v62  ;;  %v1255_v49 = vsel %vm678_vm9, %v4341_v17, %v4322_v53  ;;  %v1256_v60 = vsel %vm678_vm9, %v4321_v48, %v4342_v8  ;;  %3707 = vmatprep.subr.bf16.mxu1 %v7677_v28 }
 0x33b   : > { %3670 = vmatprep.subr.bf16.mxu0 %v3669_v54  ;;  %v4355_v15 = vpop.permute.xlu1 %4354  ;;  %v4350_v58 = vpop.permute.xlu0 %4349  ;;  %v1254_v33 = vsel %vm678_vm9, %v4262_v29, %v4341_v17  ;;  %v1257_v61 = vsel %vm678_vm9, %v4342_v8, %v4346_v18  ;;  %v3708_v6 = vpack.c.bf16 %v1258_v35, %v1255_v49  ;;  %v3675_v10 = vpack.c.bf16 %v1256_v60, %v1253_v52 }
 0x33c   : > { %3672 = vmatpush1.bf16.msra.mxu0 %v3671_v37  ;;  %v4357_v14 = vunpack.i.h.bf16 %v4355_v15  ;;  %v4356_v46 = vunpack.i.l.bf16 %v4355_v15  ;;  %v4352_v5 = vunpack.i.h.bf16 %v4350_v58  ;;  %v4351_v62 = vunpack.i.l.bf16 %v4350_v58 }
 0x33d   : > { %v4272_v53 = vunpack.i.h.bf16 %v6024_v45  ;;  %v4307_v48 = vunpack.i.h.bf16 %v6026_v19  ;;  %v3673_v56 = vpack.c.bf16 %v1257_v61, %v1254_v33  ;;  %3709 = vmatpush1.bf16.msra.mxu1 %v3708_v6  ;;  %v4277_v35 = vunpack.i.h.bf16 %v6028_v50 }
 0x33e   : > { %v1259_v29 = vsel %vm678_vm9, %v4357_v14, %v4267_v51  ;;  %v1264_v34 = vsel %vm678_vm9, %v4356_v46, %v4271_v1  ;;  %v1261_v23 = vsel %vm678_vm9, %v4351_v62, %v4327_v3  ;;  %v1262_v30 = vsel %vm678_vm9, %v4326_v7, %v4352_v5  ;;  %3710 = vmatprep.subr.bf16.mxu1 %v7677_v28 }
 0x33f   : > { %3674 = vmatprep.subr.bf16.mxu0 %v3673_v56  ;;  %v4365_v45 = vpop.permute.xlu1 %4364  ;;  %v4360_v37 = vpop.permute.xlu0 %4359  ;;  %v1260_v16 = vsel %vm678_vm9, %v4267_v51, %v4351_v62  ;;  %v1263_v18 = vsel %vm678_vm9, %v4352_v5, %v4356_v46  ;;  %v3711_v8 = vpack.c.bf16 %v1264_v34, %v1261_v23  ;;  %v3679_v17 = vpack.c.bf16 %v1262_v30, %v1259_v29 }
 0x340   : > { %3676 = vmatpush1.bf16.msra.mxu0 %v3675_v10  ;;  %v4367_v54 = vunpack.i.h.bf16 %v4365_v45  ;;  %v4366_v1 = vunpack.i.l.bf16 %v4365_v45  ;;  %v4362_v52 = vunpack.i.h.bf16 %v4360_v37  ;;  %v4361_v3 = vunpack.i.l.bf16 %v4360_v37 }
 0x341   : > { %v4306_v7 = vunpack.i.l.bf16 %v6026_v19  ;;  %v4281_v49 = vunpack.i.l.bf16 %v6032_v44  ;;  %v3677_v60 = vpack.c.bf16 %v1263_v18, %v1260_v16  ;;  %3712 = vmatpush1.bf16.msra.mxu1 %v3711_v8 }
 0x342   : > { %v1265_v57 = vsel %vm678_vm9, %v4367_v54, %v4272_v53  ;;  %v1270_v51 = vsel %vm678_vm9, %v4366_v1, %v4276_v55  ;;  %v1268_v15 = vsel %vm678_vm9, %v4296_v59, %v4362_v52  ;;  %v1267_v58 = vsel %vm678_vm9, %v4361_v3, %v4297_v63  ;;  %3713 = vmatprep.subr.bf16.mxu1 %v7677_v28 }
 0x343   : > { %3678 = vmatprep.subr.bf16.mxu0 %v3677_v60  ;;  %v4375_v50 = vpop.permute.xlu1 %4374  ;;  %v4370_v33 = vpop.permute.xlu0 %4369  ;;  %v1266_v61 = vsel %vm678_vm9, %v4272_v53, %v4361_v3  ;;  %v1269_v6 = vsel %vm678_vm9, %v4362_v52, %v4366_v1  ;;  %v3714_v10 = vpack.c.bf16 %v1270_v51, %v1267_v58  ;;  %v3683_v14 = vpack.c.bf16 %v1268_v15, %v1265_v57 }
 0x344   : > { %3680 = vmatpush1.bf16.msra.mxu0 %v3679_v17  ;;  %v4377_v46 = vunpack.i.h.bf16 %v4375_v50  ;;  %v4376_v5 = vunpack.i.l.bf16 %v4375_v50  ;;  %v4372_v62 = vunpack.i.h.bf16 %v4370_v33  ;;  %v4371_v59 = vunpack.i.l.bf16 %v4370_v33 }
 0x345   : > { %v4282_v63 = vunpack.i.h.bf16 %v6032_v44  ;;  %v4286_v55 = vunpack.i.l.bf16 %v6034_v9  ;;  %v3681_v56 = vpack.c.bf16 %v1269_v6, %v1266_v61  ;;  %3715 = vmatpush1.bf16.msra.mxu1 %v3714_v10  ;;  %v4291_v1 = vunpack.i.l.bf16 %v6036_v26 }
 0x346   : > { %v1271_v29 = vsel %vm678_vm9, %v4377_v46, %v4277_v35  ;;  %v1276_v53 = vsel %vm678_vm9, %v4376_v5, %v4281_v49  ;;  %v1274_v34 = vsel %vm678_vm9, %v4301_v27, %v4372_v62  ;;  %v1273_v23 = vsel %vm678_vm9, %v4371_v59, %v4302_v13  ;;  %3716 = vmatprep.subr.bf16.mxu1 %v7677_v28 }
 0x347   : > { %3682 = vmatprep.subr.bf16.mxu0 %v3681_v56  ;;  %v4385_v44 = vpop.permute.xlu1 %4384  ;;  %v4380_v30 = vpop.permute.xlu0 %4379  ;;  %v1272_v45 = vsel %vm678_vm9, %v4277_v35, %v4371_v59  ;;  %v1275_v37 = vsel %vm678_vm9, %v4372_v62, %v4376_v5  ;;  %v3717_v16 = vpack.c.bf16 %v1276_v53, %v1273_v23  ;;  %v3687_v18 = vpack.c.bf16 %v1274_v34, %v1271_v29 }
 0x348   : > { %3684 = vmatpush1.bf16.msra.mxu0 %v3683_v14  ;;  %v4387_v8 = vunpack.i.h.bf16 %v4385_v44  ;;  %v4386_v17 = vunpack.i.l.bf16 %v4385_v44  ;;  %v4382_v54 = vunpack.i.h.bf16 %v4380_v30  ;;  %v4381_v27 = vunpack.i.l.bf16 %v4380_v30 }
 0x349   : > { %v4287_v13 = vunpack.i.h.bf16 %v6034_v9  ;;  %v3685_v52 = vpack.c.bf16 %v1275_v37, %v1272_v45  ;;  %3718 = vmatpush1.bf16.msra.mxu1 %v3717_v16  ;;  %v4292_v46 = vunpack.i.h.bf16 %v6036_v26 }
 0x34a   : > { %v1277_v3 = vsel %vm678_vm9, %v4387_v8, %v4282_v63  ;;  %v1282_v35 = vsel %vm678_vm9, %v4386_v17, %v4286_v55  ;;  %v1280_v49 = vsel %vm678_vm9, %v4306_v7, %v4382_v54  ;;  %v1279_v60 = vsel %vm678_vm9, %v4381_v27, %v4307_v48  ;;  %3719 = vmatprep.subr.bf16.mxu1 %v7677_v28 }
 0x34b   : > { %3686 = vmatprep.subr.bf16.mxu0 %v3685_v52  ;;  %v4395_v47 = vpop.permute.xlu1 %4394  ;;  %v4390_v57 = vpop.permute.xlu0 %4389  ;;  %v1278_v9 = vsel %vm678_vm9, %v4282_v63, %v4381_v27  ;;  %v1281_v51 = vsel %vm678_vm9, %v4382_v54, %v4386_v17  ;;  %v3720_v15 = vpack.c.bf16 %v1282_v35, %v1279_v60  ;;  %v3691_v58 = vpack.c.bf16 %v1280_v49, %v1277_v3  ;;  %v1086_v52 = vld [vmem:[%s7575_s6 + $0x18] sm:$0xff]  ;;  %v1085_v3 = vld [vmem:[%s7575_s6 + $0x10] sm:$0xff] }
 0x34c   : > { %3688 = vmatpush1.bf16.msra.mxu0 %v3687_v18  ;;  %v4397_v50 = vunpack.i.h.bf16 %v4395_v47  ;;  %v4396_v33 = vunpack.i.l.bf16 %v4395_v47  ;;  %v4392_v61 = vunpack.i.h.bf16 %v4390_v57  ;;  %v4391_v7 = vunpack.i.l.bf16 %v4390_v57 }
 0x34d   : > { %v3689_v6 = vpack.c.bf16 %v1281_v51, %v1278_v9  ;;  %3721 = vmatpush1.bf16.msra.mxu1 %v3720_v15 }
 0x34e   : > { %v1283_v19 = vsel %vm678_vm9, %v4397_v50, %v4287_v13  ;;  %v1288_v48 = vsel %vm678_vm9, %v4396_v33, %v4291_v1  ;;  %v1286_v10 = vsel %vm678_vm9, %v4311_v36, %v4392_v61  ;;  %v1285_v14 = vsel %vm678_vm9, %v4391_v7, %v4312_v20  ;;  %3722 = vmatprep.subr.bf16.mxu1 %v7677_v28  ;;  %v1083_v1 = vld [vmem:[%s7575_s6] sm:$0xff] }
 0x34f   : > { %3690 = vmatprep.subr.bf16.mxu0 %v3689_v6  ;;  %v4410_v5 = vpop.permute.xlu1 %4409  ;;  %v4400_v62 = vpop.permute.xlu0 %4399  ;;  %v1284_v59 = vsel %vm678_vm9, %v4287_v13, %v4391_v7  ;;  %v1287_v63 = vsel %vm678_vm9, %v4392_v61, %v4396_v33  ;;  %v3723_v55 = vpack.c.bf16 %v1288_v48, %v1285_v14  ;;  %v3695_v34 = vpack.c.bf16 %v1286_v10, %v1283_v19 }
 0x350   : > { %3692 = vmatpush1.bf16.msra.mxu0 %v3691_v58  ;;  %v4411_v56 = vunpack.i.l.bf16 %v4410_v5  ;;  %v4402_v29 = vunpack.i.h.bf16 %v4400_v62  ;;  %v4401_v53 = vunpack.i.l.bf16 %v4400_v62  ;;  %v3693_v23 = vpack.c.bf16 %v1287_v63, %v1284_v59 }
 0x351   : > { %3724 = vmatpush1.bf16.msra.mxu1 %v3723_v55  ;;  %v4412_v20 = vunpack.i.h.bf16 %v4410_v5 }
 0x352   : > { %v1290_v44 = vsel %vm678_vm9, %v4292_v46, %v4401_v53  ;;  %v1293_v26 = vsel %vm678_vm9, %v4402_v29, %v4411_v56  ;;  %3725 = vmatprep.subr.bf16.mxu1 %v7677_v28  ;;  %3694 = vmatprep.subr.bf16.mxu0 %v3693_v23 }
 0x353   : > { %v1240_v30 = vpop.permute.xlu1 %1239  ;;  %v4405_v45 = vpop.permute.xlu0 %4404  ;;  %v3697_v37 = vpack.c.bf16 %v1293_v26, %v1290_v44  ;;  %v1289_v8 = vsel %vm678_vm9, %v4412_v20, %v4292_v46 }
 0x354   : > { %3696 = vmatpush1.bf16.msra.mxu0 %v3695_v34  ;;  %v4407_v16 = vunpack.i.h.bf16 %v4405_v45  ;;  %v4406_v18 = vunpack.i.l.bf16 %v4405_v45  ;;  %v1294_v17 = vsel %vm678_vm9, %v4411_v56, %v1240_v30 }
 0x355   : > { %3698 = vmatprep.subr.bf16.mxu0 %v3697_v37 }
 0x356   : > { %v1291_v54 = vsel %vm678_vm9, %v4401_v53, %v4407_v16  ;;  %v1292_v27 = vsel %vm678_vm9, %v4406_v18, %v4402_v29 }
 0x357   : > { %v3699_v36 = vpack.c.bf16 %v1292_v27, %v1289_v8  ;;  %v3726_v13 = vpack.c.bf16 %v1294_v17, %v1291_v54 }
 0x359   : > { %3700 = vmatpush1.bf16.msra.mxu0 %v3699_v36  ;;  %3727 = vmatpush1.bf16.msra.mxu1 %v3726_v13 }
 0x35a   : > { %3764 = vmatprep.subr.bf16.mxu1 %v7677_v28 }
 0x35c   : > { %1421 = vmatmul.mubr.f32.vlgmr.msra.gmra.mrb[4].mxu0 %v1083_v1  ;;  %1498 = vmatmul.mubr.f32.vlgmr.msra.gmra.mrb[2].mxu1 %v1083_v1 }
 0x35d   : > { %3550 = vmatprep.mubr.msk.f32.mxu0 %vm1349_vm10, %v1086_v52  ;;  %3552 = vmatprep.mubr.msk.f32.mxu1 %vm1349_vm10, %v1086_v52 }
 0x360   : > { %1427 = vmatmul.mubr.f32.gmra.mrb[6].mxu0 %v1085_v3  ;;  %1503 = vmatmul.mubr.f32.gmra.mrb[4].mxu1 %v1085_v3 }
 0x364   : > { %v1092_v35 = vpop.permute.xlu0 %1091  ;;  %v1097_v58 = vpop.permute.xlu1 %1096 }
 0x42f   : > { %v1422_v49 = vpop.f32.mrb[4].mxu0  ;;  %v1499_v60 = vpop.f32.mrb[2].mxu1 }
 0x430   : > { %v1423_v47 = vadd.f32 %v1422_v49, %v1092_v35  ;;  %v1500_v57 = vadd.f32 %v1499_v60, %v1092_v35  ;;  %v1424_v9 = vpop.f32.mrb[5].mxu0  ;;  %v1501_v51 = vpop.f32.mrb[3].mxu1 }
 0x431   : > { %v1425_v15 = vadd.f32 %v1424_v9, %v1092_v35 }
 0x432   : > { %v1508_v50 = vmul.f32 %v1423_v47, %v5588_v4  ;;  %v1510_v33 = vmul.f32 %v1500_v57, %v5602_v21 }
 0x433   : > { %v1509_v61 = vmul.f32 %v1425_v15, %v5590_v24  ;;  %v1428_v7 = vpop.f32.mrb[6].mxu0  ;;  %v1504_v6 = vpop.f32.mrb[4].mxu1 }
 0x434   : > { %v1514_v19 = vmax.f32 %v1508_v50, 0.0  ;;  %v1429_v48 = vadd.f32 %v1428_v7, %v1097_v58  ;;  %v1505_v10 = vadd.f32 %v1504_v6, %v1097_v58  ;;  %v1430_v14 = vpop.f32.mrb[7].mxu0  ;;  %v1506_v46 = vpop.f32.mrb[5].mxu1  ;;  %v1516_v59 = vmax.f32 %v1510_v33, 0.0 }
 0x435   : > { %v1515_v5 = vmax.f32 %v1509_v61, 0.0  ;;  %v1431_v62 = vadd.f32 %v1430_v14, %v1097_v58 }
 0x436   : > { %v1511_v63 = vmul.f32 %v1429_v48, %v5588_v4  ;;  %v1513_v55 = vmul.f32 %v1505_v10, %v5602_v21 }
 0x437   : > { %v1512_v56 = vmul.f32 %v1431_v62, %v5590_v24  ;;  %v4418_v29 = vpack.i.bf16 %v1515_v5, %v1514_v19 }
 0x438   : > { %v1517_v53 = vmax.f32 %v1511_v63, 0.0  ;;  %v1519_v34 = vmax.f32 %v1513_v55, 0.0 }
 0x439   : > { %v1518_v23 = vmax.f32 %v1512_v56, 0.0  ;;  %4419 = vrot.lane.b32.xlu1 %v4418_v29, %s5306_s19  ;;  %4414 = vrot.lane.b32.xlu0 %v4418_v29, %s7643_s20 }
 0x43a   : > { %v4443_v20 = vpack.i.bf16 %v1517_v53, %v1516_v59  ;;  %v4533_v30 = vpack.i.bf16 %v1519_v34, %v1516_v59 }
 0x43b   : > { %v4473_v44 = vpack.i.bf16 %v1519_v34, %v1518_v23  ;;  %v4543_v26 = vpack.i.bf16 %v1518_v23, %v1517_v53 }
 0x43d   : > { %4429 = vrot.lane.b32.xlu1 %v4418_v29, %s7634_s22  ;;  %4424 = vrot.lane.b32.xlu0 %v4418_v29, %s7632_s21 }
 0x441   : > { %4439 = vrot.lane.b32.xlu1 %v4418_v29, %s7630_s24  ;;  %4434 = vrot.lane.b32.xlu0 %v4418_v29, %s7628_s23 }
 0x445   : > { %4444 = vrot.lane.b32.xlu1 %v4443_v20, %s7643_s20  ;;  %4449 = vrot.lane.b32.xlu0 %v4443_v20, %s5306_s19 }
 0x449   : > { %4454 = vrot.lane.b32.xlu1 %v4443_v20, %s7632_s21  ;;  %4459 = vrot.lane.b32.xlu0 %v4443_v20, %s7634_s22 }
 0x44d   : > { %4464 = vrot.lane.b32.xlu1 %v4443_v20, %s7628_s23  ;;  %4469 = vrot.lane.b32.xlu0 %v4443_v20, %s7630_s24 }
 0x451   : > { %4484 = vrot.lane.b32.xlu1 %v4443_v20, %s7626_s25  ;;  %4474 = vrot.lane.b32.xlu0 %v4473_v44, %s7643_s20 }
 0x455   : > { %4489 = vrot.lane.b32.xlu1 %v4473_v44, %s5306_s19  ;;  %4479 = vrot.lane.b32.xlu0 %v4418_v29, %s7626_s25 }
 0x459   : > { %4494 = vrot.lane.b32.xlu1 %v4418_v29, %s7624_s26  ;;  %4499 = vrot.lane.b32.xlu0 %v4473_v44, %s7632_s21  ;;  %s7684_s21 = smov 92  }
 0x45d   : > { %4509 = vrot.lane.b32.xlu1 %v4473_v44, %s7634_s22  ;;  %4504 = vrot.lane.b32.xlu0 %v4443_v20, %s7624_s26 }
 0x461   : > { %4524 = vrot.lane.b32.xlu1 %v4473_v44, %s7630_s24  ;;  %4514 = vrot.lane.b32.xlu0 %v4473_v44, %s7628_s23  ;;  %s7685_s24 = smov 108   ;;  %s7686_s23 = smov 91  }
 0x465   : > { %4539 = vrot.lane.b32.xlu1 %v4473_v44, %s7624_s26  ;;  %4519 = vrot.lane.b32.xlu0 %v4418_v29, %s7678_s27  ;;  %s6595_s26 = scalar_lea.vmem %s7570_s1, %s3571_s15 }
 0x469   : > { %4544 = vrot.lane.b32.xlu1 %v4543_v26, %s7678_s27  ;;  %4529 = vrot.lane.b32.xlu0 %v4473_v44, %s7626_s25  ;;  %s7687_s25 = smov 90  }
 0x46d   : > { %4534 = vrot.lane.b32.xlu0 %v4533_v30, %s7678_s27 }
 0x4ab   : > { %v6176_v45 = vpop.permute.xlu1 %4419  ;;  %v6178_v37 = vpop.permute.xlu0 %4414 }
 0x4ac   : > { %v4417_v54 = vunpack.i.h.bf16 %v6178_v37  ;;  %v4416_v27 = vunpack.i.l.bf16 %v6178_v37  ;;  %v4422_v3 = vunpack.i.h.bf16 %v6176_v45  ;;  %v4421_v35 = vunpack.i.l.bf16 %v6176_v45 }
 0x4ae   : > { %v1539_v49 = vsel %vm506_vm0, %v4416_v27, %v4417_v54  ;;  %v1557_v33 = vsel %vm518_vm5, %v4421_v35, %v4422_v3 }
 0x4af   : > { %v4430_v16 = vpop.permute.xlu1 %4429  ;;  %v6180_v18 = vpop.permute.xlu0 %4424 }
 0x4b0   : > { %v4431_v51 = vunpack.i.l.bf16 %v4430_v16  ;;  %v4427_v61 = vunpack.i.h.bf16 %v6180_v18  ;;  %v4426_v7 = vunpack.i.l.bf16 %v6180_v18  ;;  %v4432_v59 = vunpack.i.h.bf16 %v4430_v16 }
 0x4b2   : > { %v1575_v63 = vsel %vm530_vm1, %v4426_v7, %v4427_v61  ;;  %v1592_v26 = vsel %vm540_vm7, %v4431_v51, %v4432_v59 }
 0x4b3   : > { %v6182_v8 = vpop.permute.xlu1 %4439  ;;  %v4435_v17 = vpop.permute.xlu0 %4434 }
 0x4b4   : > { %v4436_v14 = vunpack.i.l.bf16 %v4435_v17  ;;  %v4441_v23 = vunpack.i.l.bf16 %v6182_v8  ;;  %v4437_v30 = vunpack.i.h.bf16 %v4435_v17 }
 0x4b7   : > { %v6186_v36 = vpop.permute.xlu1 %4444  ;;  %v6188_v13 = vpop.permute.xlu0 %4449 }
 0x4b8   : > { %v4446_v1 = vunpack.i.l.bf16 %v6186_v36  ;;  %v4451_v52 = vunpack.i.l.bf16 %v6188_v13 }
 0x4ba   : > { %v1540_v60 = vsel %vm506_vm0, %v4417_v54, %v4446_v1  ;;  %v1558_v15 = vsel %vm518_vm5, %v4422_v3, %v4451_v52 }
 0x4bb   : > { %v6200_v47 = vpop.permute.xlu1 %4454  ;;  %v6202_v57 = vpop.permute.xlu0 %4459  ;;  %v4548_v9 = vpack.i.bf16 %v1540_v60, %v1539_v49  ;;  %v4553_v10 = vpack.i.bf16 %v1558_v15, %v1557_v33  ;;  %v4447_v60 = vunpack.i.h.bf16 %v6186_v36 }
 0x4bc   : > { %v4456_v58 = vunpack.i.l.bf16 %v6200_v47  ;;  %v4462_v50 = vunpack.i.h.bf16 %v6202_v57  ;;  %v4461_v5 = vunpack.i.l.bf16 %v6202_v57 }
 0x4bd   : > { %4549 = vrot.lane.b32.xlu0 %v4548_v9, %s7678_s27 }
 0x4be   : > { %v4608_v6 = vpack.i.bf16 %v4462_v50, %v4431_v51  ;;  %v1576_v46 = vsel %vm530_vm1, %v4427_v61, %v4456_v58  ;;  %v1593_v20 = vsel %vm540_vm7, %v4432_v59, %v4461_v5  ;;  %v4442_v51 = vunpack.i.h.bf16 %v6182_v8 }
 0x4bf   : > { %v6217_v19 = vpop.permute.xlu1 %4464  ;;  %v6219_v48 = vpop.permute.xlu0 %4469  ;;  %v4558_v34 = vpack.i.bf16 %v1576_v46, %v1575_v63  ;;  %v4563_v49 = vpack.i.bf16 %v1593_v20, %v1592_v26  ;;  %v1608_v61 = vsel %vm552_vm2, %v4436_v14, %v4437_v30 }
 0x4c0   : > { %v4467_v62 = vunpack.i.h.bf16 %v6217_v19  ;;  %4609 = vrot.lane.b32.xlu1 %v4608_v6, %s7678_s27  ;;  %v4472_v56 = vunpack.i.h.bf16 %v6219_v48  ;;  %v4466_v44 = vunpack.i.l.bf16 %v6217_v19  ;;  %v4471_v15 = vunpack.i.l.bf16 %v6219_v48 }
 0x4c1   : > { %4554 = vrot.lane.b32.xlu0 %v4553_v10, %s7678_s27  ;;  %v4452_v6 = vunpack.i.h.bf16 %v6188_v13  ;;  %v1626_v20 = vsel %vm564_vm4, %v4441_v23, %v4442_v51 }
 0x4c2   : > { %v4613_v55 = vpack.i.bf16 %v4467_v62, %v4436_v14  ;;  %v4623_v16 = vpack.i.bf16 %v4472_v56, %v4441_v23  ;;  %v1609_v9 = vsel %vm552_vm2, %v4437_v30, %v4466_v44  ;;  %v1538_v14 = vsel %vm506_vm0, %v5648_v38, %v4416_v27 }
 0x4c3   : > { %v6234_v29 = vpop.permute.xlu1 %4484  ;;  %v6236_v53 = vpop.permute.xlu0 %4474  ;;  %v4568_v63 = vpack.i.bf16 %v1609_v9, %v1608_v61  ;;  %v1559_v30 = vsel %vm518_vm5, %v5652_v40, %v4452_v6  ;;  %v4457_v61 = vunpack.i.h.bf16 %v6200_v47  ;;  %v1610_v57 = vsel %vm552_vm2, %v4466_v44, %v5650_v39 }
 0x4c4   : > { %4614 = vrot.lane.b32.xlu1 %v4613_v55, %s7678_s27  ;;  %v4487_v17 = vunpack.i.h.bf16 %v6234_v29  ;;  %v1541_v55 = vsel %vm506_vm0, %v5648_v38, %v4447_v60  ;;  %v4486_v26 = vunpack.i.l.bf16 %v6234_v29  ;;  %v4476_v45 = vunpack.i.l.bf16 %v6236_v53 }
 0x4c5   : > { %4559 = vrot.lane.b32.xlu0 %v4558_v34, %s7678_s27  ;;  %v1627_v34 = vsel %vm564_vm4, %v4442_v51, %v4471_v15  ;;  %v1556_v51 = vsel %vm518_vm5, %v5652_v40, %v4421_v35  ;;  %v1628_v19 = vsel %vm564_vm4, %v4471_v15, %v5654_v41  ;;  %v1669_v15 = vld [vmem:[%s7577_s8 + $0x8] sm:$0xff] }
 0x4c6   : > { %v4573_v9 = vpack.i.bf16 %v1627_v34, %v1626_v20  ;;  %v4477_v20 = vunpack.i.h.bf16 %v6236_v53  ;;  %3555 = vmatprep.mubr.msk.f32.mxu1 %vm1349_vm10, %v1669_v15  ;;  %3553 = vmatprep.mubr.msk.f32.mxu0 %vm1349_vm10, %v1669_v15 }
 0x4c7   : > { %v6248_v54 = vpop.permute.xlu1 %4489  ;;  %v4480_v3 = vpop.permute.xlu0 %4479 }
 0x4c8   : > { %v4481_v33 = vunpack.i.l.bf16 %v4480_v3  ;;  %4624 = vrot.lane.b32.xlu1 %v4623_v16, %s7678_s27  ;;  %v4482_v8 = vunpack.i.h.bf16 %v4480_v3  ;;  %v4643_v3 = vpack.i.bf16 %v1541_v55, %v1538_v14  ;;  %v1577_v14 = vsel %vm530_vm1, %v5656_v42, %v4457_v61 }
 0x4c9   : > { %4564 = vrot.lane.b32.xlu0 %v4563_v49, %s7678_s27 }
 0x4ca   : > { %v4633_v10 = vpack.i.bf16 %v4487_v17, %v4481_v33  ;;  %v1645_v37 = vsel %vm576_vm3, %v4482_v8, %v4486_v26  ;;  %v1644_v27 = vsel %vm576_vm3, %v4481_v33, %v4482_v8  ;;  %v4648_v33 = vpack.i.bf16 %v1559_v30, %v1556_v51 }
 0x4cb   : > { %v6263_v46 = vpop.permute.xlu1 %4494  ;;  %v6265_v59 = vpop.permute.xlu0 %4499  ;;  %v4578_v8 = vpack.i.bf16 %v1645_v37, %v1644_v27  ;;  %v1574_v30 = vsel %vm530_vm1, %v5656_v42, %v4426_v7 }
 0x4cc   : > { %4634 = vrot.lane.b32.xlu1 %v4633_v10, %s7678_s27  ;;  %v4497_v10 = vunpack.i.h.bf16 %v6263_v46  ;;  %v4653_v51 = vpack.i.bf16 %v1577_v14, %v1574_v30  ;;  %v4588_v14 = vpack.i.bf16 %v4477_v20, %v4446_v1 }
 0x4cd   : > { %4569 = vrot.lane.b32.xlu0 %v4568_v63, %s7678_s27  ;;  %v7623_v63 = vunpack.i.l.bf16 %v6263_v46 }
 0x4cf   : > { %v6282_v16 = vpop.permute.xlu1 %4509  ;;  %v6284_v49 = vpop.permute.xlu0 %4504  ;;  %v1662_v53 = vsel %vm588_vm6, %v7623_v63, %v4497_v10 }
 0x4d0   : > { %v7622_v23 = vunpack.i.l.bf16 %v6284_v49  ;;  %4644 = vrot.lane.b32.xlu1 %v4643_v3, %s7678_s27  ;;  %v4491_v3 = vunpack.i.l.bf16 %v6248_v54  ;;  %v4507_v48 = vunpack.i.h.bf16 %v6284_v49  ;;  %v7679_v29 = vunpack.i.l.bf16 %v6284_v49  ;;  %v1672_v49 = vld [vmem:[%s7578_s9] sm:$0xff] }
 0x4d1   : > { %4574 = vrot.lane.b32.xlu0 %v4573_v9, %s7678_s27  ;;  %v4492_v9 = vunpack.i.h.bf16 %v6248_v54  ;;  %v4502_v54 = vunpack.i.h.bf16 %v6265_v59 }
 0x4d2   : > { %v1663_v35 = vsel %vm588_vm6, %v4497_v10, %v7622_v23  ;;  %v1560_v18 = vsel %vm518_vm5, %v4452_v6, %v4491_v3  ;;  %v4501_v10 = vunpack.i.l.bf16 %v6265_v59 }
 0x4d3   : > { %v6300_v55 = vpop.permute.xlu1 %4524  ;;  %v6302_v34 = vpop.permute.xlu0 %4514  ;;  %v4583_v23 = vpack.i.bf16 %v1663_v35, %v1662_v53  ;;  %v1561_v7 = vsel %vm518_vm5, %v4491_v3, %v4492_v9 }
 0x4d4   : > { %4649 = vrot.lane.b32.xlu1 %v4648_v33, %s7678_s27  ;;  %v1542_v33 = vsel %vm506_vm0, %v4447_v60, %v4476_v45  ;;  %v4663_v3 = vpack.i.bf16 %v1561_v7, %v1560_v18  ;;  %v1578_v59 = vsel %vm530_vm1, %v4457_v61, %v4501_v10  ;;  %v1579_v36 = vsel %vm530_vm1, %v4501_v10, %v4502_v54 }
 0x4d5   : > { %4579 = vrot.lane.b32.xlu0 %v4578_v8, %s7678_s27  ;;  %v1543_v8 = vsel %vm506_vm0, %v4476_v45, %v4477_v20  ;;  %v4526_v47 = vunpack.i.l.bf16 %v6300_v55 }
 0x4d6   : > { %v4658_v45 = vpack.i.bf16 %v1543_v8, %v1542_v33  ;;  %v4511_v33 = vunpack.i.l.bf16 %v6282_v16 }
 0x4d7   : > { %v6322_v37 = vpop.permute.xlu1 %4539  ;;  %v4520_v27 = vpop.permute.xlu0 %4519 }
 0x4d8   : > { %4654 = vrot.lane.b32.xlu1 %v4653_v51, %s7678_s27  ;;  %v4521_v63 = vunpack.i.l.bf16 %v4520_v27  ;;  %v4522_v35 = vunpack.i.h.bf16 %v4520_v27  ;;  %v4512_v27 = vunpack.i.h.bf16 %v6282_v16  ;;  %v1594_v16 = vsel %vm540_vm7, %v4462_v50, %v4511_v33 }
 0x4d9   : > { %4584 = vrot.lane.b32.xlu0 %v4583_v23, %s7678_s27  ;;  %v4593_v23 = vpack.i.bf16 %v4492_v9, %v4451_v52  ;;  %v4527_v50 = vunpack.i.h.bf16 %v6300_v55 }
 0x4da   : > { %v1824_v1 = vsel %vm678_vm9, %v5844_v0, %v4521_v63  ;;  %v1825_v13 = vsel %vm678_vm9, %v4521_v63, %v4522_v35  ;;  %v4598_v63 = vpack.i.bf16 %v4502_v54, %v4456_v58  ;;  %v4603_v54 = vpack.i.bf16 %v4512_v27, %v4461_v5 }
 0x4db   : > { %v4545_v60 = vpop.permute.xlu1 %4544  ;;  %v6334_v30 = vpop.permute.xlu0 %4529  ;;  %v1629_v5 = vsel %vm564_vm4, %v4472_v56, %v4526_v47  ;;  %v4542_v56 = vunpack.i.h.bf16 %v6322_v37 }
 0x4dc   : > { %v4547_v6 = vunpack.i.h.bf16 %v4545_v60  ;;  %v4546_v53 = vunpack.i.l.bf16 %v4545_v60  ;;  %4659 = vrot.lane.b32.xlu1 %v4658_v45, %s7678_s27  ;;  %v1595_v45 = vsel %vm540_vm7, %v4511_v33, %v4512_v27 }
 0x4dd   : > { %4589 = vrot.lane.b32.xlu0 %v4588_v14, %s7678_s27  ;;  %v4668_v14 = vpack.i.bf16 %v1579_v36, %v1578_v59  ;;  %v4673_v58 = vpack.i.bf16 %v1595_v45, %v1594_v16  ;;  %v4531_v59 = vunpack.i.l.bf16 %v6334_v30 }
 0x4de   : > { %v1827_v20 = vsel %vm678_vm9, %v5844_v0, %v4546_v53  ;;  %v1828_v52 = vsel %vm678_vm9, %v4546_v53, %v4547_v6  ;;  %v4517_v53 = vunpack.i.h.bf16 %v6302_v34 }
 0x4df   : > { %v4535_v51 = vpop.permute.xlu0 %4534  ;;  %v3730_v9 = vpack.c.bf16 %v1827_v20, %v1824_v1  ;;  %v3728_v18 = vpack.c.bf16 %v1828_v52, %v1825_v13  ;;  %v1631_v1 = vsel %vm564_vm4, %v4527_v50, %v5654_v41  ;;  %v4541_v20 = vunpack.i.l.bf16 %v6322_v37 }
 0x4e0   : > { %v4537_v8 = vunpack.i.h.bf16 %v4535_v51  ;;  %v4536_v61 = vunpack.i.l.bf16 %v4535_v51  ;;  %4664 = vrot.lane.b32.xlu1 %v4663_v3, %s7678_s27  ;;  %v4532_v3 = vunpack.i.h.bf16 %v6334_v30  ;;  %v1647_v30 = vsel %vm576_vm3, %v4487_v17, %v4531_v59 }
 0x4e1   : > { %4594 = vrot.lane.b32.xlu0 %v4593_v23, %s7678_s27  ;;  %3729 = vmatprep.subr.bf16.mxu0 %v3728_v18  ;;  %v4516_v23 = vunpack.i.l.bf16 %v6302_v34  ;;  %v4628_v51 = vpack.i.bf16 %v1631_v1, %v1628_v19  ;;  %v1646_v17 = vsel %vm576_vm3, %v4486_v26, %v5658_v43  ;;  %v1665_v52 = vsel %vm588_vm6, %v4507_v48, %v4541_v20 }
 0x4e2   : > { %v1829_v7 = vsel %vm678_vm9, %v4547_v6, %v4537_v8  ;;  %v1826_v10 = vsel %vm678_vm9, %v4522_v35, %v4536_v61  ;;  %3731 = vmatpush1.bf16.msra.mxu0 %v3730_v9  ;;  %v1613_v6 = vsel %vm552_vm2, %v4517_v53, %v5650_v39  ;;  %v1648_v27 = vsel %vm576_vm3, %v4531_v59, %v4532_v3 }
 0x4e3   : > { %v3765_v60 = vpack.c.bf16 %v1829_v7, %v1826_v10  ;;  %v1611_v35 = vsel %vm552_vm2, %v4467_v62, %v4516_v23  ;;  %v1612_v34 = vsel %vm552_vm2, %v4516_v23, %v4517_v53  ;;  %v1630_v62 = vsel %vm564_vm4, %v4526_v47, %v4527_v50 }
 0x4e4   : > { %4669 = vrot.lane.b32.xlu1 %v4668_v14, %s7678_s27  ;;  %v4678_v55 = vpack.i.bf16 %v1612_v34, %v1611_v35  ;;  %v4618_v36 = vpack.i.bf16 %v1613_v6, %v1610_v57  ;;  %v4683_v44 = vpack.i.bf16 %v1630_v62, %v1629_v5  ;;  %v1649_v13 = vsel %vm576_vm3, %v4532_v3, %v5658_v43 }
 0x4e5   : > { %3766 = vmatpush1.bf16.msra.mxu1 %v3765_v60  ;;  %4599 = vrot.lane.b32.xlu0 %v4598_v63, %s7678_s27  ;;  %v4688_v37 = vpack.i.bf16 %v1648_v27, %v1647_v30  ;;  %v1666_v9 = vsel %vm588_vm6, %v4541_v20, %v4542_v56  ;;  %v4638_v33 = vpack.i.bf16 %v1649_v13, %v1646_v17  ;;  %v7680_v7 = vunpack.i.l.bf16 %v6263_v46  ;;  %v1673_v63 = vld [vmem:[%s7578_s9 + $0x8] sm:$0xff] }
 0x4e6   : > { %3767 = vmatprep.subr.bf16.mxu1 %v7677_v28  ;;  %v1667_v8 = vsel %vm588_vm6, %v4542_v56, %v5819_v11  ;;  %v1664_v26 = vsel %vm588_vm6, %v7679_v29, %v5819_v11  ;;  %v4693_v61 = vpack.i.bf16 %v1666_v9, %v1665_v52 }
 0x4e7   : > { %v4703_v18 = vpack.i.bf16 %v1667_v8, %v1664_v26  ;;  %v4698_v10 = vpack.i.bf16 %v4507_v48, %v7680_v7 }
 0x4e8   : > { %4674 = vrot.lane.b32.xlu1 %v4673_v58, %s7678_s27 }
 0x4e9   : > { %4604 = vrot.lane.b32.xlu0 %v4603_v54, %s7678_s27 }
 0x4ec   : > { %4679 = vrot.lane.b32.xlu1 %v4678_v55, %s7678_s27 }
 0x4ed   : > { %4619 = vrot.lane.b32.xlu0 %v4618_v36, %s7678_s27 }
 0x4f0   : > { %4684 = vrot.lane.b32.xlu1 %v4683_v44, %s7678_s27 }
 0x4f1   : > { %4629 = vrot.lane.b32.xlu0 %v4628_v51, %s7678_s27 }
 0x4f4   : > { %4689 = vrot.lane.b32.xlu1 %v4688_v37, %s7678_s27 }
 0x4f5   : > { %4639 = vrot.lane.b32.xlu0 %v4638_v33, %s7678_s27 }
 0x4f8   : > { %4694 = vrot.lane.b32.xlu1 %v4693_v61, %s7678_s27 }
 0x4f9   : > { %4704 = vrot.lane.b32.xlu0 %v4703_v18, %s7678_s27 }
 0x4fc   : > { %4699 = vrot.lane.b32.xlu1 %v4698_v10, %s7678_s27 }
 0x4fd   : > { %1681 = vperm.xlu0 %4116, %v1673_v63  }
 0x500   : > { %1676 = vperm.xlu1 %4117, %v1672_v49  }
 0x52f   : > { %v4550_v14 = vpop.permute.xlu0 %4549 }
 0x530   : > { %v4552_v6 = vunpack.i.h.bf16 %v4550_v14  ;;  %v4551_v57 = vunpack.i.l.bf16 %v4550_v14 }
 0x532   : > { %v6436_v60 = vpop.permute.xlu1 %4609  ;;  %v1831_v44 = vsel %vm678_vm9, %v4551_v57, %v4552_v6 }
 0x533   : > { %v4555_v16 = vpop.permute.xlu0 %4554  ;;  %v4612_v36 = vunpack.i.h.bf16 %v6436_v60  ;;  %v4611_v13 = vunpack.i.l.bf16 %v6436_v60 }
 0x534   : > { %v4557_v62 = vunpack.i.h.bf16 %v4555_v16  ;;  %v4556_v3 = vunpack.i.l.bf16 %v4555_v16 }
 0x536   : > { %v6438_v45 = vpop.permute.xlu1 %4614  ;;  %v1837_v17 = vsel %vm678_vm9, %v4556_v3, %v4557_v62 }
 0x537   : > { %v6440_v46 = vpop.permute.xlu0 %4559 }
 0x538   : > { %v4562_v16 = vunpack.i.h.bf16 %v6440_v46 }
 0x53a   : > { %v6442_v53 = vpop.permute.xlu1 %4624 }
 0x53b   : > { %v6444_v23 = vpop.permute.xlu0 %4564 }
 0x53e   : > { %v6446_v47 = vpop.permute.xlu1 %4634 }
 0x53f   : > { %v6448_v58 = vpop.permute.xlu0 %4569 }
 0x542   : > { %v4645_v54 = vpop.permute.xlu1 %4644 }
 0x543   : > { %v6450_v50 = vpop.permute.xlu0 %4574  ;;  %v4646_v59 = vunpack.i.l.bf16 %v4645_v54  ;;  %v4647_v1 = vunpack.i.h.bf16 %v4645_v54  ;;  %v4561_v54 = vunpack.i.l.bf16 %v6440_v46 }
 0x545   : > { %v1830_v48 = vsel %vm678_vm9, %v4646_v59, %v4551_v57 }
 0x546   : > { %v4650_v35 = vpop.permute.xlu1 %4649 }
 0x547   : > { %v6452_v34 = vpop.permute.xlu0 %4579  ;;  %v4651_v15 = vunpack.i.l.bf16 %v4650_v35  ;;  %v4652_v8 = vunpack.i.h.bf16 %v4650_v35 }
 0x54a   : > { %v6454_v5 = vpop.permute.xlu1 %4654 }
 0x54b   : > { %v6456_v55 = vpop.permute.xlu0 %4584  ;;  %v4656_v57 = vunpack.i.l.bf16 %v6454_v5 }
 0x54e   : > { %v4660_v19 = vpop.permute.xlu1 %4659 }
 0x54f   : > { %v4590_v56 = vpop.permute.xlu0 %4589  ;;  %v4662_v20 = vunpack.i.h.bf16 %v4660_v19  ;;  %v4661_v30 = vunpack.i.l.bf16 %v4660_v19 }
 0x550   : > { %v4592_v27 = vunpack.i.h.bf16 %v4590_v56  ;;  %v4591_v51 = vunpack.i.l.bf16 %v4590_v56  ;;  %v4617_v56 = vunpack.i.h.bf16 %v6438_v45 }
 0x551   : > { %v1833_v37 = vsel %vm678_vm9, %v4647_v1, %v4661_v30  ;;  %v1834_v33 = vsel %vm678_vm9, %v4661_v30, %v4662_v20  ;;  %v4616_v30 = vunpack.i.l.bf16 %v6438_v45 }
 0x552   : > { %v1832_v52 = vsel %vm678_vm9, %v4552_v6, %v4591_v51  ;;  %v1835_v9 = vsel %vm678_vm9, %v4662_v20, %v4592_v27  ;;  %v4665_v29 = vpop.permute.xlu1 %4664  ;;  %v3732_v61 = vpack.c.bf16 %v1834_v33, %v1831_v44  ;;  %v3734_v18 = vpack.c.bf16 %v1833_v37, %v1830_v48 }
 0x553   : > { %v4595_v26 = vpop.permute.xlu0 %4594  ;;  %v3768_v7 = vpack.c.bf16 %v1835_v9, %v1832_v52  ;;  %v4667_v10 = vunpack.i.h.bf16 %v4665_v29  ;;  %v4666_v63 = vunpack.i.l.bf16 %v4665_v29  ;;  %v1836_v6 = vsel %vm678_vm9, %v4651_v15, %v4556_v3 }
 0x554   : > { %v4597_v49 = vunpack.i.h.bf16 %v4595_v26  ;;  %v4596_v14 = vunpack.i.l.bf16 %v4595_v26  ;;  %3733 = vmatprep.subr.bf16.mxu0 %v3732_v61  ;;  %v4657_v27 = vunpack.i.h.bf16 %v6454_v5  ;;  %v4566_v15 = vunpack.i.l.bf16 %v6444_v23 }
 0x555   : > { %3769 = vmatpush1.bf16.msra.mxu1 %v3768_v7  ;;  %v1839_v35 = vsel %vm678_vm9, %v4652_v8, %v4666_v63  ;;  %3735 = vmatpush1.bf16.msra.mxu0 %v3734_v18  ;;  %v1840_v19 = vsel %vm678_vm9, %v4666_v63, %v4667_v10  ;;  %v1843_v9 = vsel %vm678_vm9, %v4561_v54, %v4562_v16  ;;  %v4627_v7 = vunpack.i.h.bf16 %v6442_v53 }
 0x556   : > { %v1838_v59 = vsel %vm678_vm9, %v4557_v62, %v4596_v14  ;;  %v1841_v1 = vsel %vm678_vm9, %v4667_v10, %v4597_v49  ;;  %v4670_v44 = vpop.permute.xlu1 %4669  ;;  %v3736_v20 = vpack.c.bf16 %v1840_v19, %v1837_v17  ;;  %3770 = vmatprep.subr.bf16.mxu1 %v7677_v28  ;;  %v3738_v46 = vpack.c.bf16 %v1839_v35, %v1836_v6 }
 0x557   : > { %v3771_v3 = vpack.c.bf16 %v1841_v1, %v1838_v59  ;;  %v4672_v51 = vunpack.i.h.bf16 %v4670_v44  ;;  %v4671_v48 = vunpack.i.l.bf16 %v4670_v44  ;;  %v4600_v62 = vpop.permute.xlu0 %4599  ;;  %v4567_v17 = vunpack.i.h.bf16 %v6444_v23 }
 0x558   : > { %v4602_v37 = vunpack.i.h.bf16 %v4600_v62  ;;  %v4601_v52 = vunpack.i.l.bf16 %v4600_v62  ;;  %3737 = vmatprep.subr.bf16.mxu0 %v3736_v20  ;;  %v1842_v33 = vsel %vm678_vm9, %v4656_v57, %v4561_v54  ;;  %v1848_v14 = vsel %vm678_vm9, %v4611_v13, %v4566_v15 }
 0x559   : > { %3772 = vmatpush1.bf16.msra.mxu1 %v3771_v3  ;;  %v1845_v8 = vsel %vm678_vm9, %v4657_v27, %v4671_v48  ;;  %3739 = vmatpush1.bf16.msra.mxu0 %v3738_v46  ;;  %v1846_v45 = vsel %vm678_vm9, %v4671_v48, %v4672_v51  ;;  %v4571_v54 = vunpack.i.l.bf16 %v6448_v58  ;;  %v1849_v59 = vsel %vm678_vm9, %v4566_v15, %v4567_v17 }
 0x55a   : > { %3773 = vmatprep.subr.bf16.mxu1 %v7677_v28  ;;  %v1844_v5 = vsel %vm678_vm9, %v4562_v16, %v4601_v52  ;;  %v1847_v29 = vsel %vm678_vm9, %v4672_v51, %v4602_v37  ;;  %v4675_v26 = vpop.permute.xlu1 %4674  ;;  %v3740_v61 = vpack.c.bf16 %v1846_v45, %v1843_v9  ;;  %v3742_v18 = vpack.c.bf16 %v1845_v8, %v1842_v33 }
 0x55b   : > { %v4677_v10 = vunpack.i.h.bf16 %v4675_v26  ;;  %v4676_v23 = vunpack.i.l.bf16 %v4675_v26  ;;  %v4605_v63 = vpop.permute.xlu0 %4604  ;;  %v3774_v49 = vpack.c.bf16 %v1847_v29, %v1844_v5  ;;  %v4572_v16 = vunpack.i.h.bf16 %v6448_v58 }
 0x55c   : > { %v4607_v6 = vunpack.i.h.bf16 %v4605_v63  ;;  %v4606_v57 = vunpack.i.l.bf16 %v4605_v63  ;;  %3741 = vmatprep.subr.bf16.mxu0 %v3740_v61  ;;  %v4576_v58 = vunpack.i.l.bf16 %v6450_v50  ;;  %v4626_v51 = vunpack.i.l.bf16 %v6442_v53 }
 0x55d   : > { %v1851_v35 = vsel %vm678_vm9, %v4612_v36, %v4676_v23  ;;  %3743 = vmatpush1.bf16.msra.mxu0 %v3742_v18  ;;  %3775 = vmatpush1.bf16.msra.mxu1 %v3774_v49  ;;  %v1852_v1 = vsel %vm678_vm9, %v4676_v23, %v4677_v10  ;;  %v1854_v48 = vsel %vm678_vm9, %v4616_v30, %v4571_v54  ;;  %v4577_v37 = vunpack.i.h.bf16 %v6450_v50 }
 0x55e   : > { %v1850_v19 = vsel %vm678_vm9, %v4567_v17, %v4606_v57  ;;  %v1853_v13 = vsel %vm678_vm9, %v4677_v10, %v4607_v6  ;;  %v4680_v44 = vpop.permute.xlu1 %4679  ;;  %v3744_v20 = vpack.c.bf16 %v1852_v1, %v1849_v59  ;;  %3776 = vmatprep.subr.bf16.mxu1 %v7677_v28  ;;  %v3746_v46 = vpack.c.bf16 %v1851_v35, %v1848_v14 }
 0x55f   : > { %v4682_v60 = vunpack.i.h.bf16 %v4680_v44  ;;  %v4681_v3 = vunpack.i.l.bf16 %v4680_v44  ;;  %v4620_v36 = vpop.permute.xlu0 %4619  ;;  %v3777_v27 = vpack.c.bf16 %v1853_v13, %v1850_v19  ;;  %v1855_v9 = vsel %vm678_vm9, %v4571_v54, %v4572_v16 }
 0x560   : > { %v4622_v62 = vunpack.i.h.bf16 %v4620_v36  ;;  %v4621_v15 = vunpack.i.l.bf16 %v4620_v36  ;;  %3745 = vmatprep.subr.bf16.mxu0 %v3744_v20  ;;  %v1860_v5 = vsel %vm678_vm9, %v4626_v51, %v4576_v58  ;;  %v4582_v61 = vunpack.i.h.bf16 %v6452_v34 }
 0x561   : > { %v1857_v52 = vsel %vm678_vm9, %v4617_v56, %v4681_v3  ;;  %3747 = vmatpush1.bf16.msra.mxu0 %v3746_v46  ;;  %3778 = vmatpush1.bf16.msra.mxu1 %v3777_v27  ;;  %v1858_v17 = vsel %vm678_vm9, %v4681_v3, %v4682_v60  ;;  %v4581_v18 = vunpack.i.l.bf16 %v6452_v34  ;;  %v4636_v63 = vunpack.i.l.bf16 %v6446_v47 }
 0x562   : > { %v1856_v33 = vsel %vm678_vm9, %v4572_v16, %v4621_v15  ;;  %v1859_v8 = vsel %vm678_vm9, %v4682_v60, %v4622_v62  ;;  %v4685_v53 = vpop.permute.xlu1 %4684  ;;  %v3748_v45 = vpack.c.bf16 %v1858_v17, %v1855_v9  ;;  %3779 = vmatprep.subr.bf16.mxu1 %v7677_v28  ;;  %v3750_v30 = vpack.c.bf16 %v1857_v52, %v1854_v48 }
 0x563   : > { %v4687_v50 = vunpack.i.h.bf16 %v4685_v53  ;;  %v4686_v29 = vunpack.i.l.bf16 %v4685_v53  ;;  %v4630_v56 = vpop.permute.xlu0 %4629  ;;  %v3780_v26 = vpack.c.bf16 %v1859_v8, %v1856_v33  ;;  %v1861_v14 = vsel %vm678_vm9, %v4576_v58, %v4577_v37  ;;  %v2109_v33 = vld [vmem:[%s7571_s2 + $0x28] sm:$0xff] }
 0x564   : > { %v4632_v10 = vunpack.i.h.bf16 %v4630_v56  ;;  %v4631_v23 = vunpack.i.l.bf16 %v4630_v56  ;;  %3749 = vmatprep.subr.bf16.mxu0 %v3748_v45  ;;  %v4637_v59 = vunpack.i.h.bf16 %v6446_v47  ;;  %v1866_v44 = vsel %vm678_vm9, %v4636_v63, %v4581_v18  ;;  %v2108_v63 = vld [vmem:[%s7571_s2 + $0x20] sm:$0xff] }
 0x565   : > { %v1863_v49 = vsel %vm678_vm9, %v4627_v7, %v4686_v29  ;;  %3751 = vmatpush1.bf16.msra.mxu0 %v3750_v30  ;;  %3781 = vmatpush1.bf16.msra.mxu1 %v3780_v26  ;;  %v1864_v54 = vsel %vm678_vm9, %v4686_v29, %v4687_v50  ;;  %v1867_v58 = vsel %vm678_vm9, %v4581_v18, %v4582_v61  ;;  %v4587_v60 = vunpack.i.h.bf16 %v6456_v55 }
 0x566   : > { %v1862_v6 = vsel %vm678_vm9, %v4577_v37, %v4631_v23  ;;  %v1865_v57 = vsel %vm678_vm9, %v4687_v50, %v4632_v10  ;;  %v4690_v16 = vpop.permute.xlu1 %4689  ;;  %v3752_v35 = vpack.c.bf16 %v1864_v54, %v1861_v14  ;;  %3782 = vmatprep.subr.bf16.mxu1 %v7677_v28  ;;  %v3754_v34 = vpack.c.bf16 %v1863_v49, %v1860_v5  ;;  %v2112_v49 = vld [vmem:[%s7571_s2 + $0x40] sm:$0xff]  ;;  %v2115_v14 = vld [vmem:[%s7571_s2 + $0x58] sm:$0xff] }
 0x567   : > { %v4692_v1 = vunpack.i.h.bf16 %v4690_v16  ;;  %v4691_v19 = vunpack.i.l.bf16 %v4690_v16  ;;  %v4640_v7 = vpop.permute.xlu0 %4639  ;;  %v3783_v13 = vpack.c.bf16 %v1865_v57, %v1862_v6  ;;  %v4586_v3 = vunpack.i.l.bf16 %v6456_v55  ;;  %v2106_v55 = vld [vmem:[%s7571_s2 + $0x10] sm:$0xff]  ;;  %v1668_v57 = vld [vmem:[%s7577_s8] sm:$0xff] }
 0x568   : > { %v4642_v20 = vunpack.i.h.bf16 %v4640_v7  ;;  %v4641_v46 = vunpack.i.l.bf16 %v4640_v7  ;;  %3753 = vmatprep.subr.bf16.mxu0 %v3752_v35  ;;  %v3807_v26 = vpack.c.bf16 %v2109_v33, %v2106_v55  ;;  %v2104_v16 = vld [vmem:[%s7571_s2] sm:$0xff]  ;;  %v2107_v35 = vld [vmem:[%s7571_s2 + $0x18] sm:$0xff] }
 0x569   : > { %v1869_v36 = vsel %vm678_vm9, %v4637_v59, %v4691_v19  ;;  %3755 = vmatpush1.bf16.msra.mxu0 %v3754_v34  ;;  %3784 = vmatpush1.bf16.msra.mxu1 %v3783_v13  ;;  %v1870_v47 = vsel %vm678_vm9, %v4691_v19, %v4692_v1  ;;  %v1873_v45 = vsel %vm678_vm9, %v4586_v3, %v4587_v60  ;;  %v1671_v59 = vld [vmem:[%s7577_s8 + $0x18] sm:$0xff]  ;;  %v2114_v13 = vld [vmem:[%s7571_s2 + $0x50] sm:$0xff] }
 0x56a   : > { %v1868_v27 = vsel %vm678_vm9, %v4582_v61, %v4641_v46  ;;  %v1871_v51 = vsel %vm678_vm9, %v4692_v1, %v4642_v20  ;;  %v4695_v48 = vpop.permute.xlu1 %4694  ;;  %v3756_v62 = vpack.c.bf16 %v1870_v47, %v1867_v58  ;;  %3785 = vmatprep.subr.bf16.mxu1 %v7677_v28  ;;  %v3758_v15 = vpack.c.bf16 %v1869_v36, %v1866_v44  ;;  %v2105_v61 = vld [vmem:[%s7571_s2 + $0x8] sm:$0xff]  ;;  %v2111_v7 = vld [vmem:[%s7571_s2 + $0x38] sm:$0xff]  ;;  %v2118_v44 = vld [vmem:[%s7571_s2 + $0x70] sm:$0xff] }
 0x56b   : > { %v4697_v37 = vunpack.i.h.bf16 %v4695_v48  ;;  %v4696_v52 = vunpack.i.l.bf16 %v4695_v48  ;;  %v4705_v9 = vpop.permute.xlu0 %4704  ;;  %v3786_v17 = vpack.c.bf16 %v1871_v51, %v1868_v27  ;;  %v3791_v1 = vpack.c.bf16 %v2108_v63, %v2105_v61  ;;  %v2121_v20 = vld [vmem:[%s7571_s2 + $0x88] sm:$0xff]  ;;  %v1670_v58 = vld [vmem:[%s7577_s8 + $0x10] sm:$0xff]  ;;  %v2120_v51 = vld [vmem:[%s7571_s2 + $0x80] sm:$0xff] }
 0x56c   : > { %v4707_v8 = vunpack.i.h.bf16 %v4705_v9  ;;  %v4706_v53 = vunpack.i.l.bf16 %v4705_v9  ;;  %3757 = vmatprep.subr.bf16.mxu0 %v3756_v62  ;;  %v3811_v19 = vpack.c.bf16 %v2115_v14, %v2112_v49  ;;  %v3793_v46 = vpack.c.bf16 %v2107_v35, %v2104_v16  ;;  %v2117_v27 = vld [vmem:[%s7571_s2 + $0x68] sm:$0xff]  ;;  %v2124_v48 = vld [vmem:[%s7571_s2 + $0xa0] sm:$0xff]  ;;  %v2127_v62 = vld [vmem:[%s7571_s2 + $0xb8] sm:$0xff] }
 0x56d   : > { %3759 = vmatpush1.bf16.msra.mxu0 %v3758_v15  ;;  %3787 = vmatpush1.bf16.msra.mxu1 %v3786_v17  ;;  %v1876_v30 = vsel %vm678_vm9, %v4696_v52, %v4697_v37  ;;  %v3795_v36 = vpack.c.bf16 %v2114_v13, %v2111_v7  ;;  %v3815_v47 = vpack.c.bf16 %v2121_v20, %v2118_v44  ;;  %v2116_v9 = vld [vmem:[%s7571_s2 + $0x60] sm:$0xff]  ;;  %v2119_v17 = vld [vmem:[%s7571_s2 + $0x78] sm:$0xff] }
 0x56e   : > { %v1874_v5 = vsel %vm678_vm9, %v4587_v60, %v4706_v53  ;;  %v1877_v50 = vsel %vm678_vm9, %v4697_v37, %v4707_v8  ;;  %v4700_v29 = vpop.permute.xlu1 %4699  ;;  %v3760_v56 = vpack.c.bf16 %v1876_v30, %v1873_v45  ;;  %3788 = vmatprep.subr.bf16.mxu1 %v7677_v28  ;;  %v2110_v60 = vld [vmem:[%s7571_s2 + $0x30] sm:$0xff]  ;;  %v2102_v37 = vld [vmem:[%s6595_s26] sm:$0xff]  ;;  %v3819_v55 = vpack.c.bf16 %v2127_v62, %v2124_v48  ;;  %v2123_v33 = vld [vmem:[%s7571_s2 + $0x98] sm:$0xff] }
 0x56f   : > { %v4702_v18 = vunpack.i.h.bf16 %v4700_v29  ;;  %v4701_v10 = vunpack.i.l.bf16 %v4700_v29  ;;  %v3789_v23 = vpack.c.bf16 %v1877_v50, %v1874_v5  ;;  %v2126_v8 = vld [vmem:[%s7571_s2 + $0xb0] sm:$0xff]  ;;  %v3801_v53 = vpack.c.bf16 %v2119_v17, %v2116_v9  ;;  %v2125_v50 = vld [vmem:[%s7571_s2 + $0xa8] sm:$0xff] }
 0x570   : > { %3761 = vmatprep.subr.bf16.mxu0 %v3760_v56  ;;  %v7681_v45 = vmov 0.0   ;;  %v3803_v30 = vpack.c.bf16 %v2126_v8, %v2123_v33  ;;  %v2122_v5 = vld [vmem:[%s7571_s2 + $0x90] sm:$0xff]  ;;  %v2103_v56 = vld [vmem:[%s6595_s26 + $0x8] sm:$0xff]  ;;  %s7682_s26 = smov 109  }
 0x571   : > { %v1872_v54 = vsel %vm678_vm9, %v4701_v10, %v4586_v3  ;;  %v1875_v6 = vsel %vm678_vm9, %v4702_v18, %v4696_v52  ;;  %3790 = vmatpush1.bf16.msra.mxu1 %v3789_v23  ;;  %v2113_v3 = vld [vmem:[%s7571_s2 + $0x48] sm:$0xff]  ;;  %v3799_v52 = vpack.c.bf16 %v2120_v51, %v2117_v27  ;;  %v3805_v29 = vpack.c.bf16 %v2125_v50, %v2122_v5 }
 0x572   : > { %v3762_v34 = vpack.c.bf16 %v1875_v6, %v1872_v54  ;;  %3808 = vmatprep.subr.bf16.mxu1 %v3807_v26  ;;  %v3797_v15 = vpack.c.bf16 %v2113_v3, %v2110_v60 }
 0x574   : > { %3763 = vmatpush1.bf16.msra.mxu0 %v3762_v34  ;;  %2080 = vmatmul.mubr.f32.vlgmr.msra.gmra.mrb[6].mxu1 %v1668_v57 }
 0x575   : > { %3810 = vmatpush3.bf16.msra.mxu1 %v3807_v26  ;;  %3556 = vmatprep.mubr.msk.f32.mxu1 %vm1349_vm10, %v1671_v59 }
 0x576   : > { %3792 = vmatprep.subr.bf16.mxu0 %v3791_v1  ;;  %3812 = vmatprep.subr.bf16.mxu1 %v3811_v19 }
 0x577   : > { %2003 = vmatmul.mubr.f32.vlgmr.msra.gmra.mrb[8].mxu0 %v1668_v57 }
 0x578   : > { %2085 = vmatmul.mubr.f32.gmra.mrb[8].mxu1 %v1670_v58  ;;  %3794 = vmatpush1.bf16.msra.mxu0 %v3793_v46 }
 0x579   : > { %3814 = vmatpush3.bf16.msra.mxu1 %v3811_v19  ;;  %3554 = vmatprep.mubr.msk.f32.mxu0 %vm1349_vm10, %v1671_v59 }
 0x57a   : > { %3796 = vmatprep.subr.bf16.mxu0 %v3795_v36  ;;  %3816 = vmatprep.subr.bf16.mxu1 %v3815_v47 }
 0x57b   : > { %2009 = vmatmul.mubr.f32.gmra.mrb[10].mxu0 %v1670_v58  ;;  %3630 = vmatprep.mubr.msk.f32.mxu1 %vm2128_vm11, %v2102_v37 }
 0x57c   : > { %3798 = vmatpush1.bf16.msra.mxu0 %v3797_v15  ;;  %2199 = vmatprep.mubr.f32.mxu0 %v7681_v45  ;;  %v1682_v49 = vpop.permute.xlu0 %1681 }
 0x57d   : > { %3818 = vmatpush3.bf16.msra.mxu1 %v3815_v47  ;;  %3800 = vmatprep.subr.bf16.mxu0 %v3799_v52 }
 0x57e   : > { %3820 = vmatprep.subr.bf16.mxu1 %v3819_v55 }
 0x57f   : > { %v1677_v14 = vpop.permute.xlu1 %1676 }
 0x580   : > { %3802 = vmatpush1.bf16.msra.mxu0 %v3801_v53 }
 0x581   : > { %3822 = vmatpush3.bf16.msra.mxu1 %v3819_v55  ;;  %3804 = vmatprep.subr.bf16.mxu0 %v3803_v30 }
 0x582   : > { %3859 = vmatprep.subr.bf16.mxu1 %v7677_v28 }
 0x584   : > { %3806 = vmatpush1.bf16.msra.mxu0 %v3805_v29  ;;  %3631 = vmatmul.mubr.msk.f32.vlgmr.msra.gmra.mrb[10].mxu1 %vm2128_vm11, %v2103_v56 }
 0x587   : > { %3557 = vmatmul.mubr.msk.f32.vlgmr.msra.gmra.mrb[12].mxu0 %vm2128_vm11, %v2102_v37 }
 0x588   : > { %2205 = vmatprep.mubr.f32.mxu0 %v7681_v45 }
 0x58b   : > { %3558 = vmatmul.mubr.msk.f32.gmra.mrb[14].mxu0 %vm2128_vm11, %v2103_v56 }
 0x647   : > { %v2081_v26 = vpop.f32.mrb[6].mxu1 }
 0x648   : > { %v2083_v61 = vpop.f32.mrb[7].mxu1  ;;  %v2082_v57 = vadd.f32 %v2081_v26, %v1677_v14 }
 0x64a   : > { %v2004_v18 = vpop.f32.mrb[8].mxu0  ;;  %v2092_v1 = vmul.f32 %v2082_v57, %v5602_v21 }
 0x64b   : > { %v2006_v10 = vpop.f32.mrb[9].mxu0  ;;  %v2086_v23 = vpop.f32.mrb[8].mxu1  ;;  %v2005_v35 = vadd.f32 %v2004_v18, %v1677_v14 }
 0x64c   : > { %v2088_v63 = vpop.f32.mrb[9].mxu1  ;;  %v2087_v54 = vadd.f32 %v2086_v23, %v1682_v49  ;;  %v2007_v34 = vadd.f32 %v2006_v10, %v1677_v14  ;;  %v2098_v58 = vadd.f32 %v2092_v1, %v5610_v25 }
 0x64d   : > { %v2090_v19 = vmul.f32 %v2005_v35, %v5588_v4 }
 0x64e   : > { %v2010_v6 = vpop.f32.mrb[10].mxu0  ;;  %v2095_v59 = vmul.f32 %v2087_v54, %v5602_v21  ;;  %v2091_v13 = vmul.f32 %v2007_v34, %v5590_v24 }
 0x64f   : > { %v2012_v16 = vpop.f32.mrb[11].mxu0  ;;  %v2011_v7 = vadd.f32 %v2010_v6, %v1682_v49  ;;  %v2096_v27 = vadd.f32 %v2090_v19, %v5593_v2 }
 0x650   : > { %v2013_v44 = vadd.f32 %v2012_v16, %v1682_v49  ;;  %v2101_v20 = vadd.f32 %v2095_v59, %v5621_v31  ;;  %v2097_v62 = vadd.f32 %v2091_v13, %v5596_v12 }
 0x651   : > { %v2093_v36 = vmul.f32 %v2011_v7, %v5588_v4 }
 0x652   : > { %v2094_v51 = vmul.f32 %v2013_v44, %v5590_v24 }
 0x653   : > { %v2099_v52 = vadd.f32 %v2093_v36, %v5607_v22 }
 0x654   : > { %v2100_v55 = vadd.f32 %v2094_v51, %v5624_v32 }
 0x657   : > { %v3632_v46 = vpop.f32.mrb[10].mxu1 }
 0x658   : > { %v6643_v60 = vadd.f32 %v3632_v46, %v2101_v20  ;;  %v2278_v3 = vpop.f32.mrb[11].mxu1 }
 0x659   : > { %v6646_v47 = vadd.f32 %v2278_v3, %v2098_v58 }
 0x65a   : > { %v2201_v48 = vpop.f32.mrb[12].mxu0  ;;  %v2298_v30 = vmax.f32 %v6643_v60, 0.0 }
 0x65b   : > { %v6651_v15 = vadd.f32 %v2201_v48, %v2096_v27  ;;  %v2203_v31 = vpop.f32.mrb[13].mxu0  ;;  %v2295_v53 = vmax.f32 %v6646_v47, 0.0 }
 0x65c   : > { %v6653_v37 = vadd.f32 %v2203_v31, %v2097_v62 }
 0x65d   : > { %v2293_v25 = vmax.f32 %v6651_v15, 0.0  ;;  %v4828_v29 = vpack.i.bf16 %v2298_v30, %v2295_v53 }
 0x65e   : > { %v2294_v9 = vmax.f32 %v6653_v37, 0.0  ;;  %v2207_v17 = vpop.f32.mrb[14].mxu0 }
 0x65f   : > { %v6659_v2 = vadd.f32 %v2207_v17, %v2099_v52  ;;  %v2209_v33 = vpop.f32.mrb[15].mxu0 }
 0x660   : > { %v6661_v8 = vadd.f32 %v2209_v33, %v2100_v55  ;;  %v4713_v12 = vpack.i.bf16 %v2294_v9, %v2293_v25 }
 0x661   : > { %v2296_v22 = vmax.f32 %v6659_v2, 0.0 }
 0x662   : > { %4714 = vrot.lane.b32.xlu0 %v4713_v12, %s5306_s19  ;;  %4709 = vrot.lane.b32.xlu1 %v4713_v12, %s7643_s20  ;;  %v2297_v45 = vmax.f32 %v6661_v8, 0.0 }
 0x663   : > { %v4738_v32 = vpack.i.bf16 %v2296_v22, %v2295_v53 }
 0x664   : > { %v4768_v5 = vpack.i.bf16 %v2298_v30, %v2297_v45  ;;  %v4838_v50 = vpack.i.bf16 %v2297_v45, %v2296_v22 }
 0x666   : > { %4724 = vrot.lane.b32.xlu0 %v4713_v12, %s7682_s26  ;;  %4719 = vrot.lane.b32.xlu1 %v4713_v12, %s7683_s28 }
 0x66a   : > { %4734 = vrot.lane.b32.xlu0 %v4713_v12, %s7684_s21  ;;  %4729 = vrot.lane.b32.xlu1 %v4713_v12, %s7685_s24 }
 0x66e   : > { %4739 = vrot.lane.b32.xlu0 %v4738_v32, %s7643_s20  ;;  %4744 = vrot.lane.b32.xlu1 %v4738_v32, %s5306_s19 }
 0x672   : > { %4749 = vrot.lane.b32.xlu0 %v4738_v32, %s7683_s28  ;;  %4754 = vrot.lane.b32.xlu1 %v4738_v32, %s7682_s26 }
 0x676   : > { %4759 = vrot.lane.b32.xlu0 %v4738_v32, %s7685_s24  ;;  %4764 = vrot.lane.b32.xlu1 %v4738_v32, %s7684_s21 }
 0x67a   : > { %4779 = vrot.lane.b32.xlu0 %v4738_v32, %s7686_s23  ;;  %4769 = vrot.lane.b32.xlu1 %v4768_v5, %s7643_s20  ;;  %s7695_s20 = smov 127  }
 0x67e   : > { %4784 = vrot.lane.b32.xlu0 %v4768_v5, %s5306_s19  ;;  %4774 = vrot.lane.b32.xlu1 %v4713_v12, %s7686_s23 }
 0x682   : > { %4789 = vrot.lane.b32.xlu0 %v4713_v12, %s7687_s25  ;;  %4794 = vrot.lane.b32.xlu1 %v4768_v5, %s7683_s28 }
 0x686   : > { %4804 = vrot.lane.b32.xlu0 %v4768_v5, %s7682_s26  ;;  %4799 = vrot.lane.b32.xlu1 %v4738_v32, %s7687_s25 }
 0x68a   : > { %4819 = vrot.lane.b32.xlu0 %v4768_v5, %s7684_s21  ;;  %4809 = vrot.lane.b32.xlu1 %v4768_v5, %s7685_s24 }
 0x68e   : > { %4834 = vrot.lane.b32.xlu0 %v4768_v5, %s7687_s25  ;;  %4814 = vrot.lane.b32.xlu1 %v4713_v12, %s7678_s27 }
 0x692   : > { %4839 = vrot.lane.b32.xlu0 %v4838_v50, %s7678_s27  ;;  %4824 = vrot.lane.b32.xlu1 %v4768_v5, %s7686_s23 }
 0x696   : > { %4829 = vrot.lane.b32.xlu1 %v4828_v29, %s7678_s27 }
 0x6d4   : > { %v6694_v56 = vpop.permute.xlu0 %4714  ;;  %v6696_v26 = vpop.permute.xlu1 %4709 }
 0x6d5   : > { %v4712_v63 = vunpack.i.h.bf16 %v6696_v26  ;;  %v4711_v49 = vunpack.i.l.bf16 %v6696_v26  ;;  %v4717_v16 = vunpack.i.h.bf16 %v6694_v56  ;;  %v4716_v35 = vunpack.i.l.bf16 %v6694_v56 }
 0x6d7   : > { %v2318_v34 = vsel %vm506_vm0, %v4711_v49, %v4712_v63  ;;  %v2336_v20 = vsel %vm518_vm5, %v4716_v35, %v4717_v16 }
 0x6d8   : > { %v6698_v61 = vpop.permute.xlu0 %4724  ;;  %v6700_v18 = vpop.permute.xlu1 %4719 }
 0x6d9   : > { %v4722_v46 = vunpack.i.h.bf16 %v6700_v18  ;;  %v4721_v58 = vunpack.i.l.bf16 %v6700_v18  ;;  %v4727_v62 = vunpack.i.h.bf16 %v6698_v61  ;;  %v4726_v31 = vunpack.i.l.bf16 %v6698_v61 }
 0x6db   : > { %v2354_v25 = vsel %vm530_vm1, %v4721_v58, %v4722_v46  ;;  %v2371_v22 = vsel %vm540_vm7, %v4726_v31, %v4727_v62 }
 0x6dc   : > { %v6702_v10 = vpop.permute.xlu0 %4734  ;;  %v6704_v23 = vpop.permute.xlu1 %4729 }
 0x6dd   : > { %v4732_v53 = vunpack.i.h.bf16 %v6704_v23  ;;  %v4731_v32 = vunpack.i.l.bf16 %v6704_v23  ;;  %v4737_v23 = vunpack.i.h.bf16 %v6702_v10 }
 0x6e0   : > { %v6708_v14 = vpop.permute.xlu0 %4739  ;;  %v6710_v54 = vpop.permute.xlu1 %4744 }
 0x6e1   : > { %v4741_v6 = vunpack.i.l.bf16 %v6708_v14  ;;  %v4746_v57 = vunpack.i.l.bf16 %v6710_v54 }
 0x6e3   : > { %v2319_v59 = vsel %vm506_vm0, %v4712_v63, %v4741_v6  ;;  %v2337_v13 = vsel %vm518_vm5, %v4717_v16, %v4746_v57  ;;  %v4736_v16 = vunpack.i.l.bf16 %v6702_v10 }
 0x6e4   : > { %v6720_v1 = vpop.permute.xlu0 %4749  ;;  %v6722_v19 = vpop.permute.xlu1 %4754  ;;  %v4868_v7 = vpack.i.bf16 %v2319_v59, %v2318_v34  ;;  %v4873_v27 = vpack.i.bf16 %v2337_v13, %v2336_v20 }
 0x6e5   : > { %v4751_v44 = vunpack.i.l.bf16 %v6720_v1  ;;  %v4756_v48 = vunpack.i.l.bf16 %v6722_v19  ;;  %v7689_v10 = vunpack.i.h.bf16 %v6722_v19 }
 0x6e6   : > { %4869 = vrot.lane.b32.xlu0 %v4868_v7, %s7678_s27 }
 0x6e7   : > { %v2355_v51 = vsel %vm530_vm1, %v4722_v46, %v4751_v44  ;;  %v2372_v55 = vsel %vm540_vm7, %v4727_v62, %v4756_v48 }
 0x6e8   : > { %v6732_v3 = vpop.permute.xlu0 %4759  ;;  %v6734_v36 = vpop.permute.xlu1 %4764  ;;  %v4878_v17 = vpack.i.bf16 %v2355_v51, %v2354_v25  ;;  %v4883_v50 = vpack.i.bf16 %v2372_v55, %v2371_v22  ;;  %v7640_v51 = vunpack.i.h.bf16 %v6722_v19 }
 0x6e9   : > { %v4761_v33 = vunpack.i.l.bf16 %v6732_v3  ;;  %v4766_v61 = vunpack.i.l.bf16 %v6734_v36 }
 0x6ea   : > { %4874 = vrot.lane.b32.xlu0 %v4873_v27, %s7678_s27  ;;  %v2405_v27 = vsel %vm564_vm4, %v4736_v16, %v4737_v23 }
 0x6eb   : > { %v2388_v29 = vsel %vm552_vm2, %v4732_v53, %v4761_v33  ;;  %v2406_v20 = vsel %vm564_vm4, %v4737_v23, %v4766_v61 }
 0x6ec   : > { %v6744_v52 = vpop.permute.xlu0 %4779  ;;  %v6746_v9 = vpop.permute.xlu1 %4769 }
 0x6ed   : > { %v4772_v12 = vunpack.i.h.bf16 %v6746_v9 }
 0x6ee   : > { %4879 = vrot.lane.b32.xlu0 %v4878_v17, %s7678_s27  ;;  %v4893_v17 = vpack.i.bf16 %v2406_v20, %v2405_v27 }
 0x6ef   : > { %v4843_v45 = vpack.i.bf16 %v4772_v12, %v4741_v6  ;;  %v2387_v6 = vsel %vm552_vm2, %v4731_v32, %v4732_v53  ;;  %v4898_v53 = vpack.i.bf16 %v7640_v51, %v4726_v31 }
 0x6f0   : > { %v6757_v30 = vpop.permute.xlu0 %4784  ;;  %v6759_v5 = vpop.permute.xlu1 %4774  ;;  %v4888_v13 = vpack.i.bf16 %v2388_v29, %v2387_v6  ;;  %v4742_v29 = vunpack.i.h.bf16 %v6708_v14 }
 0x6f1   : > { %v4787_v63 = vunpack.i.h.bf16 %v6757_v30  ;;  %4844 = vrot.lane.b32.xlu1 %v4843_v45, %s7678_s27 }
 0x6f2   : > { %4884 = vrot.lane.b32.xlu0 %v4883_v50, %s7678_s27 }
 0x6f3   : > { %v4848_v34 = vpack.i.bf16 %v4787_v63, %v4746_v57 }
 0x6f4   : > { %v6771_v59 = vpop.permute.xlu0 %4789  ;;  %v6773_v7 = vpop.permute.xlu1 %4794 }
 0x6f5   : > { %v7641_v46 = vunpack.i.h.bf16 %v6773_v7  ;;  %4849 = vrot.lane.b32.xlu1 %v4848_v34, %s7678_s27  ;;  %v4747_v34 = vunpack.i.h.bf16 %v6710_v54  ;;  %v2320_v54 = vsel %vm506_vm0, %v5648_v38, %v4742_v29  ;;  %v4791_v19 = vunpack.i.l.bf16 %v6771_v59 }
 0x6f6   : > { %4889 = vrot.lane.b32.xlu0 %v4888_v13, %s7678_s27 }
 0x6f7   : > { %v4853_v57 = vpack.i.bf16 %v7641_v46, %v4751_v44  ;;  %v7638_v44 = vunpack.i.h.bf16 %v6732_v3 }
 0x6f8   : > { %v6785_v62 = vpop.permute.xlu0 %4804  ;;  %v6787_v25 = vpop.permute.xlu1 %4799 }
 0x6f9   : > { %v7639_v55 = vunpack.i.h.bf16 %v6785_v62  ;;  %4854 = vrot.lane.b32.xlu1 %v4853_v57, %s7678_s27  ;;  %v4903_v14 = vpack.i.bf16 %v7638_v44, %v4731_v32  ;;  %v2338_v57 = vsel %vm518_vm5, %v5652_v40, %v4747_v34  ;;  %v4771_v32 = vunpack.i.l.bf16 %v6746_v9 }
 0x6fa   : > { %4894 = vrot.lane.b32.xlu0 %v4893_v17, %s7678_s27  ;;  %v4752_v17 = vunpack.i.h.bf16 %v6720_v1  ;;  %v2335_v1 = vsel %vm518_vm5, %v5652_v40, %v4716_v35 }
 0x6fb   : > { %v4858_v22 = vpack.i.bf16 %v7639_v55, %v4756_v48  ;;  %v2389_v48 = vsel %vm552_vm2, %v4761_v33, %v5650_v39  ;;  %v2321_v46 = vsel %vm506_vm0, %v4742_v29, %v4771_v32  ;;  %v2322_v35 = vsel %vm506_vm0, %v4771_v32, %v4772_v12 }
 0x6fc   : > { %v6797_v45 = vpop.permute.xlu0 %4819  ;;  %v6799_v50 = vpop.permute.xlu1 %4809  ;;  %v4786_v12 = vunpack.i.l.bf16 %v6757_v30 }
 0x6fd   : > { %v7636_v23 = vunpack.i.h.bf16 %v6797_v45  ;;  %v7637_v6 = vunpack.i.h.bf16 %v6799_v50  ;;  %4859 = vrot.lane.b32.xlu1 %v4858_v22, %s7678_s27  ;;  %v4781_v22 = vunpack.i.l.bf16 %v6744_v52 }
 0x6fe   : > { %4899 = vrot.lane.b32.xlu0 %v4898_v53, %s7678_s27  ;;  %v2317_v53 = vsel %vm506_vm0, %v5648_v38, %v4711_v49  ;;  %v4913_v49 = vpack.i.bf16 %v2338_v57, %v2335_v1  ;;  %v2340_v18 = vsel %vm518_vm5, %v4786_v12, %v4787_v63  ;;  %v7688_v63 = vunpack.i.h.bf16 %v6773_v7 }
 0x6ff   : > { %v2392_v31 = vsel %vm552_vm2, %v7637_v6, %v5650_v39  ;;  %v2410_v33 = vsel %vm564_vm4, %v7636_v23, %v5654_v41  ;;  %v2425_v56 = vsel %vm576_vm3, %v4781_v22, %v5658_v43 }
 0x700   : > { %v6815_v13 = vpop.permute.xlu0 %4834  ;;  %v4815_v20 = vpop.permute.xlu1 %4814  ;;  %v4863_v27 = vpack.i.bf16 %v2392_v31, %v2389_v48  ;;  %v2407_v48 = vsel %vm564_vm4, %v4766_v61, %v5654_v41  ;;  %v2356_v61 = vsel %vm530_vm1, %v5656_v42, %v4752_v17 }
 0x701   : > { %v4816_v31 = vunpack.i.l.bf16 %v4815_v20  ;;  %v4817_v23 = vunpack.i.h.bf16 %v4815_v20 }
 0x702   : > { %4864 = vrot.lane.b32.xlu1 %v4863_v27, %s7678_s27  ;;  %4904 = vrot.lane.b32.xlu0 %v4903_v14, %s7678_s27  ;;  %v4928_v27 = vpack.i.bf16 %v2410_v33, %v2407_v48  ;;  %v4908_v14 = vpack.i.bf16 %v2320_v54, %v2317_v53 }
 0x703   : > { %v2604_v53 = vsel %vm678_vm9, %v4816_v31, %v4817_v23 }
 0x704   : > { %v4840_v6 = vpop.permute.xlu0 %4839  ;;  %v6840_v44 = vpop.permute.xlu1 %4824 }
 0x705   : > { %v4842_v55 = vunpack.i.h.bf16 %v4840_v6  ;;  %v4841_v26 = vunpack.i.l.bf16 %v4840_v6  ;;  %v4827_v51 = vunpack.i.h.bf16 %v6840_v44  ;;  %v2603_v6 = vsel %vm678_vm9, %v5844_v0, %v4816_v31 }
 0x706   : > { %4929 = vrot.lane.b32.xlu1 %v4928_v27, %s7678_s27  ;;  %4909 = vrot.lane.b32.xlu0 %v4908_v14, %s7678_s27  ;;  %v2353_v27 = vsel %vm530_vm1, %v5656_v42, %v4721_v58  ;;  %v4777_v58 = vunpack.i.h.bf16 %v6759_v5 }
 0x707   : > { %v2606_v20 = vsel %vm678_vm9, %v5844_v0, %v4841_v26  ;;  %v2428_v54 = vsel %vm576_vm3, %v4827_v51, %v5658_v43  ;;  %v2607_v9 = vsel %vm678_vm9, %v4841_v26, %v4842_v55 }
 0x708   : > { %v3825_v29 = vpack.c.bf16 %v2606_v20, %v2603_v6  ;;  %v4943_v33 = vpack.i.bf16 %v2428_v54, %v2425_v56  ;;  %v4830_v57 = vpop.permute.xlu1 %4829  ;;  %v3823_v1 = vpack.c.bf16 %v2607_v9, %v2604_v53  ;;  %v4958_v56 = vpack.i.bf16 %v2322_v35, %v2321_v46 }
 0x709   : > { %v4832_v32 = vunpack.i.h.bf16 %v4830_v57  ;;  %v4831_v48 = vunpack.i.l.bf16 %v4830_v57  ;;  %v4918_v6 = vpack.i.bf16 %v2356_v61, %v2353_v27  ;;  %v4767_v20 = vunpack.i.h.bf16 %v6734_v36 }
 0x70a   : > { %4944 = vrot.lane.b32.xlu1 %v4943_v33, %s7678_s27  ;;  %4914 = vrot.lane.b32.xlu0 %v4913_v49, %s7678_s27  ;;  %v2339_v54 = vsel %vm518_vm5, %v4747_v34, %v4786_v12  ;;  %v4796_v49 = vunpack.i.l.bf16 %v6773_v7  ;;  %v4806_v34 = vunpack.i.l.bf16 %v6785_v62  ;;  %v4782_v57 = vunpack.i.h.bf16 %v6744_v52 }
 0x70b   : > { %v2608_v14 = vsel %vm678_vm9, %v4842_v55, %v4832_v32  ;;  %v2605_v31 = vsel %vm678_vm9, %v4817_v23, %v4831_v48  ;;  %3824 = vmatprep.subr.bf16.mxu0 %v3823_v1  ;;  %v4776_v55 = vunpack.i.l.bf16 %v6759_v5  ;;  %v4963_v36 = vpack.i.bf16 %v2340_v18, %v2339_v54 }
 0x70c   : > { %v3860_v26 = vpack.c.bf16 %v2608_v14, %v2605_v31  ;;  %3826 = vmatpush1.bf16.msra.mxu0 %v3825_v29  ;;  %v4923_v46 = vpack.i.bf16 %v4767_v20, %v4736_v16  ;;  %v2357_v30 = vsel %vm530_vm1, %v4752_v17, %v4796_v49  ;;  %v2358_v23 = vsel %vm530_vm1, %v4796_v49, %v7688_v63 }
 0x70d   : > { %v2424_v5 = vsel %vm576_vm3, %v4777_v58, %v4781_v22  ;;  %v2423_v61 = vsel %vm576_vm3, %v4776_v55, %v4777_v58  ;;  %v4968_v35 = vpack.i.bf16 %v2358_v23, %v2357_v30  ;;  %v2373_v16 = vsel %vm540_vm7, %v7689_v10, %v4806_v34  ;;  %v2452_v23 = vld [vmem:[%s7580_s11 + $0x8] sm:$0xff] }
 0x70e   : > { %3861 = vmatpush1.bf16.msra.mxu1 %v3860_v26  ;;  %4959 = vrot.lane.b32.xlu1 %v4958_v56, %s7678_s27  ;;  %v7690_v17 = vunpack.i.h.bf16 %v6785_v62  ;;  %v4811_v29 = vunpack.i.l.bf16 %v6799_v50  ;;  %v4933_v33 = vpack.i.bf16 %v2424_v5, %v2423_v61  ;;  %v4801_v22 = vunpack.i.l.bf16 %v6787_v25 }
 0x70f   : > { %4919 = vrot.lane.b32.xlu0 %v4918_v6, %s7678_s27  ;;  %3862 = vmatprep.subr.bf16.mxu1 %v7677_v28  ;;  %v4792_v53 = vunpack.i.h.bf16 %v6771_v59  ;;  %v4938_v12 = vpack.i.bf16 %v4782_v57, %v4776_v55  ;;  %v4821_v62 = vunpack.i.l.bf16 %v6797_v45  ;;  %v7691_v32 = vunpack.i.h.bf16 %v6732_v3  ;;  %v2451_v55 = vld [vmem:[%s7580_s11] sm:$0xff] }
 0x710   : > { %v2374_v7 = vsel %vm540_vm7, %v4806_v34, %v7690_v17  ;;  %v7692_v1 = vunpack.i.h.bf16 %v6799_v50  ;;  %v4802_v14 = vunpack.i.h.bf16 %v6787_v25  ;;  %v7693_v3 = vunpack.i.h.bf16 %v6797_v45 }
 0x711   : > { %v4973_v9 = vpack.i.bf16 %v2374_v7, %v2373_v16  ;;  %v2390_v48 = vsel %vm552_vm2, %v7691_v32, %v4811_v29  ;;  %v2442_v52 = vsel %vm588_vm6, %v4792_v53, %v4801_v22  ;;  %v2441_v59 = vsel %vm588_vm6, %v4791_v19, %v4792_v53 }
 0x712   : > { %4964 = vrot.lane.b32.xlu1 %v4963_v36, %s7678_s27  ;;  %v2391_v27 = vsel %vm552_vm2, %v4811_v29, %v7692_v1  ;;  %v2408_v26 = vsel %vm564_vm4, %v4767_v20, %v4821_v62  ;;  %v2409_v56 = vsel %vm564_vm4, %v4821_v62, %v7693_v3  ;;  %v4826_v50 = vunpack.i.l.bf16 %v6840_v44  ;;  %v2448_v36 = vld [vmem:[%s7579_s10 + $0x8] sm:$0xff] }
 0x713   : > { %4924 = vrot.lane.b32.xlu0 %v4923_v46, %s7678_s27  ;;  %v4978_v31 = vpack.i.bf16 %v2391_v27, %v2390_v48  ;;  %v4948_v6 = vpack.i.bf16 %v2442_v52, %v2441_v59  ;;  %v4953_v54 = vpack.i.bf16 %v4802_v14, %v4791_v19  ;;  %v4983_v18 = vpack.i.bf16 %v2409_v56, %v2408_v26 }
 0x714   : > { %v4837_v49 = vunpack.i.h.bf16 %v6815_v13  ;;  %v4836_v25 = vunpack.i.l.bf16 %v6815_v13  ;;  %v2426_v58 = vsel %vm576_vm3, %v4782_v57, %v4826_v50  ;;  %v2427_v45 = vsel %vm576_vm3, %v4826_v50, %v4827_v51  ;;  %3561 = vmatprep.mubr.msk.f32.mxu0 %vm1349_vm10, %v2448_v36  ;;  %3563 = vmatprep.mubr.msk.f32.mxu1 %vm1349_vm10, %v2448_v36 }
 0x715   : > { %v4988_v20 = vpack.i.bf16 %v2427_v45, %v2426_v58  ;;  %v2443_v30 = vsel %vm588_vm6, %v4801_v22, %v5819_v11 }
 0x716   : > { %4969 = vrot.lane.b32.xlu1 %v4968_v35, %s7678_s27  ;;  %v2444_v13 = vsel %vm588_vm6, %v4802_v14, %v4836_v25  ;;  %v2445_v46 = vsel %vm588_vm6, %v4836_v25, %v4837_v49  ;;  %v2446_v44 = vsel %vm588_vm6, %v4837_v49, %v5819_v11 }
 0x717   : > { %4934 = vrot.lane.b32.xlu0 %v4933_v33, %s7678_s27  ;;  %v4993_v51 = vpack.i.bf16 %v2445_v46, %v2444_v13  ;;  %v4998_v63 = vpack.i.bf16 %v2446_v44, %v2443_v30 }
 0x71a   : > { %4974 = vrot.lane.b32.xlu1 %v4973_v9, %s7678_s27 }
 0x71b   : > { %4939 = vrot.lane.b32.xlu0 %v4938_v12, %s7678_s27 }
 0x71e   : > { %4979 = vrot.lane.b32.xlu1 %v4978_v31, %s7678_s27 }
 0x71f   : > { %4949 = vrot.lane.b32.xlu0 %v4948_v6, %s7678_s27 }
 0x722   : > { %4984 = vrot.lane.b32.xlu1 %v4983_v18, %s7678_s27 }
 0x723   : > { %4954 = vrot.lane.b32.xlu0 %v4953_v54, %s7678_s27 }
 0x726   : > { %4989 = vrot.lane.b32.xlu1 %v4988_v20, %s7678_s27 }
 0x727   : > { %2455 = vperm.xlu0 %4116, %v2451_v55  }
 0x72a   : > { %4994 = vrot.lane.b32.xlu1 %v4993_v51, %s7678_s27 }
 0x72e   : > { %4999 = vrot.lane.b32.xlu1 %v4998_v63, %s7678_s27 }
 0x732   : > { %2460 = vperm.xlu1 %4117, %v2452_v23  }
 0x758   : > { %v4870_v34 = vpop.permute.xlu0 %4869 }
 0x759   : > { %v4872_v12 = vunpack.i.h.bf16 %v4870_v34  ;;  %v4871_v62 = vunpack.i.l.bf16 %v4870_v34 }
 0x75b   : > { %v2610_v6 = vsel %vm678_vm9, %v4871_v62, %v4872_v12 }
 0x75c   : > { %v4875_v5 = vpop.permute.xlu0 %4874 }
 0x75d   : > { %v4877_v32 = vunpack.i.h.bf16 %v4875_v5  ;;  %v4876_v48 = vunpack.i.l.bf16 %v4875_v5 }
 0x75f   : > { %v2616_v54 = vsel %vm678_vm9, %v4876_v48, %v4877_v32 }
 0x760   : > { %v6954_v61 = vpop.permute.xlu0 %4879 }
 0x761   : > { %v4882_v1 = vunpack.i.h.bf16 %v6954_v61  ;;  %v4881_v27 = vunpack.i.l.bf16 %v6954_v61 }
 0x763   : > { %v4845_v35 = vpop.permute.xlu1 %4844  ;;  %v6983_v18 = vsel %vm678_vm9, %v4881_v27, %v4882_v1 }
 0x764   : > { %v6956_v10 = vpop.permute.xlu0 %4884  ;;  %v4846_v14 = vunpack.i.l.bf16 %v4845_v35  ;;  %v4847_v56 = vunpack.i.h.bf16 %v4845_v35 }
 0x765   : > { %v4887_v31 = vunpack.i.h.bf16 %v6956_v10  ;;  %v7642_v26 = vunpack.i.l.bf16 %v6956_v10 }
 0x766   : > { %v2611_v49 = vsel %vm678_vm9, %v4872_v12, %v4846_v14 }
 0x767   : > { %v4850_v16 = vpop.permute.xlu1 %4849  ;;  %v6992_v46 = vsel %vm678_vm9, %v7642_v26, %v4887_v31 }
 0x768   : > { %v6958_v17 = vpop.permute.xlu0 %4889  ;;  %v4851_v55 = vunpack.i.l.bf16 %v4850_v16 }
 0x769   : > { %v4892_v36 = vunpack.i.h.bf16 %v6958_v17  ;;  %v4891_v23 = vunpack.i.l.bf16 %v6958_v17 }
 0x76b   : > { %v6960_v7 = vpop.permute.xlu1 %4854 }
 0x76c   : > { %v6962_v29 = vpop.permute.xlu0 %4894 }
 0x76f   : > { %v6964_v33 = vpop.permute.xlu1 %4859 }
 0x770   : > { %v6966_v22 = vpop.permute.xlu0 %4899 }
 0x774   : > { %v6968_v57 = vpop.permute.xlu1 %4864  ;;  %v6970_v53 = vpop.permute.xlu0 %4904 }
 0x778   : > { %v6972_v19 = vpop.permute.xlu1 %4929  ;;  %v4910_v9 = vpop.permute.xlu0 %4909 }
 0x779   : > { %v4911_v3 = vunpack.i.l.bf16 %v4910_v9  ;;  %v4912_v25 = vunpack.i.h.bf16 %v4910_v9  ;;  %v4852_v9 = vunpack.i.h.bf16 %v4850_v16  ;;  %v4932_v17 = vunpack.i.h.bf16 %v6972_v19 }
 0x77b   : > { %v2609_v51 = vsel %vm678_vm9, %v4911_v3, %v4871_v62  ;;  %v2617_v62 = vsel %vm678_vm9, %v4877_v32, %v4851_v55  ;;  %v4856_v3 = vunpack.i.l.bf16 %v6960_v7  ;;  %v4857_v55 = vunpack.i.h.bf16 %v6960_v7 }
 0x77c   : > { %v6976_v52 = vpop.permute.xlu1 %4944  ;;  %v4915_v59 = vpop.permute.xlu0 %4914 }
 0x77d   : > { %v4916_v13 = vunpack.i.l.bf16 %v4915_v59  ;;  %v4917_v12 = vunpack.i.h.bf16 %v4915_v59 }
 0x780   : > { %v4960_v50 = vpop.permute.xlu1 %4959 }
 0x781   : > { %v4962_v58 = vunpack.i.h.bf16 %v4960_v50  ;;  %v4961_v45 = vunpack.i.l.bf16 %v4960_v50  ;;  %v4920_v20 = vpop.permute.xlu0 %4919 }
 0x783   : > { %v2614_v44 = vsel %vm678_vm9, %v4962_v58, %v4847_v56  ;;  %v2612_v30 = vsel %vm678_vm9, %v4912_v25, %v4961_v45  ;;  %v2613_v63 = vsel %vm678_vm9, %v4961_v45, %v4962_v58  ;;  %v2615_v56 = vsel %vm678_vm9, %v4916_v13, %v4876_v48 }
 0x784   : > { %v3829_v34 = vpack.c.bf16 %v2612_v30, %v2609_v51  ;;  %v3863_v5 = vpack.c.bf16 %v2614_v44, %v2611_v49  ;;  %v4965_v61 = vpop.permute.xlu1 %4964  ;;  %v3827_v35 = vpack.c.bf16 %v2613_v63, %v2610_v6  ;;  %v4921_v25 = vunpack.i.l.bf16 %v4920_v20 }
 0x785   : > { %v4967_v14 = vunpack.i.h.bf16 %v4965_v61  ;;  %v4966_v50 = vunpack.i.l.bf16 %v4965_v61  ;;  %v6999_v26 = vpop.permute.xlu0 %4924  ;;  %v7013_v48 = vsel %vm678_vm9, %v4891_v23, %v4892_v36  ;;  %v4922_v13 = vunpack.i.h.bf16 %v4920_v20 }
 0x786   : > { %3828 = vmatprep.subr.bf16.mxu0 %v3827_v35  ;;  %3864 = vmatpush1.bf16.msra.mxu1 %v3863_v5  ;;  %v2623_v63 = vsel %vm678_vm9, %v4882_v1, %v4856_v3  ;;  %v2621_v5 = vsel %vm678_vm9, %v4921_v25, %v4881_v27  ;;  %v4897_v61 = vunpack.i.h.bf16 %v6962_v29  ;;  %v4896_v1 = vunpack.i.l.bf16 %v6962_v29 }
 0x787   : > { %v2618_v58 = vsel %vm678_vm9, %v4917_v12, %v4966_v50  ;;  %v2620_v49 = vsel %vm678_vm9, %v4967_v14, %v4852_v9  ;;  %3830 = vmatpush1.bf16.msra.mxu0 %v3829_v34  ;;  %3865 = vmatprep.subr.bf16.mxu1 %v7677_v28  ;;  %v2619_v16 = vsel %vm678_vm9, %v4966_v50, %v4967_v14  ;;  %v4861_v34 = vunpack.i.l.bf16 %v6964_v33 }
 0x788   : > { %v3833_v59 = vpack.c.bf16 %v2618_v58, %v2615_v56  ;;  %v3866_v6 = vpack.c.bf16 %v2620_v49, %v2617_v62  ;;  %v4970_v45 = vpop.permute.xlu1 %4969  ;;  %v3831_v32 = vpack.c.bf16 %v2619_v16, %v2616_v54  ;;  %v4901_v54 = vunpack.i.l.bf16 %v6966_v22 }
 0x789   : > { %v4972_v51 = vunpack.i.h.bf16 %v4970_v45  ;;  %v4971_v44 = vunpack.i.l.bf16 %v4970_v45  ;;  %v7016_v30 = vpop.permute.xlu0 %4934  ;;  %v4862_v50 = vunpack.i.h.bf16 %v6964_v33  ;;  %v4902_v62 = vunpack.i.h.bf16 %v6966_v22 }
 0x78a   : > { %3832 = vmatprep.subr.bf16.mxu0 %v3831_v32  ;;  %3867 = vmatpush1.bf16.msra.mxu1 %v3866_v6  ;;  %v2629_v58 = vsel %vm678_vm9, %v4887_v31, %v4861_v34  ;;  %v7694_v49 = vunpack.i.l.bf16 %v6956_v10  ;;  %v4866_v16 = vunpack.i.l.bf16 %v6968_v57  ;;  %v2640_v32 = vsel %vm678_vm9, %v4896_v1, %v4897_v61 }
 0x78b   : > { %v2624_v35 = vsel %vm678_vm9, %v4922_v13, %v4971_v44  ;;  %v2626_v7 = vsel %vm678_vm9, %v4972_v51, %v4857_v55  ;;  %3834 = vmatpush1.bf16.msra.mxu0 %v3833_v59  ;;  %3868 = vmatprep.subr.bf16.mxu1 %v7677_v28  ;;  %v2625_v20 = vsel %vm678_vm9, %v4971_v44, %v4972_v51  ;;  %v4867_v55 = vunpack.i.h.bf16 %v6968_v57 }
 0x78c   : > { %v3837_v9 = vpack.c.bf16 %v2624_v35, %v2621_v5  ;;  %v3869_v12 = vpack.c.bf16 %v2626_v7, %v2623_v63  ;;  %v4975_v14 = vpop.permute.xlu1 %4974  ;;  %v3835_v27 = vpack.c.bf16 %v2625_v20, %v6983_v18  ;;  %v2627_v29 = vsel %vm678_vm9, %v4901_v54, %v7694_v49 }
 0x78d   : > { %v4977_v3 = vunpack.i.h.bf16 %v4975_v14  ;;  %v4976_v56 = vunpack.i.l.bf16 %v4975_v14  ;;  %v7031_v25 = vpop.permute.xlu0 %4939  ;;  %v4906_v18 = vunpack.i.l.bf16 %v6970_v53  ;;  %v4907_v13 = vunpack.i.h.bf16 %v6970_v53 }
 0x78e   : > { %3836 = vmatprep.subr.bf16.mxu0 %v3835_v27  ;;  %3870 = vmatpush1.bf16.msra.mxu1 %v3869_v12  ;;  %v2635_v63 = vsel %vm678_vm9, %v4892_v36, %v4866_v16  ;;  %v4931_v54 = vunpack.i.l.bf16 %v6972_v19  ;;  %v4937_v12 = vunpack.i.h.bf16 %v7016_v30  ;;  %v4946_v19 = vunpack.i.l.bf16 %v6976_v52 }
 0x78f   : > { %v2630_v33 = vsel %vm678_vm9, %v4902_v62, %v4976_v56  ;;  %v2632_v22 = vsel %vm678_vm9, %v4977_v3, %v4862_v50  ;;  %3838 = vmatpush1.bf16.msra.mxu0 %v3837_v9  ;;  %3871 = vmatprep.subr.bf16.mxu1 %v7677_v28  ;;  %v2631_v59 = vsel %vm678_vm9, %v4976_v56, %v4977_v3  ;;  %v4927_v9 = vunpack.i.h.bf16 %v6999_v26 }
 0x790   : > { %v3841_v31 = vpack.c.bf16 %v2630_v33, %v2627_v29  ;;  %v3872_v6 = vpack.c.bf16 %v2632_v22, %v2629_v58  ;;  %v4980_v10 = vpop.permute.xlu1 %4979  ;;  %v3839_v45 = vpack.c.bf16 %v2631_v59, %v6992_v46  ;;  %v2633_v34 = vsel %vm678_vm9, %v4906_v18, %v4891_v23 }
 0x791   : > { %v4982_v51 = vunpack.i.h.bf16 %v4980_v10  ;;  %v4981_v44 = vunpack.i.l.bf16 %v4980_v10  ;;  %v4926_v46 = vunpack.i.l.bf16 %v6999_v26  ;;  %v7057_v5 = vpop.permute.xlu0 %4949  ;;  %v2641_v50 = vsel %vm678_vm9, %v4897_v61, %v4931_v54 }
 0x792   : > { %3840 = vmatprep.subr.bf16.mxu0 %v3839_v45  ;;  %3873 = vmatpush1.bf16.msra.mxu1 %v3872_v6  ;;  %v4936_v3 = vunpack.i.l.bf16 %v7016_v30  ;;  %v4941_v56 = vunpack.i.l.bf16 %v7031_v25  ;;  %v4947_v61 = vunpack.i.h.bf16 %v6976_v52  ;;  %v2647_v18 = vsel %vm678_vm9, %v4937_v12, %v4946_v19 }
 0x793   : > { %v2636_v57 = vsel %vm678_vm9, %v4907_v13, %v4981_v44  ;;  %v2638_v53 = vsel %vm678_vm9, %v4982_v51, %v4867_v55  ;;  %3842 = vmatpush1.bf16.msra.mxu0 %v3841_v31  ;;  %3874 = vmatprep.subr.bf16.mxu1 %v7677_v28  ;;  %v2637_v36 = vsel %vm678_vm9, %v4981_v44, %v4982_v51  ;;  %v4942_v33 = vunpack.i.h.bf16 %v7031_v25 }
 0x794   : > { %v3845_v23 = vpack.c.bf16 %v2636_v57, %v2633_v34  ;;  %v3875_v35 = vpack.c.bf16 %v2638_v53, %v2635_v63  ;;  %v4985_v7 = vpop.permute.xlu1 %4984  ;;  %v3843_v20 = vpack.c.bf16 %v2637_v36, %v7013_v48  ;;  %v2639_v62 = vsel %vm678_vm9, %v4926_v46, %v4896_v1 }
 0x795   : > { %v4987_v14 = vunpack.i.h.bf16 %v4985_v7  ;;  %v4986_v27 = vunpack.i.l.bf16 %v4985_v7  ;;  %v4955_v30 = vpop.permute.xlu0 %4954  ;;  %v2645_v31 = vsel %vm678_vm9, %v4941_v56, %v4936_v3  ;;  %v4952_v6 = vunpack.i.h.bf16 %v7057_v5 }
 0x796   : > { %3844 = vmatprep.subr.bf16.mxu0 %v3843_v20  ;;  %3876 = vmatpush1.bf16.msra.mxu1 %v3875_v35  ;;  %v4951_v10 = vunpack.i.l.bf16 %v7057_v5  ;;  %v2646_v52 = vsel %vm678_vm9, %v4936_v3, %v4937_v12  ;;  %v4956_v45 = vunpack.i.l.bf16 %v4955_v30  ;;  %v4957_v34 = vunpack.i.h.bf16 %v4955_v30 }
 0x797   : > { %v2642_v48 = vsel %vm678_vm9, %v4927_v9, %v4986_v27  ;;  %v2644_v26 = vsel %vm678_vm9, %v4987_v14, %v4932_v17  ;;  %3846 = vmatpush1.bf16.msra.mxu0 %v3845_v23  ;;  %3877 = vmatprep.subr.bf16.mxu1 %v7677_v28  ;;  %v2643_v58 = vsel %vm678_vm9, %v4986_v27, %v4987_v14  ;;  %v2447_v14 = vld [vmem:[%s7579_s10] sm:$0xff] }
 0x798   : > { %v3849_v1 = vpack.c.bf16 %v2642_v48, %v2639_v62  ;;  %v3878_v49 = vpack.c.bf16 %v2644_v26, %v2641_v50  ;;  %v4990_v29 = vpop.permute.xlu1 %4989  ;;  %v3847_v16 = vpack.c.bf16 %v2643_v58, %v2640_v32  ;;  %v2652_v5 = vsel %vm678_vm9, %v4951_v10, %v4952_v6  ;;  %v2450_v50 = vld [vmem:[%s7579_s10 + $0x18] sm:$0xff]  ;;  %v2449_v62 = vld [vmem:[%s7579_s10 + $0x10] sm:$0xff] }
 0x799   : > { %v4992_v22 = vunpack.i.h.bf16 %v4990_v29  ;;  %v4991_v59 = vunpack.i.l.bf16 %v4990_v29  ;;  %v2651_v57 = vsel %vm678_vm9, %v4956_v45, %v4951_v10 }
 0x79a   : > { %3848 = vmatprep.subr.bf16.mxu0 %v3847_v16  ;;  %3879 = vmatpush1.bf16.msra.mxu1 %v3878_v49 }
 0x79b   : > { %v2648_v55 = vsel %vm678_vm9, %v4942_v33, %v4991_v59  ;;  %v2650_v32 = vsel %vm678_vm9, %v4992_v22, %v4947_v61  ;;  %3850 = vmatpush1.bf16.msra.mxu0 %v3849_v1  ;;  %3880 = vmatprep.subr.bf16.mxu1 %v7677_v28  ;;  %v2649_v25 = vsel %vm678_vm9, %v4991_v59, %v4992_v22 }
 0x79c   : > { %v3853_v13 = vpack.c.bf16 %v2648_v55, %v2645_v31  ;;  %v3881_v51 = vpack.c.bf16 %v2650_v32, %v2647_v18  ;;  %v4995_v44 = vpop.permute.xlu1 %4994  ;;  %v3851_v63 = vpack.c.bf16 %v2649_v25, %v2646_v52 }
 0x79d   : > { %v4997_v54 = vunpack.i.h.bf16 %v4995_v44  ;;  %v4996_v46 = vunpack.i.l.bf16 %v4995_v44 }
 0x79e   : > { %3852 = vmatprep.subr.bf16.mxu0 %v3851_v63  ;;  %3882 = vmatpush1.bf16.msra.mxu1 %v3881_v51 }
 0x79f   : > { %v2654_v53 = vsel %vm678_vm9, %v4957_v34, %v4996_v46  ;;  %3854 = vmatpush1.bf16.msra.mxu0 %v3853_v13  ;;  %v2655_v36 = vsel %vm678_vm9, %v4996_v46, %v4997_v54  ;;  %3883 = vmatprep.subr.bf16.mxu1 %v7677_v28 }
 0x7a0   : > { %v3857_v17 = vpack.c.bf16 %v2654_v53, %v2651_v57  ;;  %v5000_v23 = vpop.permute.xlu1 %4999  ;;  %v3855_v35 = vpack.c.bf16 %v2655_v36, %v2652_v5 }
 0x7a1   : > { %v5002_v7 = vunpack.i.h.bf16 %v5000_v23  ;;  %v5001_v20 = vunpack.i.l.bf16 %v5000_v23 }
 0x7a2   : > { %3856 = vmatprep.subr.bf16.mxu0 %v3855_v35 }
 0x7a3   : > { %v2653_v9 = vsel %vm678_vm9, %v4952_v6, %v5001_v20  ;;  %v2656_v12 = vsel %vm678_vm9, %v4997_v54, %v5002_v7  ;;  %3858 = vmatpush1.bf16.msra.mxu0 %v3857_v17 }
 0x7a4   : > { %v3884_v27 = vpack.c.bf16 %v2656_v12, %v2653_v9 }
 0x7a6   : > { %2782 = vmatmul.mubr.f32.vlgmr.msra.gmra.mrb[16].mxu0 %v2447_v14  ;;  %3885 = vmatpush1.bf16.msra.mxu1 %v3884_v27  ;;  %v2456_v3 = vpop.permute.xlu0 %2455 }
 0x7a7   : > { %3562 = vmatprep.mubr.msk.f32.mxu0 %vm1349_vm10, %v2450_v50  ;;  %3922 = vmatprep.subr.bf16.mxu1 %v7677_v28 }
 0x7a9   : > { %2859 = vmatmul.mubr.f32.vlgmr.msra.gmra.mrb[12].mxu1 %v2447_v14 }
 0x7aa   : > { %2788 = vmatmul.mubr.f32.gmra.mrb[18].mxu0 %v2449_v62  ;;  %3564 = vmatprep.mubr.msk.f32.mxu1 %vm1349_vm10, %v2450_v50 }
 0x7ad   : > { %2864 = vmatmul.mubr.f32.gmra.mrb[14].mxu1 %v2449_v62 }
 0x7b1   : > { %v2461_v58 = vpop.permute.xlu1 %2460 }
 0x879   : > { %v2783_v56 = vpop.f32.mrb[16].mxu0 }
 0x87a   : > { %v2784_v19 = vadd.f32 %v2783_v56, %v2456_v3  ;;  %v2785_v48 = vpop.f32.mrb[17].mxu0 }
 0x87b   : > { %v2786_v26 = vadd.f32 %v2785_v48, %v2456_v3 }
 0x87c   : > { %v2869_v61 = vmul.f32 %v2784_v19, %v5588_v4  ;;  %v2860_v1 = vpop.f32.mrb[12].mxu1 }
 0x87d   : > { %v2870_v49 = vmul.f32 %v2786_v26, %v5590_v24  ;;  %v2861_v30 = vadd.f32 %v2860_v1, %v2456_v3  ;;  %v2789_v29 = vpop.f32.mrb[18].mxu0  ;;  %v2862_v16 = vpop.f32.mrb[13].mxu1 }
 0x87e   : > { %v2875_v18 = vmax.f32 %v2869_v61, 0.0  ;;  %v2790_v33 = vadd.f32 %v2789_v29, %v2461_v58  ;;  %v2791_v22 = vpop.f32.mrb[19].mxu0 }
 0x87f   : > { %v2876_v59 = vmax.f32 %v2870_v49, 0.0  ;;  %v2871_v31 = vmul.f32 %v2861_v30, %v5602_v21  ;;  %v2792_v6 = vadd.f32 %v2791_v22, %v2461_v58 }
 0x880   : > { %v2872_v10 = vmul.f32 %v2790_v33, %v5588_v4  ;;  %v2865_v52 = vpop.f32.mrb[14].mxu1 }
 0x881   : > { %v2877_v45 = vmax.f32 %v2871_v31, 0.0  ;;  %v2873_v55 = vmul.f32 %v2792_v6, %v5590_v24  ;;  %v2866_v32 = vadd.f32 %v2865_v52, %v2461_v58  ;;  %v5008_v25 = vpack.i.bf16 %v2876_v59, %v2875_v18  ;;  %v2867_v13 = vpop.f32.mrb[15].mxu1 }
 0x882   : > { %v2878_v51 = vmax.f32 %v2872_v10, 0.0 }
 0x883   : > { %v2879_v44 = vmax.f32 %v2873_v55, 0.0  ;;  %v2874_v63 = vmul.f32 %v2866_v32, %v5602_v21  ;;  %5009 = vrot.lane.b32.xlu1 %v5008_v25, %s5306_s19  ;;  %5004 = vrot.lane.b32.xlu0 %v5008_v25, %s7695_s20 }
 0x884   : > { %v5033_v34 = vpack.i.bf16 %v2878_v51, %v2877_v45 }
 0x885   : > { %v2880_v54 = vmax.f32 %v2874_v63, 0.0  ;;  %v5133_v5 = vpack.i.bf16 %v2879_v44, %v2878_v51 }
 0x887   : > { %5019 = vrot.lane.b32.xlu1 %v5008_v25, %s7682_s26  ;;  %v5063_v46 = vpack.i.bf16 %v2880_v54, %v2879_v44  ;;  %5014 = vrot.lane.b32.xlu0 %v5008_v25, %s7683_s28  ;;  %v5123_v57 = vpack.i.bf16 %v2880_v54, %v2877_v45 }
 0x88b   : > { %5029 = vrot.lane.b32.xlu1 %v5008_v25, %s7684_s21  ;;  %5024 = vrot.lane.b32.xlu0 %v5008_v25, %s7685_s24 }
 0x88f   : > { %5034 = vrot.lane.b32.xlu1 %v5033_v34, %s7695_s20  ;;  %5039 = vrot.lane.b32.xlu0 %v5033_v34, %s5306_s19 }
 0x893   : > { %5044 = vrot.lane.b32.xlu1 %v5033_v34, %s7683_s28  ;;  %5049 = vrot.lane.b32.xlu0 %v5033_v34, %s7682_s26 }
 0x897   : > { %5054 = vrot.lane.b32.xlu1 %v5033_v34, %s7685_s24  ;;  %5059 = vrot.lane.b32.xlu0 %v5033_v34, %s7684_s21 }
 0x89b   : > { %5074 = vrot.lane.b32.xlu1 %v5033_v34, %s7686_s23  ;;  %5064 = vrot.lane.b32.xlu0 %v5063_v46, %s7695_s20 }
 0x89f   : > { %5079 = vrot.lane.b32.xlu1 %v5063_v46, %s5306_s19  ;;  %5069 = vrot.lane.b32.xlu0 %v5008_v25, %s7686_s23 }
 0x8a3   : > { %5084 = vrot.lane.b32.xlu1 %v5008_v25, %s7687_s25  ;;  %5089 = vrot.lane.b32.xlu0 %v5063_v46, %s7683_s28 }
 0x8a7   : > { %5099 = vrot.lane.b32.xlu1 %v5063_v46, %s7682_s26  ;;  %5094 = vrot.lane.b32.xlu0 %v5033_v34, %s7687_s25  ;;  %s487_s26 = scalar_lea.vmem %s7583_s14, %s3950_s16 }
 0x8ab   : > { %5114 = vrot.lane.b32.xlu1 %v5063_v46, %s7684_s21  ;;  %5104 = vrot.lane.b32.xlu0 %v5063_v46, %s7685_s24 }
 0x8af   : > { %5129 = vrot.lane.b32.xlu1 %v5063_v46, %s7687_s25  ;;  %5109 = vrot.lane.b32.xlu0 %v5008_v25, %s7678_s27 }
 0x8b3   : > { %5134 = vrot.lane.b32.xlu1 %v5133_v5, %s7678_s27  ;;  %5119 = vrot.lane.b32.xlu0 %v5063_v46, %s7686_s23 }
 0x8b7   : > { %5124 = vrot.lane.b32.xlu0 %v5123_v57, %s7678_s27 }
 0x8f5   : > { %v7139_v53 = vpop.permute.xlu1 %5009  ;;  %v7141_v36 = vpop.permute.xlu0 %5004 }
 0x8f6   : > { %v5007_v20 = vunpack.i.h.bf16 %v7141_v36  ;;  %v5006_v9 = vunpack.i.l.bf16 %v7141_v36  ;;  %v5012_v62 = vunpack.i.h.bf16 %v7139_v53  ;;  %v5011_v3 = vunpack.i.l.bf16 %v7139_v53 }
 0x8f8   : > { %v2900_v56 = vsel %vm506_vm0, %v5006_v9, %v5007_v20  ;;  %v2918_v49 = vsel %vm518_vm5, %v5011_v3, %v5012_v62 }
 0x8f9   : > { %v7143_v17 = vpop.permute.xlu1 %5019  ;;  %v7145_v23 = vpop.permute.xlu0 %5014 }
 0x8fa   : > { %v5017_v30 = vunpack.i.h.bf16 %v7145_v23  ;;  %v5016_v29 = vunpack.i.l.bf16 %v7145_v23  ;;  %v5022_v31 = vunpack.i.h.bf16 %v7143_v17  ;;  %v5021_v6 = vunpack.i.l.bf16 %v7143_v17 }
 0x8fc   : > { %v2936_v10 = vsel %vm530_vm1, %v5016_v29, %v5017_v30  ;;  %v2953_v51 = vsel %vm540_vm7, %v5021_v6, %v5022_v31 }
 0x8fd   : > { %v7147_v35 = vpop.permute.xlu1 %5029  ;;  %v7149_v7 = vpop.permute.xlu0 %5024 }
 0x8fe   : > { %v5027_v44 = vunpack.i.h.bf16 %v7149_v7  ;;  %v5026_v63 = vunpack.i.l.bf16 %v7149_v7  ;;  %v5032_v7 = vunpack.i.h.bf16 %v7147_v35 }
 0x901   : > { %v7153_v12 = vpop.permute.xlu1 %5034  ;;  %v7156_v27 = vpop.permute.xlu0 %5039 }
 0x902   : > { %v5036_v14 = vunpack.i.l.bf16 %v7153_v12  ;;  %v5041_v50 = vunpack.i.l.bf16 %v7156_v27 }
 0x904   : > { %v2901_v19 = vsel %vm506_vm0, %v5007_v20, %v5036_v14  ;;  %v2919_v58 = vsel %vm518_vm5, %v5012_v62, %v5041_v50  ;;  %v5031_v62 = vunpack.i.l.bf16 %v7147_v35 }
 0x905   : > { %v5138_v48 = vpack.i.bf16 %v2901_v19, %v2900_v56  ;;  %v7165_v26 = vpop.permute.xlu1 %5044  ;;  %v7169_v1 = vpop.permute.xlu0 %5049  ;;  %v5143_v16 = vpack.i.bf16 %v2919_v58, %v2918_v49 }
 0x906   : > { %v5046_v61 = vunpack.i.l.bf16 %v7165_v26  ;;  %v5051_v22 = vunpack.i.l.bf16 %v7169_v1 }
 0x907   : > { %5139 = vrot.lane.b32.xlu1 %v5138_v48, %s7678_s27 }
 0x908   : > { %v2937_v33 = vsel %vm530_vm1, %v5017_v30, %v5046_v61  ;;  %v2954_v55 = vsel %vm540_vm7, %v5022_v31, %v5051_v22 }
 0x909   : > { %v7177_v18 = vpop.permute.xlu1 %5054  ;;  %v7181_v59 = vpop.permute.xlu0 %5059  ;;  %v5148_v52 = vpack.i.bf16 %v2937_v33, %v2936_v10  ;;  %v5153_v34 = vpack.i.bf16 %v2954_v55, %v2953_v51  ;;  %v5052_v33 = vunpack.i.h.bf16 %v7169_v1 }
 0x90a   : > { %v5056_v32 = vunpack.i.l.bf16 %v7177_v18  ;;  %v5061_v57 = vunpack.i.l.bf16 %v7181_v59 }
 0x90b   : > { %5144 = vrot.lane.b32.xlu1 %v5143_v16, %s7678_s27  ;;  %v2987_v16 = vsel %vm564_vm4, %v5031_v62, %v5032_v7 }
 0x90c   : > { %v2970_v5 = vsel %vm552_vm2, %v5027_v44, %v5056_v32  ;;  %v2988_v58 = vsel %vm564_vm4, %v5032_v7, %v5061_v57  ;;  %v2989_v36 = vsel %vm564_vm4, %v5061_v57, %v5654_v41 }
 0x90d   : > { %v7189_v45 = vpop.permute.xlu1 %5074  ;;  %v7193_v25 = vpop.permute.xlu0 %5064 }
 0x90e   : > { %v5067_v13 = vunpack.i.h.bf16 %v7193_v25 }
 0x90f   : > { %5149 = vrot.lane.b32.xlu1 %v5148_v52, %s7678_s27 }
 0x910   : > { %v5168_v54 = vpack.i.bf16 %v5067_v13, %v5036_v14  ;;  %v2969_v14 = vsel %vm552_vm2, %v5026_v63, %v5027_v44  ;;  %v5037_v44 = vunpack.i.h.bf16 %v7153_v12 }
 0x911   : > { %v7202_v46 = vpop.permute.xlu1 %5079  ;;  %v7207_v20 = vpop.permute.xlu0 %5069  ;;  %v5158_v19 = vpack.i.bf16 %v2970_v5, %v2969_v14 }
 0x912   : > { %v5082_v17 = vunpack.i.h.bf16 %v7202_v46  ;;  %5169 = vrot.lane.b32.xlu0 %v5168_v54, %s7678_s27  ;;  %v2902_v12 = vsel %vm506_vm0, %v5648_v38, %v5037_v44 }
 0x913   : > { %5154 = vrot.lane.b32.xlu1 %v5153_v34, %s7678_s27  ;;  %v5188_v34 = vpack.i.bf16 %v5052_v33, %v5021_v6  ;;  %v2971_v6 = vsel %vm552_vm2, %v5056_v32, %v5650_v39 }
 0x914   : > { %v5173_v56 = vpack.i.bf16 %v5082_v17, %v5041_v50  ;;  %v5163_v50 = vpack.i.bf16 %v2988_v58, %v2987_v16 }
 0x915   : > { %v7216_v48 = vpop.permute.xlu1 %5084  ;;  %v7219_v49 = vpop.permute.xlu0 %5089 }
 0x916   : > { %v5092_v30 = vunpack.i.h.bf16 %v7219_v49  ;;  %5174 = vrot.lane.b32.xlu0 %v5173_v56, %s7678_s27 }
 0x917   : > { %5159 = vrot.lane.b32.xlu1 %v5158_v19, %s7678_s27 }
 0x918   : > { %v5178_v31 = vpack.i.bf16 %v5092_v30, %v5046_v61  ;;  %v5057_v61 = vunpack.i.h.bf16 %v7177_v18 }
 0x919   : > { %v7230_v10 = vpop.permute.xlu1 %5099  ;;  %v7233_v55 = vpop.permute.xlu0 %5094 }
 0x91a   : > { %v5102_v52 = vunpack.i.h.bf16 %v7230_v10  ;;  %5179 = vrot.lane.b32.xlu0 %v5178_v31, %s7678_s27  ;;  %v5193_v56 = vpack.i.bf16 %v5057_v61, %v5026_v63 }
 0x91b   : > { %5164 = vrot.lane.b32.xlu1 %v5163_v50, %s7678_s27 }
 0x91c   : > { %v5183_v51 = vpack.i.bf16 %v5102_v52, %v5051_v22  ;;  %v5042_v22 = vunpack.i.h.bf16 %v7156_v27  ;;  %v2899_v27 = vsel %vm506_vm0, %v5648_v38, %v5006_v9  ;;  %v5076_v38 = vunpack.i.l.bf16 %v7189_v45 }
 0x91d   : > { %v7243_v54 = vpop.permute.xlu1 %5114  ;;  %v7245_v5 = vpop.permute.xlu0 %5104  ;;  %v5203_v63 = vpack.i.bf16 %v2902_v12, %v2899_v27 }
 0x91e   : > { %v5117_v7 = vunpack.i.h.bf16 %v7243_v54  ;;  %v5107_v14 = vunpack.i.h.bf16 %v7245_v5  ;;  %5184 = vrot.lane.b32.xlu0 %v5183_v51, %s7678_s27  ;;  %v5047_v51 = vunpack.i.h.bf16 %v7165_v26  ;;  %v3007_v53 = vsel %vm576_vm3, %v5076_v38, %v5658_v43 }
 0x91f   : > { %5189 = vrot.lane.b32.xlu1 %v5188_v34, %s7678_s27 }
 0x920   : > { %v2974_v19 = vsel %vm552_vm2, %v5107_v14, %v5650_v39  ;;  %v2992_v32 = vsel %vm564_vm4, %v5117_v7, %v5654_v41  ;;  %v2920_v39 = vsel %vm518_vm5, %v5652_v40, %v5042_v22 }
 0x921   : > { %v7262_v58 = vpop.permute.xlu1 %5129  ;;  %v5198_v16 = vpack.i.bf16 %v2974_v19, %v2971_v6  ;;  %v5110_v50 = vpop.permute.xlu0 %5109  ;;  %v5066_v6 = vunpack.i.l.bf16 %v7193_v25  ;;  %v5223_v19 = vpack.i.bf16 %v2992_v32, %v2989_v36 }
 0x922   : > { %v5111_v31 = vunpack.i.l.bf16 %v5110_v50  ;;  %v5112_v9 = vunpack.i.h.bf16 %v5110_v50 }
 0x923   : > { %5194 = vrot.lane.b32.xlu1 %v5193_v56, %s7678_s27  ;;  %5199 = vrot.lane.b32.xlu0 %v5198_v16, %s7678_s27  ;;  %v2917_v16 = vsel %vm518_vm5, %v5652_v40, %v5011_v3 }
 0x924   : > { %v5208_v41 = vpack.i.bf16 %v2920_v39, %v2917_v16  ;;  %v3185_v57 = vsel %vm678_vm9, %v5844_v0, %v5111_v31  ;;  %v3186_v3 = vsel %vm678_vm9, %v5111_v31, %v5112_v9  ;;  %v5081_v16 = vunpack.i.l.bf16 %v7202_v46 }
 0x925   : > { %v5135_v34 = vpop.permute.xlu1 %5134  ;;  %v7281_v27 = vpop.permute.xlu0 %5119  ;;  %v5062_v31 = vunpack.i.h.bf16 %v7181_v59 }
 0x926   : > { %v5137_v56 = vunpack.i.h.bf16 %v5135_v34  ;;  %v5136_v12 = vunpack.i.l.bf16 %v5135_v34  ;;  %v5122_v26 = vunpack.i.h.bf16 %v7281_v27 }
 0x927   : > { %5204 = vrot.lane.b32.xlu1 %v5203_v63, %s7678_s27  ;;  %5224 = vrot.lane.b32.xlu0 %v5223_v19, %s7678_s27  ;;  %v2938_v63 = vsel %vm530_vm1, %v5656_v42, %v5047_v51  ;;  %v5218_v59 = vpack.i.bf16 %v5062_v31, %v5031_v62 }
 0x928   : > { %v3188_v50 = vsel %vm678_vm9, %v5844_v0, %v5136_v12  ;;  %v3189_v32 = vsel %vm678_vm9, %v5136_v12, %v5137_v56  ;;  %v3010_v40 = vsel %vm576_vm3, %v5122_v26, %v5658_v43  ;;  %v2903_v0 = vsel %vm506_vm0, %v5037_v44, %v5066_v6 }
 0x929   : > { %v3888_v36 = vpack.c.bf16 %v3188_v50, %v3185_v57  ;;  %v5238_v39 = vpack.i.bf16 %v3010_v40, %v3007_v53  ;;  %v5125_v34 = vpop.permute.xlu0 %5124  ;;  %v3886_v19 = vpack.c.bf16 %v3189_v32, %v3186_v3  ;;  %v2904_v12 = vsel %vm506_vm0, %v5066_v6, %v5067_v13 }
 0x92a   : > { %v5127_v57 = vunpack.i.h.bf16 %v5125_v34  ;;  %v5126_v50 = vunpack.i.l.bf16 %v5125_v34  ;;  %v2935_v43 = vsel %vm530_vm1, %v5656_v42, %v5016_v29  ;;  %v5253_v6 = vpack.i.bf16 %v2904_v12, %v2903_v0 }
 0x92b   : > { %5209 = vrot.lane.b32.xlu1 %v5208_v41, %s7678_s27  ;;  %3887 = vmatprep.subr.bf16.mxu0 %v3886_v19  ;;  %v5213_v44 = vpack.i.bf16 %v2938_v63, %v2935_v43  ;;  %v5072_v32 = vunpack.i.h.bf16 %v7207_v20  ;;  %v5071_v41 = vunpack.i.l.bf16 %v7207_v20  ;;  %v2921_v53 = vsel %vm518_vm5, %v5042_v22, %v5081_v16 }
 0x92c   : > { %5239 = vrot.lane.b32.xlu0 %v5238_v39, %s7678_s27  ;;  %v3190_v25 = vsel %vm678_vm9, %v5137_v56, %v5127_v57  ;;  %v3187_v13 = vsel %vm678_vm9, %v5112_v9, %v5126_v50  ;;  %3889 = vmatpush1.bf16.msra.mxu0 %v3888_v36  ;;  %v2922_v42 = vsel %vm518_vm5, %v5081_v16, %v5082_v17  ;;  %v5091_v29 = vunpack.i.l.bf16 %v7219_v49  ;;  %v3030_v50 = vld [vmem:[%s7581_s12 + $0x8] sm:$0xff] }
 0x92d   : > { %v3923_v23 = vpack.c.bf16 %v3190_v25, %v3187_v13  ;;  %v5258_v20 = vpack.i.bf16 %v2922_v42, %v2921_v53  ;;  %v3006_v9 = vsel %vm576_vm3, %v5072_v32, %v5076_v38  ;;  %v3005_v22 = vsel %vm576_vm3, %v5071_v41, %v5072_v32  ;;  %3565 = vmatprep.mubr.msk.f32.mxu0 %vm1349_vm10, %v3030_v50  ;;  %v3034_v25 = vld [vmem:[%s7582_s13 + $0x8] sm:$0xff] }
 0x92e   : > { %v2939_v46 = vsel %vm530_vm1, %v5047_v51, %v5091_v29  ;;  %v2940_v17 = vsel %vm530_vm1, %v5091_v29, %v5092_v30  ;;  %v5101_v56 = vunpack.i.l.bf16 %v7230_v10  ;;  %v5228_v35 = vpack.i.bf16 %v3006_v9, %v3005_v22  ;;  %3567 = vmatprep.mubr.msk.f32.mxu1 %vm1349_vm10, %v3030_v50 }
 0x92f   : > { %5214 = vrot.lane.b32.xlu1 %v5213_v44, %s7678_s27  ;;  %3924 = vmatpush1.bf16.msra.mxu1 %v3923_v23  ;;  %v5263_v62 = vpack.i.bf16 %v2940_v17, %v2939_v46  ;;  %v5096_v36 = vunpack.i.l.bf16 %v7233_v55  ;;  %v5077_v38 = vunpack.i.h.bf16 %v7189_v45  ;;  %v5106_v30 = vunpack.i.l.bf16 %v7245_v5 }
 0x930   : > { %5254 = vrot.lane.b32.xlu0 %v5253_v6, %s7678_s27  ;;  %3925 = vmatprep.subr.bf16.mxu1 %v7677_v28  ;;  %v2955_v51 = vsel %vm540_vm7, %v5052_v33, %v5101_v56  ;;  %v2956_v49 = vsel %vm540_vm7, %v5101_v56, %v5102_v52  ;;  %v5087_v40 = vunpack.i.h.bf16 %v7216_v48  ;;  %v5086_v3 = vunpack.i.l.bf16 %v7216_v48 }
 0x931   : > { %v5233_v63 = vpack.i.bf16 %v5077_v38, %v5071_v41  ;;  %v5268_v45 = vpack.i.bf16 %v2956_v49, %v2955_v51  ;;  %v5116_v33 = vunpack.i.l.bf16 %v7243_v54  ;;  %v2972_v10 = vsel %vm552_vm2, %v5057_v61, %v5106_v30 }
 0x932   : > { %v3024_v1 = vsel %vm588_vm6, %v5087_v40, %v5096_v36  ;;  %v2973_v52 = vsel %vm552_vm2, %v5106_v30, %v5107_v14  ;;  %v3023_v48 = vsel %vm588_vm6, %v5086_v3, %v5087_v40  ;;  %v5097_v0 = vunpack.i.h.bf16 %v7233_v55 }
 0x933   : > { %5219 = vrot.lane.b32.xlu1 %v5218_v59, %s7678_s27  ;;  %v5243_v39 = vpack.i.bf16 %v3024_v1, %v3023_v48  ;;  %v5273_v34 = vpack.i.bf16 %v2973_v52, %v2972_v10  ;;  %v2990_v19 = vsel %vm564_vm4, %v5062_v31, %v5116_v33  ;;  %v2991_v18 = vsel %vm564_vm4, %v5116_v33, %v5117_v7  ;;  %v3033_v7 = vld [vmem:[%s7582_s13] sm:$0xff] }
 0x934   : > { %5259 = vrot.lane.b32.xlu0 %v5258_v20, %s7678_s27  ;;  %v5121_v61 = vunpack.i.l.bf16 %v7281_v27  ;;  %v5248_v5 = vpack.i.bf16 %v5097_v0, %v5086_v3  ;;  %v5278_v14 = vpack.i.bf16 %v2991_v18, %v2990_v19  ;;  %v5132_v12 = vunpack.i.h.bf16 %v7262_v58 }
 0x935   : > { %v5131_v55 = vunpack.i.l.bf16 %v7262_v58  ;;  %v3025_v44 = vsel %vm588_vm6, %v5096_v36, %v5819_v11 }
 0x936   : > { %v3008_v16 = vsel %vm576_vm3, %v5077_v38, %v5121_v61  ;;  %v3009_v54 = vsel %vm576_vm3, %v5121_v61, %v5122_v26  ;;  %v3028_v26 = vsel %vm588_vm6, %v5132_v12, %v5819_v11 }
 0x937   : > { %5229 = vrot.lane.b32.xlu1 %v5228_v35, %s7678_s27  ;;  %v5283_v57 = vpack.i.bf16 %v3009_v54, %v3008_v16  ;;  %v3026_v58 = vsel %vm588_vm6, %v5097_v0, %v5131_v55  ;;  %v3027_v43 = vsel %vm588_vm6, %v5131_v55, %v5132_v12  ;;  %v5293_v31 = vpack.i.bf16 %v3028_v26, %v3025_v44 }
 0x938   : > { %5264 = vrot.lane.b32.xlu0 %v5263_v62, %s7678_s27  ;;  %v5288_v27 = vpack.i.bf16 %v3027_v43, %v3026_v58 }
 0x93b   : > { %5234 = vrot.lane.b32.xlu1 %v5233_v63, %s7678_s27 }
 0x93c   : > { %5269 = vrot.lane.b32.xlu0 %v5268_v45, %s7678_s27 }
 0x93f   : > { %5244 = vrot.lane.b32.xlu1 %v5243_v39, %s7678_s27 }
 0x940   : > { %5274 = vrot.lane.b32.xlu0 %v5273_v34, %s7678_s27 }
 0x943   : > { %5249 = vrot.lane.b32.xlu1 %v5248_v5, %s7678_s27 }
 0x944   : > { %5279 = vrot.lane.b32.xlu0 %v5278_v14, %s7678_s27 }
 0x947   : > { %3037 = vperm.xlu1 %4117, %v3033_v7  }
 0x948   : > { %5284 = vrot.lane.b32.xlu0 %v5283_v57, %s7678_s27 }
 0x94c   : > { %5289 = vrot.lane.b32.xlu0 %v5288_v27, %s7678_s27 }
 0x950   : > { %5294 = vrot.lane.b32.xlu0 %v5293_v31, %s7678_s27 }
 0x954   : > { %3042 = vperm.xlu0 %4116, %v3034_v25  }
 0x979   : > { %v5140_v13 = vpop.permute.xlu1 %5139 }
 0x97a   : > { %v5142_v56 = vunpack.i.h.bf16 %v5140_v13  ;;  %v5141_v35 = vunpack.i.l.bf16 %v5140_v13 }
 0x97c   : > { %v3192_v52 = vsel %vm678_vm9, %v5141_v35, %v5142_v56 }
 0x97d   : > { %v5145_v6 = vpop.permute.xlu1 %5144 }
 0x97e   : > { %v5147_v36 = vunpack.i.h.bf16 %v5145_v6  ;;  %v5146_v38 = vunpack.i.l.bf16 %v5145_v6 }
 0x980   : > { %v3198_v48 = vsel %vm678_vm9, %v5146_v38, %v5147_v36 }
 0x981   : > { %v7399_v32 = vpop.permute.xlu1 %5149 }
 0x982   : > { %v5152_v51 = vunpack.i.h.bf16 %v7399_v32  ;;  %v5151_v49 = vunpack.i.l.bf16 %v7399_v32 }
 0x984   : > { %v5170_v41 = vpop.permute.xlu0 %5169  ;;  %v7428_v0 = vsel %vm678_vm9, %v5151_v49, %v5152_v51 }
 0x985   : > { %v7401_v23 = vpop.permute.xlu1 %5154  ;;  %v5171_v40 = vunpack.i.l.bf16 %v5170_v41  ;;  %v5172_v33 = vunpack.i.h.bf16 %v5170_v41 }
 0x986   : > { %v5157_v3 = vunpack.i.h.bf16 %v7401_v23  ;;  %v5156_v63 = vunpack.i.l.bf16 %v7401_v23 }
 0x987   : > { %v3193_v39 = vsel %vm678_vm9, %v5142_v56, %v5171_v40 }
 0x988   : > { %v5175_v53 = vpop.permute.xlu0 %5174  ;;  %v7436_v12 = vsel %vm678_vm9, %v5156_v63, %v5157_v3 }
 0x989   : > { %v7403_v42 = vpop.permute.xlu1 %5159  ;;  %v5177_v61 = vunpack.i.h.bf16 %v5175_v53  ;;  %v5176_v5 = vunpack.i.l.bf16 %v5175_v53 }
 0x98a   : > { %v5162_v50 = vunpack.i.h.bf16 %v7403_v42  ;;  %v5161_v58 = vunpack.i.l.bf16 %v7403_v42 }
 0x98b   : > { %v3199_v6 = vsel %vm678_vm9, %v5147_v36, %v5176_v5 }
 0x98c   : > { %v7405_v29 = vpop.permute.xlu0 %5179 }
 0x98d   : > { %v7407_v11 = vpop.permute.xlu1 %5164  ;;  %v5181_v32 = vunpack.i.l.bf16 %v7405_v29  ;;  %v5182_v40 = vunpack.i.h.bf16 %v7405_v29 }
 0x98e   : > { %v5167_v5 = vunpack.i.h.bf16 %v7407_v11 }
 0x990   : > { %v7409_v59 = vpop.permute.xlu0 %5184 }
 0x991   : > { %v7411_v20 = vpop.permute.xlu1 %5189 }
 0x992   : > { %v5191_v29 = vunpack.i.l.bf16 %v7411_v20 }
 0x995   : > { %v7413_v9 = vpop.permute.xlu1 %5194  ;;  %v7415_v22 = vpop.permute.xlu0 %5199 }
 0x999   : > { %v5205_v46 = vpop.permute.xlu1 %5204  ;;  %v7417_v17 = vpop.permute.xlu0 %5224 }
 0x99a   : > { %v5206_v45 = vunpack.i.l.bf16 %v5205_v46  ;;  %v5207_v34 = vunpack.i.h.bf16 %v5205_v46  ;;  %v5227_v42 = vunpack.i.h.bf16 %v7417_v17 }
 0x99c   : > { %v3191_v55 = vsel %vm678_vm9, %v5206_v45, %v5141_v35 }
 0x99d   : > { %v5210_v62 = vpop.permute.xlu1 %5209 }
 0x99e   : > { %v7421_v30 = vpop.permute.xlu0 %5239  ;;  %v5211_v14 = vunpack.i.l.bf16 %v5210_v62  ;;  %v5212_v44 = vunpack.i.h.bf16 %v5210_v62 }
 0x9a0   : > { %v3197_v41 = vsel %vm678_vm9, %v5211_v14, %v5146_v38  ;;  %v7461_v38 = vsel %vm678_vm9, %v5161_v58, %v5162_v50 }
 0x9a1   : > { %v5215_v1 = vpop.permute.xlu1 %5214 }
 0x9a2   : > { %v5255_v10 = vpop.permute.xlu0 %5254  ;;  %v5216_v53 = vunpack.i.l.bf16 %v5215_v1 }
 0x9a3   : > { %v5257_v19 = vunpack.i.h.bf16 %v5255_v10  ;;  %v5256_v18 = vunpack.i.l.bf16 %v5255_v10  ;;  %v5217_v10 = vunpack.i.h.bf16 %v5215_v1 }
 0x9a5   : > { %v3196_v16 = vsel %vm678_vm9, %v5257_v19, %v5172_v33  ;;  %v3194_v54 = vsel %vm678_vm9, %v5207_v34, %v5256_v18  ;;  %v7441_v7 = vpop.permute.xlu1 %5219  ;;  %v3195_v57 = vsel %vm678_vm9, %v5256_v18, %v5257_v19  ;;  %v3205_v19 = vsel %vm678_vm9, %v5152_v51, %v5181_v32 }
 0x9a6   : > { %v3892_v43 = vpack.c.bf16 %v3194_v54, %v3191_v55  ;;  %v3926_v27 = vpack.c.bf16 %v3196_v16, %v3193_v39  ;;  %v5260_v26 = vpop.permute.xlu0 %5259  ;;  %v3890_v13 = vpack.c.bf16 %v3195_v57, %v3192_v52  ;;  %v5186_v18 = vunpack.i.l.bf16 %v7409_v59 }
 0x9a7   : > { %v5262_v31 = vunpack.i.h.bf16 %v5260_v26  ;;  %v5261_v25 = vunpack.i.l.bf16 %v5260_v26  ;;  %v5166_v51 = vunpack.i.l.bf16 %v7407_v11  ;;  %v3209_v11 = vsel %vm678_vm9, %v5191_v29, %v5156_v63 }
 0x9a8   : > { %3927 = vmatpush1.bf16.msra.mxu1 %v3926_v27  ;;  %3891 = vmatprep.subr.bf16.mxu0 %v3890_v13 }
 0x9a9   : > { %v3200_v46 = vsel %vm678_vm9, %v5212_v44, %v5261_v25  ;;  %v3202_v56 = vsel %vm678_vm9, %v5262_v31, %v5177_v61  ;;  %v7451_v35 = vpop.permute.xlu1 %5229  ;;  %3928 = vmatprep.subr.bf16.mxu1 %v7677_v28  ;;  %v3201_v62 = vsel %vm678_vm9, %v5261_v25, %v5262_v31  ;;  %3893 = vmatpush1.bf16.msra.mxu0 %v3892_v43  ;;  %v5192_v43 = vunpack.i.h.bf16 %v7411_v20 }
 0x9aa   : > { %v3896_v36 = vpack.c.bf16 %v3200_v46, %v3197_v41  ;;  %v3929_v45 = vpack.c.bf16 %v3202_v56, %v3199_v6  ;;  %v5265_v33 = vpop.permute.xlu0 %5264  ;;  %v3894_v34 = vpack.c.bf16 %v3201_v62, %v3198_v48  ;;  %v3203_v61 = vsel %vm678_vm9, %v5216_v53, %v5151_v49 }
 0x9ab   : > { %v5267_v52 = vunpack.i.h.bf16 %v5265_v33  ;;  %v5266_v39 = vunpack.i.l.bf16 %v5265_v33  ;;  %v5187_v48 = vunpack.i.h.bf16 %v7409_v59  ;;  %v3211_v31 = vsel %vm678_vm9, %v5157_v3, %v5186_v18 }
 0x9ac   : > { %3930 = vmatpush1.bf16.msra.mxu1 %v3929_v45  ;;  %3895 = vmatprep.subr.bf16.mxu0 %v3894_v34  ;;  %v5201_v59 = vunpack.i.l.bf16 %v7415_v22  ;;  %v5196_v25 = vunpack.i.l.bf16 %v7413_v9  ;;  %v5197_v3 = vunpack.i.h.bf16 %v7413_v9  ;;  %v3222_v32 = vsel %vm678_vm9, %v5166_v51, %v5167_v5 }
 0x9ad   : > { %v3206_v14 = vsel %vm678_vm9, %v5217_v10, %v5266_v39  ;;  %v3208_v55 = vsel %vm678_vm9, %v5267_v52, %v5182_v40  ;;  %3931 = vmatprep.subr.bf16.mxu1 %v7677_v28  ;;  %v3207_v1 = vsel %vm678_vm9, %v5266_v39, %v5267_v52  ;;  %3897 = vmatpush1.bf16.msra.mxu0 %v3896_v36  ;;  %v7474_v57 = vpop.permute.xlu1 %5234  ;;  %v5202_v41 = vunpack.i.h.bf16 %v7415_v22 }
 0x9ae   : > { %v3900_v16 = vpack.c.bf16 %v3206_v14, %v3203_v61  ;;  %v3932_v54 = vpack.c.bf16 %v3208_v55, %v3205_v19  ;;  %v5270_v49 = vpop.permute.xlu0 %5269  ;;  %v3898_v44 = vpack.c.bf16 %v3207_v1, %v7428_v0  ;;  %v3217_v62 = vsel %vm678_vm9, %v5162_v50, %v5201_v59 }
 0x9af   : > { %v5272_v27 = vunpack.i.h.bf16 %v5270_v49  ;;  %v5271_v26 = vunpack.i.l.bf16 %v5270_v49  ;;  %v3215_v9 = vsel %vm678_vm9, %v5196_v25, %v5161_v58  ;;  %v5226_v40 = vunpack.i.l.bf16 %v7417_v17 }
 0x9b0   : > { %3933 = vmatpush1.bf16.msra.mxu1 %v3932_v54  ;;  %3899 = vmatprep.subr.bf16.mxu0 %v3898_v44  ;;  %v5221_v36 = vunpack.i.l.bf16 %v7441_v7  ;;  %v5222_v50 = vunpack.i.h.bf16 %v7441_v7  ;;  %v5232_v39 = vunpack.i.h.bf16 %v7451_v35  ;;  %v5231_v14 = vunpack.i.l.bf16 %v7451_v35 }
 0x9b1   : > { %v3212_v13 = vsel %vm678_vm9, %v5192_v43, %v5271_v26  ;;  %v3214_v20 = vsel %vm678_vm9, %v5272_v27, %v5187_v48  ;;  %3934 = vmatprep.subr.bf16.mxu1 %v7677_v28  ;;  %v3213_v0 = vsel %vm678_vm9, %v5271_v26, %v5272_v27  ;;  %3901 = vmatpush1.bf16.msra.mxu0 %v3900_v16  ;;  %v7502_v45 = vpop.permute.xlu1 %5244  ;;  %v5236_v17 = vunpack.i.l.bf16 %v7474_v57 }
 0x9b2   : > { %v3904_v6 = vpack.c.bf16 %v3212_v13, %v3209_v11  ;;  %v3935_v23 = vpack.c.bf16 %v3214_v20, %v3211_v31  ;;  %v5275_v63 = vpop.permute.xlu0 %5274  ;;  %v3902_v56 = vpack.c.bf16 %v3213_v0, %v7436_v12  ;;  %v3223_v29 = vsel %vm678_vm9, %v5167_v5, %v5226_v40 }
 0x9b3   : > { %v5277_v53 = vunpack.i.h.bf16 %v5275_v63  ;;  %v5276_v46 = vunpack.i.l.bf16 %v5275_v63  ;;  %v3221_v61 = vsel %vm678_vm9, %v5221_v36, %v5166_v51  ;;  %v5241_v7 = vunpack.i.l.bf16 %v7421_v30 }
 0x9b4   : > { %3936 = vmatpush1.bf16.msra.mxu1 %v3935_v23  ;;  %3903 = vmatprep.subr.bf16.mxu0 %v3902_v56  ;;  %v5242_v5 = vunpack.i.h.bf16 %v7421_v30  ;;  %v5237_v43 = vunpack.i.h.bf16 %v7474_v57  ;;  %v3227_v44 = vsel %vm678_vm9, %v5236_v17, %v5231_v14  ;;  %v5247_v31 = vunpack.i.h.bf16 %v7502_v45 }
 0x9b5   : > { %v3218_v22 = vsel %vm678_vm9, %v5197_v3, %v5276_v46  ;;  %v3220_v33 = vsel %vm678_vm9, %v5277_v53, %v5202_v41  ;;  %3937 = vmatprep.subr.bf16.mxu1 %v7677_v28  ;;  %v3219_v12 = vsel %vm678_vm9, %v5276_v46, %v5277_v53  ;;  %3905 = vmatpush1.bf16.msra.mxu0 %v3904_v6  ;;  %v5250_v16 = vpop.permute.xlu1 %5249  ;;  %v5246_v11 = vunpack.i.l.bf16 %v7502_v45 }
 0x9b6   : > { %v3908_v58 = vpack.c.bf16 %v3218_v22, %v3215_v9  ;;  %v3938_v10 = vpack.c.bf16 %v3220_v33, %v3217_v62  ;;  %v5280_v52 = vpop.permute.xlu0 %5279  ;;  %v3906_v18 = vpack.c.bf16 %v3219_v12, %v7461_v38  ;;  %v3229_v49 = vsel %vm678_vm9, %v5232_v39, %v5241_v7 }
 0x9b7   : > { %v5282_v34 = vunpack.i.h.bf16 %v5280_v52  ;;  %v5281_v19 = vunpack.i.l.bf16 %v5280_v52  ;;  %v3228_v30 = vsel %vm678_vm9, %v5231_v14, %v5232_v39  ;;  %v5251_v59 = vunpack.i.l.bf16 %v5250_v16 }
 0x9b8   : > { %3939 = vmatpush1.bf16.msra.mxu1 %v3938_v10  ;;  %3907 = vmatprep.subr.bf16.mxu0 %v3906_v18  ;;  %v5252_v23 = vunpack.i.h.bf16 %v5250_v16  ;;  %v3234_v46 = vsel %vm678_vm9, %v5246_v11, %v5247_v31 }
 0x9b9   : > { %v3224_v55 = vsel %vm678_vm9, %v5222_v50, %v5281_v19  ;;  %v3226_v1 = vsel %vm678_vm9, %v5282_v34, %v5227_v42  ;;  %3940 = vmatprep.subr.bf16.mxu1 %v7677_v28  ;;  %v3225_v38 = vsel %vm678_vm9, %v5281_v19, %v5282_v34  ;;  %3909 = vmatpush1.bf16.msra.mxu0 %v3908_v58  ;;  %v3029_v42 = vld [vmem:[%s7581_s12] sm:$0xff]  ;;  %v3031_v50 = vld [vmem:[%s7581_s12 + $0x10] sm:$0xff] }
 0x9ba   : > { %v3912_v48 = vpack.c.bf16 %v3224_v55, %v3221_v61  ;;  %v3941_v51 = vpack.c.bf16 %v3226_v1, %v3223_v29  ;;  %v5285_v35 = vpop.permute.xlu0 %5284  ;;  %v3910_v54 = vpack.c.bf16 %v3225_v38, %v3222_v32  ;;  %v3233_v41 = vsel %vm678_vm9, %v5251_v59, %v5246_v11 }
 0x9bb   : > { %v5287_v27 = vunpack.i.h.bf16 %v5285_v35  ;;  %v5286_v26 = vunpack.i.l.bf16 %v5285_v35 }
 0x9bc   : > { %3911 = vmatprep.subr.bf16.mxu0 %v3910_v54  ;;  %3942 = vmatpush1.bf16.msra.mxu1 %v3941_v51 }
 0x9bd   : > { %v3230_v25 = vsel %vm678_vm9, %v5237_v43, %v5286_v26  ;;  %v3232_v13 = vsel %vm678_vm9, %v5287_v27, %v5242_v5  ;;  %3943 = vmatprep.subr.bf16.mxu1 %v7677_v28  ;;  %v3231_v57 = vsel %vm678_vm9, %v5286_v26, %v5287_v27  ;;  %3913 = vmatpush1.bf16.msra.mxu0 %v3912_v48 }
 0x9be   : > { %v3916_v20 = vpack.c.bf16 %v3230_v25, %v3227_v44  ;;  %v3944_v0 = vpack.c.bf16 %v3232_v13, %v3229_v49  ;;  %v5290_v3 = vpop.permute.xlu0 %5289  ;;  %v3914_v6 = vpack.c.bf16 %v3231_v57, %v3228_v30 }
 0x9bf   : > { %v5292_v63 = vunpack.i.h.bf16 %v5290_v3  ;;  %v5291_v32 = vunpack.i.l.bf16 %v5290_v3 }
 0x9c0   : > { %3915 = vmatprep.subr.bf16.mxu0 %v3914_v6  ;;  %3945 = vmatpush1.bf16.msra.mxu1 %v3944_v0 }
 0x9c1   : > { %v3236_v53 = vsel %vm678_vm9, %v5252_v23, %v5291_v32  ;;  %v3237_v56 = vsel %vm678_vm9, %v5291_v32, %v5292_v63  ;;  %3946 = vmatprep.subr.bf16.mxu1 %v7677_v28  ;;  %3917 = vmatpush1.bf16.msra.mxu0 %v3916_v20  ;;  %v3032_v28 = vld [vmem:[%s7581_s12 + $0x18] sm:$0xff] }
 0x9c2   : > { %v3920_v62 = vpack.c.bf16 %v3236_v53, %v3233_v41  ;;  %v5295_v9 = vpop.permute.xlu0 %5294  ;;  %v3918_v40 = vpack.c.bf16 %v3237_v56, %v3234_v46 }
 0x9c3   : > { %v5297_v36 = vunpack.i.h.bf16 %v5295_v9  ;;  %v5296_v45 = vunpack.i.l.bf16 %v5295_v9 }
 0x9c4   : > { %3919 = vmatprep.subr.bf16.mxu0 %v3918_v40 }
 0x9c5   : > { %v3235_v22 = vsel %vm678_vm9, %v5247_v31, %v5296_v45  ;;  %v3238_v33 = vsel %vm678_vm9, %v5292_v63, %v5297_v36  ;;  %3921 = vmatpush1.bf16.msra.mxu0 %v3920_v62 }
 0x9c6   : > { %v3947_v12 = vpack.c.bf16 %v3238_v33, %v3235_v22  ;;  %v3038_v58 = vpop.permute.xlu1 %3037 }
 0x9c8   : > { %3948 = vmatpush1.bf16.msra.mxu1 %v3947_v12  ;;  %3364 = vmatmul.mubr.f32.vlgmr.msra.gmra.mrb[20].mxu0 %v3029_v42 }
 0x9c9   : > { %3566 = vmatprep.mubr.msk.f32.mxu0 %vm1349_vm10, %v3032_v28 }
 0x9cb   : > { %3441 = vmatmul.mubr.f32.vlgmr.msra.gmra.mrb[16].mxu1 %v3029_v42 }
 0x9cc   : > { %3568 = vmatprep.mubr.msk.f32.mxu1 %vm1349_vm10, %v3032_v28  ;;  %3370 = vmatmul.mubr.f32.gmra.mrb[22].mxu0 %v3031_v50 }
 0x9cf   : > { %3446 = vmatmul.mubr.f32.gmra.mrb[18].mxu1 %v3031_v50 }
 0x9d3   : > { %v3043_v14 = vpop.permute.xlu0 %3042 }
 0xa9b   : > { %v3365_v10 = vpop.f32.mrb[20].mxu0 }
 0xa9c   : > { %v3366_v52 = vadd.f32 %v3365_v10, %v3038_v58  ;;  %v3367_v39 = vpop.f32.mrb[21].mxu0 }
 0xa9d   : > { %v3368_v34 = vadd.f32 %v3367_v39, %v3038_v58 }
 0xa9e   : > { %v3442_v19 = vpop.f32.mrb[16].mxu1  ;;  %v3451_v18 = vmul.f32 %v3366_v52, %v5588_v4 }
 0xa9f   : > { %v3443_v29 = vadd.f32 %v3442_v19, %v3038_v58  ;;  %v3444_v61 = vpop.f32.mrb[17].mxu1  ;;  %v3452_v17 = vmul.f32 %v3368_v34, %v5590_v24  ;;  %v3371_v7 = vpop.f32.mrb[22].mxu0 }
 0xaa0   : > { %v3457_v55 = vadd.f32 %v3451_v18, %v6651_v15  ;;  %v3372_v38 = vadd.f32 %v3371_v7, %v3043_v14  ;;  %v3373_v5 = vpop.f32.mrb[23].mxu0 }
 0xaa1   : > { %v3453_v1 = vmul.f32 %v3443_v29, %v5602_v21  ;;  %v3458_v48 = vadd.f32 %v3452_v17, %v6653_v37  ;;  %v3374_v51 = vadd.f32 %v3373_v5, %v3043_v14 }
 0xaa2   : > { %v3447_v16 = vpop.f32.mrb[18].mxu1  ;;  %3463 = vst [vmem:[%s487_s26] sm:$0xff] %v3457_v55  ;;  %v3454_v54 = vmul.f32 %v3372_v38, %v5588_v4 }
 0xaa3   : > { %v3459_v35 = vadd.f32 %v3453_v1, %v6646_v47  ;;  %v3448_v49 = vadd.f32 %v3447_v16, %v3043_v14  ;;  %v3449_v43 = vpop.f32.mrb[19].mxu1  ;;  %3464 = vst [vmem:[%s487_s26 + $0x8] sm:$0xff] %v3458_v48  ;;  %v3455_v27 = vmul.f32 %v3374_v51, %v5590_v24 }
 0xaa4   : > { %v3460_v15 = vadd.f32 %v3454_v54, %v6659_v2 }
 0xaa5   : > { %3465 = vst [vmem:[%s487_s26 + $0x10] sm:$0xff] %v3459_v35  ;;  %v3456_v26 = vmul.f32 %v3448_v49, %v5602_v21  ;;  %v3461_v44 = vadd.f32 %v3455_v27, %v6661_v8 }
 0xaa6   : > { %3466 = vst [vmem:[%s487_s26 + $0x18] sm:$0xff] %v3460_v15 }
 0xaa7   : > { %v3462_v37 = vadd.f32 %v3456_v26, %v6643_v60  ;;  %3467 = vst [vmem:[%s487_s26 + $0x20] sm:$0xff] %v3461_v44 }
 0xaa9   : > { %3468 = vst [vmem:[%s487_s26 + $0x28] sm:$0xff] %v3462_v37 }
 0xaaa PF: > { %s24_s29 = sadd.s32 1, %s5304_s29  }
 0xaab   : > { %p21_p4 = scmp.ge.s32.totalorder %s24_s29, 4  }
 0xaad   :  { %23 = sbr.rel (!%p21_p4) target bundleno = 1 (0x1), region = 109 }

</bundles_post_ra>
